<compile_context>
chip_gen: v7x
topology: tpu7x:2x2x1
jax: 0.10.0
libtpu: 0.0.40
codegen_flags: <defaults>
</compile_context>

<pallas_src>
import jax
import jax.numpy as jnp
from jax.experimental import pallas as pl
from jax.experimental.pallas import tpu as pltpu

_MB = 1024 * 1024


def _round_up(x, m):
    return ((x + m - 1) // m) * m


def _vmem_budget_bytes():
    """Generation-aware soft VMEM budget (v7x: ~56 MiB, v5e/v6e: ~100 MiB)."""
    cap = 64 * _MB
    try:
        cap = int(pltpu.get_tpu_info().vmem_capacity_bytes)
    except Exception:
        pass
    return int(min(cap - 8 * _MB, 100 * _MB))


def _block_vmem_bytes(bb, S, T, E, H):
    """Conservative per-batch-block VMEM estimate (double-buffered I/O)."""
    f32, bf16 = 4, 2
    emb_in = 2 * bb * (S + T) * E * bf16                 # embedding input blocks
    mask_in = 2 * bb * S * f32
    weights = 2 * (2 * E * H * bf16 + 4 * H * H * f32 + 2 * H * f32)
    outs = 2 * bb * (T * H + T * S + H) * f32            # output blocks
    scratch = bb * (S + T) * H * f32                     # in-place xp->hidden buffers
    interm = bb * T * (2 * S + 4 * H) * f32              # scores/attn/ctx/cat working set
    return emb_in + mask_in + weights + outs + scratch + interm


def _pick_batch_block(B, S, T, E, H, budget):
    """Largest batch block that fits the VMEM budget (keeps >=2 blocks when big)."""
    b8 = _round_up(max(int(B), 1), 8)
    fits = lambda bb: _block_vmem_bytes(bb, S, T, E, H) <= budget
    if b8 <= 128 and fits(b8):
        return b8                                        # whole padded batch, one block
    for bb in (256, 128):                                # MXU-filling, >=2 grid steps
        if pl.cdiv(b8, bb) >= 2 and fits(bb):
            return bb
    for bb in (128, 64, 32, 16):                         # VMEM-tight fallback
        if bb <= b8 and fits(bb):
            return bb
    return min(b8, 128)


def _nmt_kernel(src_emb_ref, tgt_emb_ref, mask_ref,
                w_ih_e_ref, b_e_ref, w_hh_e_ref,
                w_ih_d_ref, b_d_ref, w_hh_d_ref,
                w_out_ref,
                dec_out_ref, attn_ref, dec_final_ref,
                enc_buf_ref, dec_buf_ref):
    S, Bb, E = src_emb_ref.shape
    T = tgt_emb_ref.shape[0]
    H = w_hh_e_ref.shape[0]

    # ---- 1) Hoisted input projections: one bf16 MXU matmul per sequence ----
    # (f32 accumulation); removes one matmul from every serial recurrence step.
    xp_e = (jnp.dot(src_emb_ref[...].reshape(S * Bb, E), w_ih_e_ref[...],
                    preferred_element_type=jnp.float32) + b_e_ref[...])
    enc_buf_ref[...] = xp_e.reshape(S, Bb, H)
    xp_d = (jnp.dot(tgt_emb_ref[...].reshape(T * Bb, E), w_ih_d_ref[...],
                    preferred_element_type=jnp.float32) + b_d_ref[...])
    dec_buf_ref[...] = xp_d.reshape(T, Bb, H)

    w_hh_e = w_hh_e_ref[...]
    w_hh_d = w_hh_d_ref[...]

    # ---- 2) Serial recurrences: only tanh(xp[t] + h @ W_hh) on the critical
    # path.  The buffer is updated in place (xp[t] -> h_t), so it doubles as the
    # encoder memory bank / decoder hidden-state stack for the batched phase.
    def recur(buf_ref, w_hh, h0, n):
        def step(i, h):
            h = jnp.tanh(buf_ref[i]
                         + jnp.dot(h, w_hh, preferred_element_type=jnp.float32))
            buf_ref[i] = h
            return h
        if n <= 16:                            # short trip count: static unroll
            h = h0
            for i in range(n):
                h = step(i, h)
            return h
        return jax.lax.fori_loop(0, n, step, h0)   # long: bounded live ranges

    enc_final = recur(enc_buf_ref, w_hh_e, jnp.zeros((Bb, H), jnp.float32), S)
    dec_final = recur(dec_buf_ref, w_hh_d, enc_final, T)
    dec_final_ref[...] = dec_final

    # ---- 3) Attention + output projection for ALL decoder steps at once, off
    # the serial path, as batched MXU einsums (flash-attention-style layouts).
    mem = jnp.transpose(enc_buf_ref[...], (1, 0, 2))     # [Bb, S, H] memory bank
    dh = jnp.transpose(dec_buf_ref[...], (1, 0, 2))      # [Bb, T, H] decoder states

    scores = jnp.einsum('bth,bsh->bts', dh, mem,
                        preferred_element_type=jnp.float32)        # [Bb, T, S]
    scores = scores + mask_ref[...][:, None, :]                    # length mask
    m = jnp.max(scores, axis=-1, keepdims=True)
    p = jnp.exp(scores - m)
    z = jnp.sum(p, axis=-1, keepdims=True)
    attn = p * pl.reciprocal(z, approx=True)                       # EUP divide

    ctx = jnp.einsum('bts,bsh->bth', attn, mem,
                     preferred_element_type=jnp.float32)           # [Bb, T, H]

    # linear_out([ctx; h]) fused into one [Bb*T, 2H] @ [2H, H] matmul.
    cat = jnp.concatenate([ctx.reshape(Bb * T, H), dh.reshape(Bb * T, H)], axis=-1)
    out = jnp.tanh(jnp.dot(cat, w_out_ref[...],
                           preferred_element_type=jnp.float32))    # [Bb*T, H]

    dec_out_ref[...] = jnp.transpose(out.reshape(Bb, T, H), (1, 0, 2))  # [T, Bb, H]
    attn_ref[...] = jnp.transpose(attn, (1, 0, 2))                      # [T, Bb, S]


def nmt_forward(params, src, tgt, lengths):
    """src: [src_len, batch] int32, tgt: [tgt_len, batch] int32, lengths: [batch] (>=1)."""
    S, B = int(src.shape[0]), int(src.shape[1])
    tgt_in = tgt[:-1]                                    # NMTModel: tgt = tgt[:-1]
    T = int(tgt_in.shape[0])
    E = int(params["src_embed"].shape[1])
    H = int(params["w_hh_e"].shape[0])

    budget = _vmem_budget_bytes()
    bb = _pick_batch_block(B, S, T, E, H, budget)
    B_pad = _round_up(B, bb)
    nb = B_pad // bb

    lengths = lengths.astype(jnp.int32)
    if B_pad != B:
        pad = B_pad - B
        src_p = jnp.pad(src, ((0, 0), (0, pad)))
        tgt_p = jnp.pad(tgt_in, ((0, 0), (0, pad)))
        len_p = jnp.concatenate([lengths, jnp.full((pad,), S, jnp.int32)])
    else:
        src_p, tgt_p, len_p = src, tgt_in, lengths

    # bf16 embeddings halve HBM->VMEM traffic; all matmuls accumulate in f32.
    src_emb = params["src_embed"][src_p].astype(jnp.bfloat16)       # [S, B_pad, E]
    tgt_emb = params["tgt_embed"][tgt_p].astype(jnp.bfloat16)       # [T, B_pad, E]

    pos = jnp.arange(S, dtype=jnp.int32)[None, :]
    mask = jnp.where(pos < len_p[:, None], 0.0, -1e9).astype(jnp.float32)  # [B_pad, S]

    w_ih_e = params["w_ih_e"].astype(jnp.bfloat16)
    w_ih_d = params["w_ih_d"].astype(jnp.bfloat16)
    w_out = jnp.concatenate([params["w_out_c"], params["w_out_h"]], axis=0)  # [2H, H]

    vmem_limit = int(min(max(_block_vmem_bytes(bb, S, T, E, H), 32 * _MB), budget))

    def run(single_buffer_weights):
        def wspec(shape):
            idx = lambda b: (0, 0)                       # constant block index
            if single_buffer_weights:
                return pl.BlockSpec(shape, idx, pipeline_mode=pl.Buffered(1))
            return pl.BlockSpec(shape, idx)

        return pl.pallas_call(
            _nmt_kernel,
            out_shape=(jax.ShapeDtypeStruct((T, B_pad, H), jnp.float32),
                       jax.ShapeDtypeStruct((T, B_pad, S), jnp.float32),
                       jax.ShapeDtypeStruct((B_pad, H), jnp.float32)),
            grid=(nb,),
            in_specs=[
                pl.BlockSpec((S, bb, E), lambda b: (0, b, 0)),   # src embeddings
                pl.BlockSpec((T, bb, E), lambda b: (0, b, 0)),   # tgt embeddings
                pl.BlockSpec((bb, S), lambda b: (b, 0)),         # length mask
                wspec((E, H)), wspec((1, H)), wspec((H, H)),     # encoder weights
                wspec((E, H)), wspec((1, H)), wspec((H, H)),     # decoder weights
                wspec((2 * H, H)),                               # fused linear_out
            ],
            out_specs=(
                pl.BlockSpec((T, bb, H), lambda b: (0, b, 0)),   # decoder outputs
                pl.BlockSpec((T, bb, S), lambda b: (0, b, 0)),   # attention
                pl.BlockSpec((bb, H), lambda b: (b, 0)),         # final decoder state
            ),
            scratch_shapes=[pltpu.VMEM((S, bb, H), jnp.float32),   # xp_e -> memory bank
                            pltpu.VMEM((T, bb, H), jnp.float32)],  # xp_d -> dec states
            compiler_params=pltpu.CompilerParams(
                dimension_semantics=("parallel",),      # batch blocks -> v7x cores
                vmem_limit_bytes=vmem_limit),
        )(src_emb, tgt_emb, mask,
          w_ih_e, params["b_e"], params["w_hh_e"],
          w_ih_d, params["b_d"], params["w_hh_d"],
          w_out)

    try:
        dec_out, attn, dec_final = run(True)
    except Exception:
        # pl.Buffered(1) unsupported on this jax/libtpu -> default double buffering.
        dec_out, attn, dec_final = run(False)

    if B_pad != B:
        dec_out = dec_out[:, :B]
        attn = attn[:, :B]
        dec_final = dec_final[:B]
    return dec_out, {"std": attn}, dec_final


def _reference_forward(params, src, tgt, lengths):
    """Pure-JAX f32 reference of the same encoder/decoder realization."""
    S, B = src.shape
    tgt_in = tgt[:-1]
    T = tgt_in.shape[0]
    H = params["w_hh_e"].shape[0]
    src_e = params["src_embed"][src]
    tgt_e = params["tgt_embed"][tgt_in]
    mask = jnp.where(jnp.arange(S)[None, :] < lengths[:, None], 0.0, -1e9)   # [B, S]

    h = jnp.zeros((B, H), jnp.float32)
    bank = []
    for s in range(S):
        h = jnp.tanh(src_e[s] @ params["w_ih_e"] + params["b_e"] + h @ params["w_hh_e"])
        bank.append(h)
    mem = jnp.stack(bank)                                                    # [S, B, H]

    outs, atts = [], []
    for t in range(T):
        h = jnp.tanh(tgt_e[t] @ params["w_ih_d"] + params["b_d"] + h @ params["w_hh_d"])
        scores = jnp.einsum('bh,sbh->bs', h, mem) + mask
        a = jax.nn.softmax(scores, axis=-1)
        ctx = jnp.einsum('bs,sbh->bh', a, mem)
        outs.append(jnp.tanh(ctx @ params["w_out_c"] + h @ params["w_out_h"]))
        atts.append(a)
    return jnp.stack(outs), jnp.stack(atts), h


def init_params(key, src_vocab=20, tgt_vocab=20, emb=16, hidden=32):
    ks = jax.random.split(key, 8)
    sc = 0.1
    return {
        "src_embed": sc * jax.random.normal(ks[0], (src_vocab, emb), jnp.float32),
        "tgt_embed": sc * jax.random.normal(ks[1], (tgt_vocab, emb), jnp.float32),
        "w_ih_e": sc * jax.random.normal(ks[2], (emb, hidden), jnp.float32),
        "w_hh_e": sc * jax.random.normal(ks[3], (hidden, hidden), jnp.float32),
        "b_e": jnp.zeros((1, hidden), jnp.float32),
        "w_ih_d": sc * jax.random.normal(ks[4], (emb, hidden), jnp.float32),
        "w_hh_d": sc * jax.random.normal(ks[5], (hidden, hidden), jnp.float32),
        "b_d": jnp.zeros((1, hidden), jnp.float32),
        # linear_out([ctx; h]) split into two HxH halves (bias-free, dot scoring)
        "w_out_c": sc * jax.random.normal(ks[6], (hidden, hidden), jnp.float32),
        "w_out_h": sc * jax.random.normal(ks[7], (hidden, hidden), jnp.float32),
    }


if __name__ == "__main__":
    key = jax.random.PRNGKey(0)
    kp, ks, kt = jax.random.split(key, 3)

    params = init_params(kp)

    src_len, tgt_len, batch, hidden = 8, 8, 2, 32
    src = jax.random.randint(ks, (src_len, batch), 0, 20, dtype=jnp.int32)
    tgt = jax.random.randint(kt, (tgt_len, batch), 0, 20, dtype=jnp.int32)
    lengths = jnp.array([8, 5], dtype=jnp.int32)          # must be >= 1

    dec_out, attns, dec_state = nmt_forward(params, src, tgt, lengths)
    jax.block_until_ready((dec_out, attns["std"], dec_state))

    assert dec_out.shape == (tgt_len - 1, batch, hidden)
    assert attns["std"].shape == (tgt_len - 1, batch, src_len)
    assert dec_state.shape == (batch, hidden)
    assert bool(jnp.all(jnp.isfinite(dec_out)))
    assert bool(jnp.all(jnp.isfinite(attns["std"])))

    # Loose check vs. a pure-JAX f32 reference (bf16 embeddings + approx softmax
    # reciprocal in the kernel give a small, bounded deviation).
    ref_out, ref_attn, ref_state = _reference_forward(params, src, tgt, lengths)
    assert float(jnp.max(jnp.abs(dec_out - ref_out))) < 3e-2
    assert float(jnp.max(jnp.abs(attns["std"] - ref_attn))) < 3e-2
    assert float(jnp.max(jnp.abs(dec_state - ref_state))) < 3e-2
    assert float(jnp.max(jnp.abs(jnp.sum(attns["std"], axis=-1) - 1.0))) < 1e-2
    print("KERNEL_OK")
</pallas_src>

<mosaic_0001>
module attributes {stable_mosaic.version = 11 : i64} {
  func.func @_nmt_kernel(%arg0: i32, %arg1: memref<8x8x16xbf16, #tpu.memory_space<vmem>>, %arg2: memref<7x8x16xbf16, #tpu.memory_space<vmem>>, %arg3: memref<8x8xf32, #tpu.memory_space<vmem>>, %arg4: memref<16x32xbf16, #tpu.memory_space<vmem>>, %arg5: memref<1x32xf32, #tpu.memory_space<vmem>>, %arg6: memref<32x32xf32, #tpu.memory_space<vmem>>, %arg7: memref<16x32xbf16, #tpu.memory_space<vmem>>, %arg8: memref<1x32xf32, #tpu.memory_space<vmem>>, %arg9: memref<32x32xf32, #tpu.memory_space<vmem>>, %arg10: memref<64x32xf32, #tpu.memory_space<vmem>>, %arg11: memref<7x8x32xf32, #tpu.memory_space<vmem>>, %arg12: memref<7x8x8xf32, #tpu.memory_space<vmem>>, %arg13: memref<8x32xf32, #tpu.memory_space<vmem>>, %arg14: memref<8x8x32xf32, #tpu.memory_space<vmem>>, %arg15: memref<7x8x32xf32, #tpu.memory_space<vmem>>) attributes {dimension_semantics = [#tpu.dimension_semantics<parallel>], iteration_bounds = array<i64: 1>, scalar_prefetch = 0 : i64, scratch_operands = 2 : i64, tpu.core_type = #tpu.core_type<tc>, window_params = [{transform_indices = @transform_0, window_bounds = array<i64: 8, 8, 16>}, {transform_indices = @transform_1, window_bounds = array<i64: 7, 8, 16>}, {transform_indices = @transform_2, window_bounds = array<i64: 8, 8>}, {pipeline_mode = #tpu.pipeline_mode<synchronous>, transform_indices = @transform_3, window_bounds = array<i64: 16, 32>}, {pipeline_mode = #tpu.pipeline_mode<synchronous>, transform_indices = @transform_4, window_bounds = array<i64: 1, 32>}, {pipeline_mode = #tpu.pipeline_mode<synchronous>, transform_indices = @transform_5, window_bounds = array<i64: 32, 32>}, {pipeline_mode = #tpu.pipeline_mode<synchronous>, transform_indices = @transform_6, window_bounds = array<i64: 16, 32>}, {pipeline_mode = #tpu.pipeline_mode<synchronous>, transform_indices = @transform_7, window_bounds = array<i64: 1, 32>}, {pipeline_mode = #tpu.pipeline_mode<synchronous>, transform_indices = @transform_8, window_bounds = array<i64: 32, 32>}, {pipeline_mode = #tpu.pipeline_mode<synchronous>, transform_indices = @transform_9, window_bounds = array<i64: 64, 32>}, {transform_indices = @transform_10, window_bounds = array<i64: 7, 8, 32>}, {transform_indices = @transform_11, window_bounds = array<i64: 7, 8, 8>}, {transform_indices = @transform_12, window_bounds = array<i64: 8, 32>}]} {
    %c0 = arith.constant 0 : index
    %c0_0 = arith.constant 0 : index
    %c0_1 = arith.constant 0 : index
    %0 = vector.load %arg1[%c0, %c0_0, %c0_1] : memref<8x8x16xbf16, #tpu.memory_space<vmem>>, vector<8x8x16xbf16>
    %1 = vector.shape_cast %0 : vector<8x8x16xbf16> to vector<64x16xbf16>
    %c0_2 = arith.constant 0 : index
    %c0_3 = arith.constant 0 : index
    %2 = vector.load %arg4[%c0_2, %c0_3] : memref<16x32xbf16, #tpu.memory_space<vmem>>, vector<16x32xbf16>
    %cst = arith.constant dense<0.000000e+00> : vector<64x32xf32>
    %3 = tpu.matmul %1, %2, %cst {dimension_numbers = #tpu.dot_dimension_numbers<[1], [0], [0], [1], [0, 0, 1, 1], [], []>} : vector<64x16xbf16>, vector<16x32xbf16>, vector<64x32xf32> -> vector<64x32xf32>
    %c0_4 = arith.constant 0 : index
    %c0_5 = arith.constant 0 : index
    %4 = vector.load %arg5[%c0_4, %c0_5] : memref<1x32xf32, #tpu.memory_space<vmem>>, vector<1x32xf32>
    %5 = vector.broadcast %4 : vector<1x32xf32> to vector<64x32xf32>
    %6 = arith.addf %3, %5 : vector<64x32xf32>
    %7 = vector.shape_cast %6 : vector<64x32xf32> to vector<8x8x32xf32>
    %c0_6 = arith.constant 0 : index
    %c0_7 = arith.constant 0 : index
    %c0_8 = arith.constant 0 : index
    %8 = vector.load %arg14[%c0_6, %c0_7, %c0_8] : memref<8x8x32xf32, #tpu.memory_space<vmem>>, vector<8x8x32xf32>
    tpu.vector_store %arg14[%c0_6, %c0_7, %c0_8], %7 {strides = array<i32>} : memref<8x8x32xf32, #tpu.memory_space<vmem>>, vector<8x8x32xf32>,
    %c0_9 = arith.constant 0 : index
    %c0_10 = arith.constant 0 : index
    %c0_11 = arith.constant 0 : index
    %9 = vector.load %arg2[%c0_9, %c0_10, %c0_11] : memref<7x8x16xbf16, #tpu.memory_space<vmem>>, vector<7x8x16xbf16>
    %10 = vector.shape_cast %9 : vector<7x8x16xbf16> to vector<56x16xbf16>
    %c0_12 = arith.constant 0 : index
    %c0_13 = arith.constant 0 : index
    %11 = vector.load %arg7[%c0_12, %c0_13] : memref<16x32xbf16, #tpu.memory_space<vmem>>, vector<16x32xbf16>
    %cst_14 = arith.constant dense<0.000000e+00> : vector<56x32xf32>
    %12 = tpu.matmul %10, %11, %cst_14 {dimension_numbers = #tpu.dot_dimension_numbers<[1], [0], [0], [1], [0, 0, 1, 1], [], []>} : vector<56x16xbf16>, vector<16x32xbf16>, vector<56x32xf32> -> vector<56x32xf32>
    %c0_15 = arith.constant 0 : index
    %c0_16 = arith.constant 0 : index
    %13 = vector.load %arg8[%c0_15, %c0_16] : memref<1x32xf32, #tpu.memory_space<vmem>>, vector<1x32xf32>
    %14 = vector.broadcast %13 : vector<1x32xf32> to vector<56x32xf32>
    %15 = arith.addf %12, %14 : vector<56x32xf32>
    %16 = vector.shape_cast %15 : vector<56x32xf32> to vector<7x8x32xf32>
    %c0_17 = arith.constant 0 : index
    %c0_18 = arith.constant 0 : index
    %c0_19 = arith.constant 0 : index
    %17 = vector.load %arg15[%c0_17, %c0_18, %c0_19] : memref<7x8x32xf32, #tpu.memory_space<vmem>>, vector<7x8x32xf32>
    tpu.vector_store %arg15[%c0_17, %c0_18, %c0_19], %16 {strides = array<i32>} : memref<7x8x32xf32, #tpu.memory_space<vmem>>, vector<7x8x32xf32>,
    %c0_20 = arith.constant 0 : index
    %c0_21 = arith.constant 0 : index
    %18 = vector.load %arg6[%c0_20, %c0_21] : memref<32x32xf32, #tpu.memory_space<vmem>>, vector<32x32xf32>
    %c0_22 = arith.constant 0 : index
    %c0_23 = arith.constant 0 : index
    %19 = vector.load %arg9[%c0_22, %c0_23] : memref<32x32xf32, #tpu.memory_space<vmem>>, vector<32x32xf32>
    %cst_24 = arith.constant 0.000000e+00 : f32
    %20 = vector.broadcast %cst_24 : f32 to vector<8x32xf32>
    %c0_25 = arith.constant 0 : index
    %c0_26 = arith.constant 0 : index
    %c0_27 = arith.constant 0 : index
    %21 = vector.load %arg14[%c0_25, %c0_26, %c0_27] : memref<8x8x32xf32, #tpu.memory_space<vmem>>, vector<1x8x32xf32>
    %22 = vector.shape_cast %21 : vector<1x8x32xf32> to vector<8x32xf32>
    %cst_28 = arith.constant dense<0.000000e+00> : vector<8x32xf32>
    %23 = tpu.matmul %20, %18, %cst_28 {dimension_numbers = #tpu.dot_dimension_numbers<[1], [0], [0], [1], [0, 0, 1, 1], [], []>} : vector<8x32xf32>, vector<32x32xf32>, vector<8x32xf32> -> vector<8x32xf32>
    %24 = arith.addf %22, %23 : vector<8x32xf32>
    %25 = math.tanh %24 : vector<8x32xf32>
    %c0_29 = arith.constant 0 : index
    %c0_30 = arith.constant 0 : index
    %c0_31 = arith.constant 0 : index
    %26 = vector.load %arg14[%c0_29, %c0_30, %c0_31] : memref<8x8x32xf32, #tpu.memory_space<vmem>>, vector<1x8x32xf32>
    %27 = vector.shape_cast %26 : vector<1x8x32xf32> to vector<8x32xf32>
    %28 = vector.shape_cast %25 : vector<8x32xf32> to vector<1x8x32xf32>
    tpu.vector_store %arg14[%c0_29, %c0_30, %c0_31], %28 {strides = array<i32>} : memref<8x8x32xf32, #tpu.memory_space<vmem>>, vector<1x8x32xf32>,
    %c1 = arith.constant 1 : index
    %c0_32 = arith.constant 0 : index
    %c0_33 = arith.constant 0 : index
    %29 = vector.load %arg14[%c1, %c0_32, %c0_33] : memref<8x8x32xf32, #tpu.memory_space<vmem>>, vector<1x8x32xf32>
    %30 = vector.shape_cast %29 : vector<1x8x32xf32> to vector<8x32xf32>
    %cst_34 = arith.constant dense<0.000000e+00> : vector<8x32xf32>
    %31 = tpu.matmul %25, %18, %cst_34 {dimension_numbers = #tpu.dot_dimension_numbers<[1], [0], [0], [1], [0, 0, 1, 1], [], []>} : vector<8x32xf32>, vector<32x32xf32>, vector<8x32xf32> -> vector<8x32xf32>
    %32 = arith.addf %30, %31 : vector<8x32xf32>
    %33 = math.tanh %32 : vector<8x32xf32>
    %c1_35 = arith.constant 1 : index
    %c0_36 = arith.constant 0 : index
    %c0_37 = arith.constant 0 : index
    %34 = vector.load %arg14[%c1_35, %c0_36, %c0_37] : memref<8x8x32xf32, #tpu.memory_space<vmem>>, vector<1x8x32xf32>
    %35 = vector.shape_cast %34 : vector<1x8x32xf32> to vector<8x32xf32>
    %36 = vector.shape_cast %33 : vector<8x32xf32> to vector<1x8x32xf32>
    tpu.vector_store %arg14[%c1_35, %c0_36, %c0_37], %36 {strides = array<i32>} : memref<8x8x32xf32, #tpu.memory_space<vmem>>, vector<1x8x32xf32>,
    %c2 = arith.constant 2 : index
    %c0_38 = arith.constant 0 : index
    %c0_39 = arith.constant 0 : index
    %37 = vector.load %arg14[%c2, %c0_38, %c0_39] : memref<8x8x32xf32, #tpu.memory_space<vmem>>, vector<1x8x32xf32>
    %38 = vector.shape_cast %37 : vector<1x8x32xf32> to vector<8x32xf32>
    %cst_40 = arith.constant dense<0.000000e+00> : vector<8x32xf32>
    %39 = tpu.matmul %33, %18, %cst_40 {dimension_numbers = #tpu.dot_dimension_numbers<[1], [0], [0], [1], [0, 0, 1, 1], [], []>} : vector<8x32xf32>, vector<32x32xf32>, vector<8x32xf32> -> vector<8x32xf32>
    %40 = arith.addf %38, %39 : vector<8x32xf32>
    %41 = math.tanh %40 : vector<8x32xf32>
    %c2_41 = arith.constant 2 : index
    %c0_42 = arith.constant 0 : index
    %c0_43 = arith.constant 0 : index
    %42 = vector.load %arg14[%c2_41, %c0_42, %c0_43] : memref<8x8x32xf32, #tpu.memory_space<vmem>>, vector<1x8x32xf32>
    %43 = vector.shape_cast %42 : vector<1x8x32xf32> to vector<8x32xf32>
    %44 = vector.shape_cast %41 : vector<8x32xf32> to vector<1x8x32xf32>
    tpu.vector_store %arg14[%c2_41, %c0_42, %c0_43], %44 {strides = array<i32>} : memref<8x8x32xf32, #tpu.memory_space<vmem>>, vector<1x8x32xf32>,
    %c3 = arith.constant 3 : index
    %c0_44 = arith.constant 0 : index
    %c0_45 = arith.constant 0 : index
    %45 = vector.load %arg14[%c3, %c0_44, %c0_45] : memref<8x8x32xf32, #tpu.memory_space<vmem>>, vector<1x8x32xf32>
    %46 = vector.shape_cast %45 : vector<1x8x32xf32> to vector<8x32xf32>
    %cst_46 = arith.constant dense<0.000000e+00> : vector<8x32xf32>
    %47 = tpu.matmul %41, %18, %cst_46 {dimension_numbers = #tpu.dot_dimension_numbers<[1], [0], [0], [1], [0, 0, 1, 1], [], []>} : vector<8x32xf32>, vector<32x32xf32>, vector<8x32xf32> -> vector<8x32xf32>
    %48 = arith.addf %46, %47 : vector<8x32xf32>
    %49 = math.tanh %48 : vector<8x32xf32>
    %c3_47 = arith.constant 3 : index
    %c0_48 = arith.constant 0 : index
    %c0_49 = arith.constant 0 : index
    %50 = vector.load %arg14[%c3_47, %c0_48, %c0_49] : memref<8x8x32xf32, #tpu.memory_space<vmem>>, vector<1x8x32xf32>
    %51 = vector.shape_cast %50 : vector<1x8x32xf32> to vector<8x32xf32>
    %52 = vector.shape_cast %49 : vector<8x32xf32> to vector<1x8x32xf32>
    tpu.vector_store %arg14[%c3_47, %c0_48, %c0_49], %52 {strides = array<i32>} : memref<8x8x32xf32, #tpu.memory_space<vmem>>, vector<1x8x32xf32>,
    %c4 = arith.constant 4 : index
    %c0_50 = arith.constant 0 : index
    %c0_51 = arith.constant 0 : index
    %53 = vector.load %arg14[%c4, %c0_50, %c0_51] : memref<8x8x32xf32, #tpu.memory_space<vmem>>, vector<1x8x32xf32>
    %54 = vector.shape_cast %53 : vector<1x8x32xf32> to vector<8x32xf32>
    %cst_52 = arith.constant dense<0.000000e+00> : vector<8x32xf32>
    %55 = tpu.matmul %49, %18, %cst_52 {dimension_numbers = #tpu.dot_dimension_numbers<[1], [0], [0], [1], [0, 0, 1, 1], [], []>} : vector<8x32xf32>, vector<32x32xf32>, vector<8x32xf32> -> vector<8x32xf32>
    %56 = arith.addf %54, %55 : vector<8x32xf32>
    %57 = math.tanh %56 : vector<8x32xf32>
    %c4_53 = arith.constant 4 : index
    %c0_54 = arith.constant 0 : index
    %c0_55 = arith.constant 0 : index
    %58 = vector.load %arg14[%c4_53, %c0_54, %c0_55] : memref<8x8x32xf32, #tpu.memory_space<vmem>>, vector<1x8x32xf32>
    %59 = vector.shape_cast %58 : vector<1x8x32xf32> to vector<8x32xf32>
    %60 = vector.shape_cast %57 : vector<8x32xf32> to vector<1x8x32xf32>
    tpu.vector_store %arg14[%c4_53, %c0_54, %c0_55], %60 {strides = array<i32>} : memref<8x8x32xf32, #tpu.memory_space<vmem>>, vector<1x8x32xf32>,
    %c5 = arith.constant 5 : index
    %c0_56 = arith.constant 0 : index
    %c0_57 = arith.constant 0 : index
    %61 = vector.load %arg14[%c5, %c0_56, %c0_57] : memref<8x8x32xf32, #tpu.memory_space<vmem>>, vector<1x8x32xf32>
    %62 = vector.shape_cast %61 : vector<1x8x32xf32> to vector<8x32xf32>
    %cst_58 = arith.constant dense<0.000000e+00> : vector<8x32xf32>
    %63 = tpu.matmul %57, %18, %cst_58 {dimension_numbers = #tpu.dot_dimension_numbers<[1], [0], [0], [1], [0, 0, 1, 1], [], []>} : vector<8x32xf32>, vector<32x32xf32>, vector<8x32xf32> -> vector<8x32xf32>
    %64 = arith.addf %62, %63 : vector<8x32xf32>
    %65 = math.tanh %64 : vector<8x32xf32>
    %c5_59 = arith.constant 5 : index
    %c0_60 = arith.constant 0 : index
    %c0_61 = arith.constant 0 : index
    %66 = vector.load %arg14[%c5_59, %c0_60, %c0_61] : memref<8x8x32xf32, #tpu.memory_space<vmem>>, vector<1x8x32xf32>
    %67 = vector.shape_cast %66 : vector<1x8x32xf32> to vector<8x32xf32>
    %68 = vector.shape_cast %65 : vector<8x32xf32> to vector<1x8x32xf32>
    tpu.vector_store %arg14[%c5_59, %c0_60, %c0_61], %68 {strides = array<i32>} : memref<8x8x32xf32, #tpu.memory_space<vmem>>, vector<1x8x32xf32>,
    %c6 = arith.constant 6 : index
    %c0_62 = arith.constant 0 : index
    %c0_63 = arith.constant 0 : index
    %69 = vector.load %arg14[%c6, %c0_62, %c0_63] : memref<8x8x32xf32, #tpu.memory_space<vmem>>, vector<1x8x32xf32>
    %70 = vector.shape_cast %69 : vector<1x8x32xf32> to vector<8x32xf32>
    %cst_64 = arith.constant dense<0.000000e+00> : vector<8x32xf32>
    %71 = tpu.matmul %65, %18, %cst_64 {dimension_numbers = #tpu.dot_dimension_numbers<[1], [0], [0], [1], [0, 0, 1, 1], [], []>} : vector<8x32xf32>, vector<32x32xf32>, vector<8x32xf32> -> vector<8x32xf32>
    %72 = arith.addf %70, %71 : vector<8x32xf32>
    %73 = math.tanh %72 : vector<8x32xf32>
    %c6_65 = arith.constant 6 : index
    %c0_66 = arith.constant 0 : index
    %c0_67 = arith.constant 0 : index
    %74 = vector.load %arg14[%c6_65, %c0_66, %c0_67] : memref<8x8x32xf32, #tpu.memory_space<vmem>>, vector<1x8x32xf32>
    %75 = vector.shape_cast %74 : vector<1x8x32xf32> to vector<8x32xf32>
    %76 = vector.shape_cast %73 : vector<8x32xf32> to vector<1x8x32xf32>
    tpu.vector_store %arg14[%c6_65, %c0_66, %c0_67], %76 {strides = array<i32>} : memref<8x8x32xf32, #tpu.memory_space<vmem>>, vector<1x8x32xf32>,
    %c7 = arith.constant 7 : index
    %c0_68 = arith.constant 0 : index
    %c0_69 = arith.constant 0 : index
    %77 = vector.load %arg14[%c7, %c0_68, %c0_69] : memref<8x8x32xf32, #tpu.memory_space<vmem>>, vector<1x8x32xf32>
    %78 = vector.shape_cast %77 : vector<1x8x32xf32> to vector<8x32xf32>
    %cst_70 = arith.constant dense<0.000000e+00> : vector<8x32xf32>
    %79 = tpu.matmul %73, %18, %cst_70 {dimension_numbers = #tpu.dot_dimension_numbers<[1], [0], [0], [1], [0, 0, 1, 1], [], []>} : vector<8x32xf32>, vector<32x32xf32>, vector<8x32xf32> -> vector<8x32xf32>
    %80 = arith.addf %78, %79 : vector<8x32xf32>
    %81 = math.tanh %80 : vector<8x32xf32>
    %c7_71 = arith.constant 7 : index
    %c0_72 = arith.constant 0 : index
    %c0_73 = arith.constant 0 : index
    %82 = vector.load %arg14[%c7_71, %c0_72, %c0_73] : memref<8x8x32xf32, #tpu.memory_space<vmem>>, vector<1x8x32xf32>
    %83 = vector.shape_cast %82 : vector<1x8x32xf32> to vector<8x32xf32>
    %84 = vector.shape_cast %81 : vector<8x32xf32> to vector<1x8x32xf32>
    tpu.vector_store %arg14[%c7_71, %c0_72, %c0_73], %84 {strides = array<i32>} : memref<8x8x32xf32, #tpu.memory_space<vmem>>, vector<1x8x32xf32>,
    %c0_74 = arith.constant 0 : index
    %c0_75 = arith.constant 0 : index
    %c0_76 = arith.constant 0 : index
    %85 = vector.load %arg15[%c0_74, %c0_75, %c0_76] : memref<7x8x32xf32, #tpu.memory_space<vmem>>, vector<1x8x32xf32>
    %86 = vector.shape_cast %85 : vector<1x8x32xf32> to vector<8x32xf32>
    %cst_77 = arith.constant dense<0.000000e+00> : vector<8x32xf32>
    %87 = tpu.matmul %81, %19, %cst_77 {dimension_numbers = #tpu.dot_dimension_numbers<[1], [0], [0], [1], [0, 0, 1, 1], [], []>} : vector<8x32xf32>, vector<32x32xf32>, vector<8x32xf32> -> vector<8x32xf32>
    %88 = arith.addf %86, %87 : vector<8x32xf32>
    %89 = math.tanh %88 : vector<8x32xf32>
    %c0_78 = arith.constant 0 : index
    %c0_79 = arith.constant 0 : index
    %c0_80 = arith.constant 0 : index
    %90 = vector.load %arg15[%c0_78, %c0_79, %c0_80] : memref<7x8x32xf32, #tpu.memory_space<vmem>>, vector<1x8x32xf32>
    %91 = vector.shape_cast %90 : vector<1x8x32xf32> to vector<8x32xf32>
    %92 = vector.shape_cast %89 : vector<8x32xf32> to vector<1x8x32xf32>
    tpu.vector_store %arg15[%c0_78, %c0_79, %c0_80], %92 {strides = array<i32>} : memref<7x8x32xf32, #tpu.memory_space<vmem>>, vector<1x8x32xf32>,
    %c1_81 = arith.constant 1 : index
    %c0_82 = arith.constant 0 : index
    %c0_83 = arith.constant 0 : index
    %93 = vector.load %arg15[%c1_81, %c0_82, %c0_83] : memref<7x8x32xf32, #tpu.memory_space<vmem>>, vector<1x8x32xf32>
    %94 = vector.shape_cast %93 : vector<1x8x32xf32> to vector<8x32xf32>
    %cst_84 = arith.constant dense<0.000000e+00> : vector<8x32xf32>
    %95 = tpu.matmul %89, %19, %cst_84 {dimension_numbers = #tpu.dot_dimension_numbers<[1], [0], [0], [1], [0, 0, 1, 1], [], []>} : vector<8x32xf32>, vector<32x32xf32>, vector<8x32xf32> -> vector<8x32xf32>
    %96 = arith.addf %94, %95 : vector<8x32xf32>
    %97 = math.tanh %96 : vector<8x32xf32>
    %c1_85 = arith.constant 1 : index
    %c0_86 = arith.constant 0 : index
    %c0_87 = arith.constant 0 : index
    %98 = vector.load %arg15[%c1_85, %c0_86, %c0_87] : memref<7x8x32xf32, #tpu.memory_space<vmem>>, vector<1x8x32xf32>
    %99 = vector.shape_cast %98 : vector<1x8x32xf32> to vector<8x32xf32>
    %100 = vector.shape_cast %97 : vector<8x32xf32> to vector<1x8x32xf32>
    tpu.vector_store %arg15[%c1_85, %c0_86, %c0_87], %100 {strides = array<i32>} : memref<7x8x32xf32, #tpu.memory_space<vmem>>, vector<1x8x32xf32>,
    %c2_88 = arith.constant 2 : index
    %c0_89 = arith.constant 0 : index
    %c0_90 = arith.constant 0 : index
    %101 = vector.load %arg15[%c2_88, %c0_89, %c0_90] : memref<7x8x32xf32, #tpu.memory_space<vmem>>, vector<1x8x32xf32>
    %102 = vector.shape_cast %101 : vector<1x8x32xf32> to vector<8x32xf32>
    %cst_91 = arith.constant dense<0.000000e+00> : vector<8x32xf32>
    %103 = tpu.matmul %97, %19, %cst_91 {dimension_numbers = #tpu.dot_dimension_numbers<[1], [0], [0], [1], [0, 0, 1, 1], [], []>} : vector<8x32xf32>, vector<32x32xf32>, vector<8x32xf32> -> vector<8x32xf32>
    %104 = arith.addf %102, %103 : vector<8x32xf32>
    %105 = math.tanh %104 : vector<8x32xf32>
    %c2_92 = arith.constant 2 : index
    %c0_93 = arith.constant 0 : index
    %c0_94 = arith.constant 0 : index
    %106 = vector.load %arg15[%c2_92, %c0_93, %c0_94] : memref<7x8x32xf32, #tpu.memory_space<vmem>>, vector<1x8x32xf32>
    %107 = vector.shape_cast %106 : vector<1x8x32xf32> to vector<8x32xf32>
    %108 = vector.shape_cast %105 : vector<8x32xf32> to vector<1x8x32xf32>
    tpu.vector_store %arg15[%c2_92, %c0_93, %c0_94], %108 {strides = array<i32>} : memref<7x8x32xf32, #tpu.memory_space<vmem>>, vector<1x8x32xf32>,
    %c3_95 = arith.constant 3 : index
    %c0_96 = arith.constant 0 : index
    %c0_97 = arith.constant 0 : index
    %109 = vector.load %arg15[%c3_95, %c0_96, %c0_97] : memref<7x8x32xf32, #tpu.memory_space<vmem>>, vector<1x8x32xf32>
    %110 = vector.shape_cast %109 : vector<1x8x32xf32> to vector<8x32xf32>
    %cst_98 = arith.constant dense<0.000000e+00> : vector<8x32xf32>
    %111 = tpu.matmul %105, %19, %cst_98 {dimension_numbers = #tpu.dot_dimension_numbers<[1], [0], [0], [1], [0, 0, 1, 1], [], []>} : vector<8x32xf32>, vector<32x32xf32>, vector<8x32xf32> -> vector<8x32xf32>
    %112 = arith.addf %110, %111 : vector<8x32xf32>
    %113 = math.tanh %112 : vector<8x32xf32>
    %c3_99 = arith.constant 3 : index
    %c0_100 = arith.constant 0 : index
    %c0_101 = arith.constant 0 : index
    %114 = vector.load %arg15[%c3_99, %c0_100, %c0_101] : memref<7x8x32xf32, #tpu.memory_space<vmem>>, vector<1x8x32xf32>
    %115 = vector.shape_cast %114 : vector<1x8x32xf32> to vector<8x32xf32>
    %116 = vector.shape_cast %113 : vector<8x32xf32> to vector<1x8x32xf32>
    tpu.vector_store %arg15[%c3_99, %c0_100, %c0_101], %116 {strides = array<i32>} : memref<7x8x32xf32, #tpu.memory_space<vmem>>, vector<1x8x32xf32>,
    %c4_102 = arith.constant 4 : index
    %c0_103 = arith.constant 0 : index
    %c0_104 = arith.constant 0 : index
    %117 = vector.load %arg15[%c4_102, %c0_103, %c0_104] : memref<7x8x32xf32, #tpu.memory_space<vmem>>, vector<1x8x32xf32>
    %118 = vector.shape_cast %117 : vector<1x8x32xf32> to vector<8x32xf32>
    %cst_105 = arith.constant dense<0.000000e+00> : vector<8x32xf32>
    %119 = tpu.matmul %113, %19, %cst_105 {dimension_numbers = #tpu.dot_dimension_numbers<[1], [0], [0], [1], [0, 0, 1, 1], [], []>} : vector<8x32xf32>, vector<32x32xf32>, vector<8x32xf32> -> vector<8x32xf32>
    %120 = arith.addf %118, %119 : vector<8x32xf32>
    %121 = math.tanh %120 : vector<8x32xf32>
    %c4_106 = arith.constant 4 : index
    %c0_107 = arith.constant 0 : index
    %c0_108 = arith.constant 0 : index
    %122 = vector.load %arg15[%c4_106, %c0_107, %c0_108] : memref<7x8x32xf32, #tpu.memory_space<vmem>>, vector<1x8x32xf32>
    %123 = vector.shape_cast %122 : vector<1x8x32xf32> to vector<8x32xf32>
    %124 = vector.shape_cast %121 : vector<8x32xf32> to vector<1x8x32xf32>
    tpu.vector_store %arg15[%c4_106, %c0_107, %c0_108], %124 {strides = array<i32>} : memref<7x8x32xf32, #tpu.memory_space<vmem>>, vector<1x8x32xf32>,
    %c5_109 = arith.constant 5 : index
    %c0_110 = arith.constant 0 : index
    %c0_111 = arith.constant 0 : index
    %125 = vector.load %arg15[%c5_109, %c0_110, %c0_111] : memref<7x8x32xf32, #tpu.memory_space<vmem>>, vector<1x8x32xf32>
    %126 = vector.shape_cast %125 : vector<1x8x32xf32> to vector<8x32xf32>
    %cst_112 = arith.constant dense<0.000000e+00> : vector<8x32xf32>
    %127 = tpu.matmul %121, %19, %cst_112 {dimension_numbers = #tpu.dot_dimension_numbers<[1], [0], [0], [1], [0, 0, 1, 1], [], []>} : vector<8x32xf32>, vector<32x32xf32>, vector<8x32xf32> -> vector<8x32xf32>
    %128 = arith.addf %126, %127 : vector<8x32xf32>
    %129 = math.tanh %128 : vector<8x32xf32>
    %c5_113 = arith.constant 5 : index
    %c0_114 = arith.constant 0 : index
    %c0_115 = arith.constant 0 : index
    %130 = vector.load %arg15[%c5_113, %c0_114, %c0_115] : memref<7x8x32xf32, #tpu.memory_space<vmem>>, vector<1x8x32xf32>
    %131 = vector.shape_cast %130 : vector<1x8x32xf32> to vector<8x32xf32>
    %132 = vector.shape_cast %129 : vector<8x32xf32> to vector<1x8x32xf32>
    tpu.vector_store %arg15[%c5_113, %c0_114, %c0_115], %132 {strides = array<i32>} : memref<7x8x32xf32, #tpu.memory_space<vmem>>, vector<1x8x32xf32>,
    %c6_116 = arith.constant 6 : index
    %c0_117 = arith.constant 0 : index
    %c0_118 = arith.constant 0 : index
    %133 = vector.load %arg15[%c6_116, %c0_117, %c0_118] : memref<7x8x32xf32, #tpu.memory_space<vmem>>, vector<1x8x32xf32>
    %134 = vector.shape_cast %133 : vector<1x8x32xf32> to vector<8x32xf32>
    %cst_119 = arith.constant dense<0.000000e+00> : vector<8x32xf32>
    %135 = tpu.matmul %129, %19, %cst_119 {dimension_numbers = #tpu.dot_dimension_numbers<[1], [0], [0], [1], [0, 0, 1, 1], [], []>} : vector<8x32xf32>, vector<32x32xf32>, vector<8x32xf32> -> vector<8x32xf32>
    %136 = arith.addf %134, %135 : vector<8x32xf32>
    %137 = math.tanh %136 : vector<8x32xf32>
    %c6_120 = arith.constant 6 : index
    %c0_121 = arith.constant 0 : index
    %c0_122 = arith.constant 0 : index
    %138 = vector.load %arg15[%c6_120, %c0_121, %c0_122] : memref<7x8x32xf32, #tpu.memory_space<vmem>>, vector<1x8x32xf32>
    %139 = vector.shape_cast %138 : vector<1x8x32xf32> to vector<8x32xf32>
    %140 = vector.shape_cast %137 : vector<8x32xf32> to vector<1x8x32xf32>
    tpu.vector_store %arg15[%c6_120, %c0_121, %c0_122], %140 {strides = array<i32>} : memref<7x8x32xf32, #tpu.memory_space<vmem>>, vector<1x8x32xf32>,
    %c0_123 = arith.constant 0 : index
    %c0_124 = arith.constant 0 : index
    %141 = vector.load %arg13[%c0_123, %c0_124] : memref<8x32xf32, #tpu.memory_space<vmem>>, vector<8x32xf32>
    tpu.vector_store %arg13[%c0_123, %c0_124], %137 {strides = array<i32>} : memref<8x32xf32, #tpu.memory_space<vmem>>, vector<8x32xf32>,
    %c0_125 = arith.constant 0 : index
    %c0_126 = arith.constant 0 : index
    %c0_127 = arith.constant 0 : index
    %142 = vector.load %arg14[%c0_125, %c0_126, %c0_127] : memref<8x8x32xf32, #tpu.memory_space<vmem>>, vector<8x8x32xf32>
    %143 = tpu.transpose %142, [1, 0, 2] : vector<8x8x32xf32> -> vector<8x8x32xf32>
    %c0_128 = arith.constant 0 : index
    %c0_129 = arith.constant 0 : index
    %c0_130 = arith.constant 0 : index
    %144 = vector.load %arg15[%c0_128, %c0_129, %c0_130] : memref<7x8x32xf32, #tpu.memory_space<vmem>>, vector<7x8x32xf32>
    %145 = tpu.transpose %144, [1, 0, 2] : vector<7x8x32xf32> -> vector<8x7x32xf32>
    "tpu.trace_start"() <{level = 10 : i32, message = "bth,bsh->bts"}> : () -> ()
    %cst_131 = arith.constant dense<0.000000e+00> : vector<8x7x8xf32>
    %146 = tpu.matmul %145, %143, %cst_131 {dimension_numbers = #tpu.dot_dimension_numbers<[2], [2], [1], [1], [0, 0, 0, 1, 1, 1], [0], [0]>} : vector<8x7x32xf32>, vector<8x8x32xf32>, vector<8x7x8xf32> -> vector<8x7x8xf32>
    "tpu.trace_stop"() : () -> ()
    %c0_132 = arith.constant 0 : index
    %c0_133 = arith.constant 0 : index
    %147 = vector.load %arg3[%c0_132, %c0_133] : memref<8x8xf32, #tpu.memory_space<vmem>>, vector<8x8xf32>
    %148 = vector.shape_cast %147 : vector<8x8xf32> to vector<8x1x8xf32>
    %149 = vector.broadcast %148 : vector<8x1x8xf32> to vector<8x7x8xf32>
    %150 = arith.addf %146, %149 : vector<8x7x8xf32>
    %cst_134 = arith.constant dense<0xFF800000> : vector<8x7xf32>
    %151 = vector.multi_reduction <maximumf>, %150, %cst_134 [2] : vector<8x7x8xf32> to vector<8x7xf32>
    %152 = vector.shape_cast %151 : vector<8x7xf32> to vector<8x7x1xf32>
    %153 = vector.broadcast %152 : vector<8x7x1xf32> to vector<8x7x8xf32>
    %154 = arith.subf %150, %153 : vector<8x7x8xf32>
    %155 = math.exp %154 : vector<8x7x8xf32>
    %cst_135 = arith.constant dense<0.000000e+00> : vector<8x7xf32>
    %156 = vector.multi_reduction <add>, %155, %cst_135 [2] : vector<8x7x8xf32> to vector<8x7xf32>
    %157 = vector.shape_cast %156 : vector<8x7xf32> to vector<8x7x1xf32>
    %158 = tpu.reciprocal %157 {approx = true} : vector<8x7x1xf32> -> vector<8x7x1xf32>
    %159 = vector.broadcast %158 : vector<8x7x1xf32> to vector<8x7x8xf32>
    %160 = arith.mulf %155, %159 : vector<8x7x8xf32>
    "tpu.trace_start"() <{level = 10 : i32, message = "bts,bsh->bth"}> : () -> ()
    %cst_136 = arith.constant dense<0.000000e+00> : vector<8x7x32xf32>
    %161 = tpu.matmul %160, %143, %cst_136 {dimension_numbers = #tpu.dot_dimension_numbers<[2], [1], [1], [2], [0, 0, 0, 1, 1, 2], [0], [0]>} : vector<8x7x8xf32>, vector<8x8x32xf32>, vector<8x7x32xf32> -> vector<8x7x32xf32>
    "tpu.trace_stop"() : () -> ()
    %162 = vector.shape_cast %161 : vector<8x7x32xf32> to vector<56x32xf32>
    %163 = vector.shape_cast %145 : vector<8x7x32xf32> to vector<56x32xf32>
    %164 = tpu.concatenate %162, %163 in 1 : vector<56x32xf32>, vector<56x32xf32> -> vector<56x64xf32>
    %c0_137 = arith.constant 0 : index
    %c0_138 = arith.constant 0 : index
    %165 = vector.load %arg10[%c0_137, %c0_138] : memref<64x32xf32, #tpu.memory_space<vmem>>, vector<64x32xf32>
    %cst_139 = arith.constant dense<0.000000e+00> : vector<56x32xf32>
    %166 = tpu.matmul %164, %165, %cst_139 {dimension_numbers = #tpu.dot_dimension_numbers<[1], [0], [0], [1], [0, 0, 1, 1], [], []>} : vector<56x64xf32>, vector<64x32xf32>, vector<56x32xf32> -> vector<56x32xf32>
    %167 = math.tanh %166 : vector<56x32xf32>
    %168 = vector.shape_cast %167 : vector<56x32xf32> to vector<8x7x32xf32>
    %169 = tpu.transpose %168, [1, 0, 2] : vector<8x7x32xf32> -> vector<7x8x32xf32>
    %c0_140 = arith.constant 0 : index
    %c0_141 = arith.constant 0 : index
    %c0_142 = arith.constant 0 : index
    %170 = vector.load %arg11[%c0_140, %c0_141, %c0_142] : memref<7x8x32xf32, #tpu.memory_space<vmem>>, vector<7x8x32xf32>
    tpu.vector_store %arg11[%c0_140, %c0_141, %c0_142], %169 {strides = array<i32>} : memref<7x8x32xf32, #tpu.memory_space<vmem>>, vector<7x8x32xf32>,
    %171 = tpu.transpose %160, [1, 0, 2] : vector<8x7x8xf32> -> vector<7x8x8xf32>
    %c0_143 = arith.constant 0 : index
    %c0_144 = arith.constant 0 : index
    %c0_145 = arith.constant 0 : index
    %172 = vector.load %arg12[%c0_143, %c0_144, %c0_145] : memref<7x8x8xf32, #tpu.memory_space<vmem>>, vector<7x8x8xf32>
    tpu.vector_store %arg12[%c0_143, %c0_144, %c0_145], %171 {strides = array<i32>} : memref<7x8x8xf32, #tpu.memory_space<vmem>>, vector<7x8x8xf32>,
    return
  }
  func.func @transform_0(%arg0: i32) -> (i32, i32, i32) {
    %c0_i32 = arith.constant 0 : i32
    %c0_i32_0 = arith.constant 0 : i32
    %c0_i32_1 = arith.constant 0 : i32
    return %c0_i32, %arg0, %c0_i32_0 : i32, i32, i32
  }
  func.func @transform_1(%arg0: i32) -> (i32, i32, i32) {
    %c0_i32 = arith.constant 0 : i32
    %c0_i32_0 = arith.constant 0 : i32
    %c0_i32_1 = arith.constant 0 : i32
    return %c0_i32, %arg0, %c0_i32_0 : i32, i32, i32
  }
  func.func @transform_2(%arg0: i32) -> (i32, i32) {
    %c0_i32 = arith.constant 0 : i32
    %c0_i32_0 = arith.constant 0 : i32
    return %arg0, %c0_i32 : i32, i32
  }
  func.func @transform_3(%arg0: i32) -> (i32, i32) {
    %c0_i32 = arith.constant 0 : i32
    %c0_i32_0 = arith.constant 0 : i32
    %c0_i32_1 = arith.constant 0 : i32
    return %c0_i32, %c0_i32_0 : i32, i32
  }
  func.func @transform_4(%arg0: i32) -> (i32, i32) {
    %c0_i32 = arith.constant 0 : i32
    %c0_i32_0 = arith.constant 0 : i32
    %c0_i32_1 = arith.constant 0 : i32
    return %c0_i32, %c0_i32_0 : i32, i32
  }
  func.func @transform_5(%arg0: i32) -> (i32, i32) {
    %c0_i32 = arith.constant 0 : i32
    %c0_i32_0 = arith.constant 0 : i32
    %c0_i32_1 = arith.constant 0 : i32
    return %c0_i32, %c0_i32_0 : i32, i32
  }
  func.func @transform_6(%arg0: i32) -> (i32, i32) {
    %c0_i32 = arith.constant 0 : i32
    %c0_i32_0 = arith.constant 0 : i32
    %c0_i32_1 = arith.constant 0 : i32
    return %c0_i32, %c0_i32_0 : i32, i32
  }
  func.func @transform_7(%arg0: i32) -> (i32, i32) {
    %c0_i32 = arith.constant 0 : i32
    %c0_i32_0 = arith.constant 0 : i32
    %c0_i32_1 = arith.constant 0 : i32
    return %c0_i32, %c0_i32_0 : i32, i32
  }
  func.func @transform_8(%arg0: i32) -> (i32, i32) {
    %c0_i32 = arith.constant 0 : i32
    %c0_i32_0 = arith.constant 0 : i32
    %c0_i32_1 = arith.constant 0 : i32
    return %c0_i32, %c0_i32_0 : i32, i32
  }
  func.func @transform_9(%arg0: i32) -> (i32, i32) {
    %c0_i32 = arith.constant 0 : i32
    %c0_i32_0 = arith.constant 0 : i32
    %c0_i32_1 = arith.constant 0 : i32
    return %c0_i32, %c0_i32_0 : i32, i32
  }
  func.func @transform_10(%arg0: i32) -> (i32, i32, i32) {
    %c0_i32 = arith.constant 0 : i32
    %c0_i32_0 = arith.constant 0 : i32
    %c0_i32_1 = arith.constant 0 : i32
    return %c0_i32, %arg0, %c0_i32_0 : i32, i32, i32
  }
  func.func @transform_11(%arg0: i32) -> (i32, i32, i32) {
    %c0_i32 = arith.constant 0 : i32
    %c0_i32_0 = arith.constant 0 : i32
    %c0_i32_1 = arith.constant 0 : i32
    return %c0_i32, %arg0, %c0_i32_0 : i32, i32, i32
  }
  func.func @transform_12(%arg0: i32) -> (i32, i32) {
    %c0_i32 = arith.constant 0 : i32
    %c0_i32_0 = arith.constant 0 : i32
    return %arg0, %c0_i32 : i32, i32
  }
}

module attributes {stable_mosaic.version = 11 : i64} {
  func.func @_nmt_kernel(%arg0: i32, %arg1: memref<8x8x16xbf16, #tpu.memory_space<vmem>>, %arg2: memref<7x8x16xbf16, #tpu.memory_space<vmem>>, %arg3: memref<8x8xf32, #tpu.memory_space<vmem>>, %arg4: memref<16x32xbf16, #tpu.memory_space<vmem>>, %arg5: memref<1x32xf32, #tpu.memory_space<vmem>>, %arg6: memref<32x32xf32, #tpu.memory_space<vmem>>, %arg7: memref<16x32xbf16, #tpu.memory_space<vmem>>, %arg8: memref<1x32xf32, #tpu.memory_space<vmem>>, %arg9: memref<32x32xf32, #tpu.memory_space<vmem>>, %arg10: memref<64x32xf32, #tpu.memory_space<vmem>>, %arg11: memref<7x8x32xf32, #tpu.memory_space<vmem>>, %arg12: memref<7x8x8xf32, #tpu.memory_space<vmem>>, %arg13: memref<8x32xf32, #tpu.memory_space<vmem>>, %arg14: memref<8x8x32xf32, #tpu.memory_space<vmem>>, %arg15: memref<7x8x32xf32, #tpu.memory_space<vmem>>) attributes {dimension_semantics = [#tpu.dimension_semantics<parallel>], iteration_bounds = array<i64: 1>, scalar_prefetch = 0 : i64, scratch_operands = 2 : i64, tpu.core_type = #tpu.core_type<tc>, window_params = [{transform_indices = @transform_0, window_bounds = array<i64: 8, 8, 16>}, {transform_indices = @transform_1, window_bounds = array<i64: 7, 8, 16>}, {transform_indices = @transform_2, window_bounds = array<i64: 8, 8>}, {pipeline_mode = #tpu.pipeline_mode<synchronous>, transform_indices = @transform_3, window_bounds = array<i64: 16, 32>}, {pipeline_mode = #tpu.pipeline_mode<synchronous>, transform_indices = @transform_4, window_bounds = array<i64: 1, 32>}, {pipeline_mode = #tpu.pipeline_mode<synchronous>, transform_indices = @transform_5, window_bounds = array<i64: 32, 32>}, {pipeline_mode = #tpu.pipeline_mode<synchronous>, transform_indices = @transform_6, window_bounds = array<i64: 16, 32>}, {pipeline_mode = #tpu.pipeline_mode<synchronous>, transform_indices = @transform_7, window_bounds = array<i64: 1, 32>}, {pipeline_mode = #tpu.pipeline_mode<synchronous>, transform_indices = @transform_8, window_bounds = array<i64: 32, 32>}, {pipeline_mode = #tpu.pipeline_mode<synchronous>, transform_indices = @transform_9, window_bounds = array<i64: 64, 32>}, {transform_indices = @transform_10, window_bounds = array<i64: 7, 8, 32>}, {transform_indices = @transform_11, window_bounds = array<i64: 7, 8, 8>}, {transform_indices = @transform_12, window_bounds = array<i64: 8, 32>}]} {
    %c0 = arith.constant 0 : index
    %c0_0 = arith.constant 0 : index
    %c0_1 = arith.constant 0 : index
    %0 = vector.load %arg1[%c0, %c0_0, %c0_1] : memref<8x8x16xbf16, #tpu.memory_space<vmem>>, vector<8x8x16xbf16>
    %1 = vector.shape_cast %0 : vector<8x8x16xbf16> to vector<64x16xbf16>
    %c0_2 = arith.constant 0 : index
    %c0_3 = arith.constant 0 : index
    %2 = vector.load %arg4[%c0_2, %c0_3] : memref<16x32xbf16, #tpu.memory_space<vmem>>, vector<16x32xbf16>
    %cst = arith.constant dense<0.000000e+00> : vector<64x32xf32>
    %3 = tpu.matmul %1, %2, %cst {dimension_numbers = #tpu.dot_dimension_numbers<[1], [0], [0], [1], [0, 0, 1, 1], [], []>} : vector<64x16xbf16>, vector<16x32xbf16>, vector<64x32xf32> -> vector<64x32xf32>
    %c0_4 = arith.constant 0 : index
    %c0_5 = arith.constant 0 : index
    %4 = vector.load %arg5[%c0_4, %c0_5] : memref<1x32xf32, #tpu.memory_space<vmem>>, vector<1x32xf32>
    %5 = vector.broadcast %4 : vector<1x32xf32> to vector<64x32xf32>
    %6 = arith.addf %3, %5 : vector<64x32xf32>
    %7 = vector.shape_cast %6 : vector<64x32xf32> to vector<8x8x32xf32>
    %c0_6 = arith.constant 0 : index
    %c0_7 = arith.constant 0 : index
    %c0_8 = arith.constant 0 : index
    %8 = vector.load %arg14[%c0_6, %c0_7, %c0_8] : memref<8x8x32xf32, #tpu.memory_space<vmem>>, vector<8x8x32xf32>
    tpu.vector_store %arg14[%c0_6, %c0_7, %c0_8], %7 {strides = array<i32>} : memref<8x8x32xf32, #tpu.memory_space<vmem>>, vector<8x8x32xf32>,
    %c0_9 = arith.constant 0 : index
    %c0_10 = arith.constant 0 : index
    %c0_11 = arith.constant 0 : index
    %9 = vector.load %arg2[%c0_9, %c0_10, %c0_11] : memref<7x8x16xbf16, #tpu.memory_space<vmem>>, vector<7x8x16xbf16>
    %10 = vector.shape_cast %9 : vector<7x8x16xbf16> to vector<56x16xbf16>
    %c0_12 = arith.constant 0 : index
    %c0_13 = arith.constant 0 : index
    %11 = vector.load %arg7[%c0_12, %c0_13] : memref<16x32xbf16, #tpu.memory_space<vmem>>, vector<16x32xbf16>
    %cst_14 = arith.constant dense<0.000000e+00> : vector<56x32xf32>
    %12 = tpu.matmul %10, %11, %cst_14 {dimension_numbers = #tpu.dot_dimension_numbers<[1], [0], [0], [1], [0, 0, 1, 1], [], []>} : vector<56x16xbf16>, vector<16x32xbf16>, vector<56x32xf32> -> vector<56x32xf32>
    %c0_15 = arith.constant 0 : index
    %c0_16 = arith.constant 0 : index
    %13 = vector.load %arg8[%c0_15, %c0_16] : memref<1x32xf32, #tpu.memory_space<vmem>>, vector<1x32xf32>
    %14 = vector.broadcast %13 : vector<1x32xf32> to vector<56x32xf32>
    %15 = arith.addf %12, %14 : vector<56x32xf32>
    %16 = vector.shape_cast %15 : vector<56x32xf32> to vector<7x8x32xf32>
    %c0_17 = arith.constant 0 : index
    %c0_18 = arith.constant 0 : index
    %c0_19 = arith.constant 0 : index
    %17 = vector.load %arg15[%c0_17, %c0_18, %c0_19] : memref<7x8x32xf32, #tpu.memory_space<vmem>>, vector<7x8x32xf32>
    tpu.vector_store %arg15[%c0_17, %c0_18, %c0_19], %16 {strides = array<i32>} : memref<7x8x32xf32, #tpu.memory_space<vmem>>, vector<7x8x32xf32>,
    %c0_20 = arith.constant 0 : index
    %c0_21 = arith.constant 0 : index
    %18 = vector.load %arg6[%c0_20, %c0_21] : memref<32x32xf32, #tpu.memory_space<vmem>>, vector<32x32xf32>
    %c0_22 = arith.constant 0 : index
    %c0_23 = arith.constant 0 : index
    %19 = vector.load %arg9[%c0_22, %c0_23] : memref<32x32xf32, #tpu.memory_space<vmem>>, vector<32x32xf32>
    %cst_24 = arith.constant 0.000000e+00 : f32
    %20 = vector.broadcast %cst_24 : f32 to vector<8x32xf32>
    %c0_25 = arith.constant 0 : index
    %c0_26 = arith.constant 0 : index
    %c0_27 = arith.constant 0 : index
    %21 = vector.load %arg14[%c0_25, %c0_26, %c0_27] : memref<8x8x32xf32, #tpu.memory_space<vmem>>, vector<1x8x32xf32>
    %22 = vector.shape_cast %21 : vector<1x8x32xf32> to vector<8x32xf32>
    %cst_28 = arith.constant dense<0.000000e+00> : vector<8x32xf32>
    %23 = tpu.matmul %20, %18, %cst_28 {dimension_numbers = #tpu.dot_dimension_numbers<[1], [0], [0], [1], [0, 0, 1, 1], [], []>} : vector<8x32xf32>, vector<32x32xf32>, vector<8x32xf32> -> vector<8x32xf32>
    %24 = arith.addf %22, %23 : vector<8x32xf32>
    %25 = math.tanh %24 : vector<8x32xf32>
    %c0_29 = arith.constant 0 : index
    %c0_30 = arith.constant 0 : index
    %c0_31 = arith.constant 0 : index
    %26 = vector.load %arg14[%c0_29, %c0_30, %c0_31] : memref<8x8x32xf32, #tpu.memory_space<vmem>>, vector<1x8x32xf32>
    %27 = vector.shape_cast %26 : vector<1x8x32xf32> to vector<8x32xf32>
    %28 = vector.shape_cast %25 : vector<8x32xf32> to vector<1x8x32xf32>
    tpu.vector_store %arg14[%c0_29, %c0_30, %c0_31], %28 {strides = array<i32>} : memref<8x8x32xf32, #tpu.memory_space<vmem>>, vector<1x8x32xf32>,
    %c1 = arith.constant 1 : index
    %c0_32 = arith.constant 0 : index
    %c0_33 = arith.constant 0 : index
    %29 = vector.load %arg14[%c1, %c0_32, %c0_33] : memref<8x8x32xf32, #tpu.memory_space<vmem>>, vector<1x8x32xf32>
    %30 = vector.shape_cast %29 : vector<1x8x32xf32> to vector<8x32xf32>
    %cst_34 = arith.constant dense<0.000000e+00> : vector<8x32xf32>
    %31 = tpu.matmul %25, %18, %cst_34 {dimension_numbers = #tpu.dot_dimension_numbers<[1], [0], [0], [1], [0, 0, 1, 1], [], []>} : vector<8x32xf32>, vector<32x32xf32>, vector<8x32xf32> -> vector<8x32xf32>
    %32 = arith.addf %30, %31 : vector<8x32xf32>
    %33 = math.tanh %32 : vector<8x32xf32>
    %c1_35 = arith.constant 1 : index
    %c0_36 = arith.constant 0 : index
    %c0_37 = arith.constant 0 : index
    %34 = vector.load %arg14[%c1_35, %c0_36, %c0_37] : memref<8x8x32xf32, #tpu.memory_space<vmem>>, vector<1x8x32xf32>
    %35 = vector.shape_cast %34 : vector<1x8x32xf32> to vector<8x32xf32>
    %36 = vector.shape_cast %33 : vector<8x32xf32> to vector<1x8x32xf32>
    tpu.vector_store %arg14[%c1_35, %c0_36, %c0_37], %36 {strides = array<i32>} : memref<8x8x32xf32, #tpu.memory_space<vmem>>, vector<1x8x32xf32>,
    %c2 = arith.constant 2 : index
    %c0_38 = arith.constant 0 : index
    %c0_39 = arith.constant 0 : index
    %37 = vector.load %arg14[%c2, %c0_38, %c0_39] : memref<8x8x32xf32, #tpu.memory_space<vmem>>, vector<1x8x32xf32>
    %38 = vector.shape_cast %37 : vector<1x8x32xf32> to vector<8x32xf32>
    %cst_40 = arith.constant dense<0.000000e+00> : vector<8x32xf32>
    %39 = tpu.matmul %33, %18, %cst_40 {dimension_numbers = #tpu.dot_dimension_numbers<[1], [0], [0], [1], [0, 0, 1, 1], [], []>} : vector<8x32xf32>, vector<32x32xf32>, vector<8x32xf32> -> vector<8x32xf32>
    %40 = arith.addf %38, %39 : vector<8x32xf32>
    %41 = math.tanh %40 : vector<8x32xf32>
    %c2_41 = arith.constant 2 : index
    %c0_42 = arith.constant 0 : index
    %c0_43 = arith.constant 0 : index
    %42 = vector.load %arg14[%c2_41, %c0_42, %c0_43] : memref<8x8x32xf32, #tpu.memory_space<vmem>>, vector<1x8x32xf32>
    %43 = vector.shape_cast %42 : vector<1x8x32xf32> to vector<8x32xf32>
    %44 = vector.shape_cast %41 : vector<8x32xf32> to vector<1x8x32xf32>
    tpu.vector_store %arg14[%c2_41, %c0_42, %c0_43], %44 {strides = array<i32>} : memref<8x8x32xf32, #tpu.memory_space<vmem>>, vector<1x8x32xf32>,
    %c3 = arith.constant 3 : index
    %c0_44 = arith.constant 0 : index
    %c0_45 = arith.constant 0 : index
    %45 = vector.load %arg14[%c3, %c0_44, %c0_45] : memref<8x8x32xf32, #tpu.memory_space<vmem>>, vector<1x8x32xf32>
    %46 = vector.shape_cast %45 : vector<1x8x32xf32> to vector<8x32xf32>
    %cst_46 = arith.constant dense<0.000000e+00> : vector<8x32xf32>
    %47 = tpu.matmul %41, %18, %cst_46 {dimension_numbers = #tpu.dot_dimension_numbers<[1], [0], [0], [1], [0, 0, 1, 1], [], []>} : vector<8x32xf32>, vector<32x32xf32>, vector<8x32xf32> -> vector<8x32xf32>
    %48 = arith.addf %46, %47 : vector<8x32xf32>
    %49 = math.tanh %48 : vector<8x32xf32>
    %c3_47 = arith.constant 3 : index
    %c0_48 = arith.constant 0 : index
    %c0_49 = arith.constant 0 : index
    %50 = vector.load %arg14[%c3_47, %c0_48, %c0_49] : memref<8x8x32xf32, #tpu.memory_space<vmem>>, vector<1x8x32xf32>
    %51 = vector.shape_cast %50 : vector<1x8x32xf32> to vector<8x32xf32>
    %52 = vector.shape_cast %49 : vector<8x32xf32> to vector<1x8x32xf32>
    tpu.vector_store %arg14[%c3_47, %c0_48, %c0_49], %52 {strides = array<i32>} : memref<8x8x32xf32, #tpu.memory_space<vmem>>, vector<1x8x32xf32>,
    %c4 = arith.constant 4 : index
    %c0_50 = arith.constant 0 : index
    %c0_51 = arith.constant 0 : index
    %53 = vector.load %arg14[%c4, %c0_50, %c0_51] : memref<8x8x32xf32, #tpu.memory_space<vmem>>, vector<1x8x32xf32>
    %54 = vector.shape_cast %53 : vector<1x8x32xf32> to vector<8x32xf32>
    %cst_52 = arith.constant dense<0.000000e+00> : vector<8x32xf32>
    %55 = tpu.matmul %49, %18, %cst_52 {dimension_numbers = #tpu.dot_dimension_numbers<[1], [0], [0], [1], [0, 0, 1, 1], [], []>} : vector<8x32xf32>, vector<32x32xf32>, vector<8x32xf32> -> vector<8x32xf32>
    %56 = arith.addf %54, %55 : vector<8x32xf32>
    %57 = math.tanh %56 : vector<8x32xf32>
    %c4_53 = arith.constant 4 : index
    %c0_54 = arith.constant 0 : index
    %c0_55 = arith.constant 0 : index
    %58 = vector.load %arg14[%c4_53, %c0_54, %c0_55] : memref<8x8x32xf32, #tpu.memory_space<vmem>>, vector<1x8x32xf32>
    %59 = vector.shape_cast %58 : vector<1x8x32xf32> to vector<8x32xf32>
    %60 = vector.shape_cast %57 : vector<8x32xf32> to vector<1x8x32xf32>
    tpu.vector_store %arg14[%c4_53, %c0_54, %c0_55], %60 {strides = array<i32>} : memref<8x8x32xf32, #tpu.memory_space<vmem>>, vector<1x8x32xf32>,
    %c5 = arith.constant 5 : index
    %c0_56 = arith.constant 0 : index
    %c0_57 = arith.constant 0 : index
    %61 = vector.load %arg14[%c5, %c0_56, %c0_57] : memref<8x8x32xf32, #tpu.memory_space<vmem>>, vector<1x8x32xf32>
    %62 = vector.shape_cast %61 : vector<1x8x32xf32> to vector<8x32xf32>
    %cst_58 = arith.constant dense<0.000000e+00> : vector<8x32xf32>
    %63 = tpu.matmul %57, %18, %cst_58 {dimension_numbers = #tpu.dot_dimension_numbers<[1], [0], [0], [1], [0, 0, 1, 1], [], []>} : vector<8x32xf32>, vector<32x32xf32>, vector<8x32xf32> -> vector<8x32xf32>
    %64 = arith.addf %62, %63 : vector<8x32xf32>
    %65 = math.tanh %64 : vector<8x32xf32>
    %c5_59 = arith.constant 5 : index
    %c0_60 = arith.constant 0 : index
    %c0_61 = arith.constant 0 : index
    %66 = vector.load %arg14[%c5_59, %c0_60, %c0_61] : memref<8x8x32xf32, #tpu.memory_space<vmem>>, vector<1x8x32xf32>
    %67 = vector.shape_cast %66 : vector<1x8x32xf32> to vector<8x32xf32>
    %68 = vector.shape_cast %65 : vector<8x32xf32> to vector<1x8x32xf32>
    tpu.vector_store %arg14[%c5_59, %c0_60, %c0_61], %68 {strides = array<i32>} : memref<8x8x32xf32, #tpu.memory_space<vmem>>, vector<1x8x32xf32>,
    %c6 = arith.constant 6 : index
    %c0_62 = arith.constant 0 : index
    %c0_63 = arith.constant 0 : index
    %69 = vector.load %arg14[%c6, %c0_62, %c0_63] : memref<8x8x32xf32, #tpu.memory_space<vmem>>, vector<1x8x32xf32>
    %70 = vector.shape_cast %69 : vector<1x8x32xf32> to vector<8x32xf32>
    %cst_64 = arith.constant dense<0.000000e+00> : vector<8x32xf32>
    %71 = tpu.matmul %65, %18, %cst_64 {dimension_numbers = #tpu.dot_dimension_numbers<[1], [0], [0], [1], [0, 0, 1, 1], [], []>} : vector<8x32xf32>, vector<32x32xf32>, vector<8x32xf32> -> vector<8x32xf32>
    %72 = arith.addf %70, %71 : vector<8x32xf32>
    %73 = math.tanh %72 : vector<8x32xf32>
    %c6_65 = arith.constant 6 : index
    %c0_66 = arith.constant 0 : index
    %c0_67 = arith.constant 0 : index
    %74 = vector.load %arg14[%c6_65, %c0_66, %c0_67] : memref<8x8x32xf32, #tpu.memory_space<vmem>>, vector<1x8x32xf32>
    %75 = vector.shape_cast %74 : vector<1x8x32xf32> to vector<8x32xf32>
    %76 = vector.shape_cast %73 : vector<8x32xf32> to vector<1x8x32xf32>
    tpu.vector_store %arg14[%c6_65, %c0_66, %c0_67], %76 {strides = array<i32>} : memref<8x8x32xf32, #tpu.memory_space<vmem>>, vector<1x8x32xf32>,
    %c7 = arith.constant 7 : index
    %c0_68 = arith.constant 0 : index
    %c0_69 = arith.constant 0 : index
    %77 = vector.load %arg14[%c7, %c0_68, %c0_69] : memref<8x8x32xf32, #tpu.memory_space<vmem>>, vector<1x8x32xf32>
    %78 = vector.shape_cast %77 : vector<1x8x32xf32> to vector<8x32xf32>
    %cst_70 = arith.constant dense<0.000000e+00> : vector<8x32xf32>
    %79 = tpu.matmul %73, %18, %cst_70 {dimension_numbers = #tpu.dot_dimension_numbers<[1], [0], [0], [1], [0, 0, 1, 1], [], []>} : vector<8x32xf32>, vector<32x32xf32>, vector<8x32xf32> -> vector<8x32xf32>
    %80 = arith.addf %78, %79 : vector<8x32xf32>
    %81 = math.tanh %80 : vector<8x32xf32>
    %c7_71 = arith.constant 7 : index
    %c0_72 = arith.constant 0 : index
    %c0_73 = arith.constant 0 : index
    %82 = vector.load %arg14[%c7_71, %c0_72, %c0_73] : memref<8x8x32xf32, #tpu.memory_space<vmem>>, vector<1x8x32xf32>
    %83 = vector.shape_cast %82 : vector<1x8x32xf32> to vector<8x32xf32>
    %84 = vector.shape_cast %81 : vector<8x32xf32> to vector<1x8x32xf32>
    tpu.vector_store %arg14[%c7_71, %c0_72, %c0_73], %84 {strides = array<i32>} : memref<8x8x32xf32, #tpu.memory_space<vmem>>, vector<1x8x32xf32>,
    %c0_74 = arith.constant 0 : index
    %c0_75 = arith.constant 0 : index
    %c0_76 = arith.constant 0 : index
    %85 = vector.load %arg15[%c0_74, %c0_75, %c0_76] : memref<7x8x32xf32, #tpu.memory_space<vmem>>, vector<1x8x32xf32>
    %86 = vector.shape_cast %85 : vector<1x8x32xf32> to vector<8x32xf32>
    %cst_77 = arith.constant dense<0.000000e+00> : vector<8x32xf32>
    %87 = tpu.matmul %81, %19, %cst_77 {dimension_numbers = #tpu.dot_dimension_numbers<[1], [0], [0], [1], [0, 0, 1, 1], [], []>} : vector<8x32xf32>, vector<32x32xf32>, vector<8x32xf32> -> vector<8x32xf32>
    %88 = arith.addf %86, %87 : vector<8x32xf32>
    %89 = math.tanh %88 : vector<8x32xf32>
    %c0_78 = arith.constant 0 : index
    %c0_79 = arith.constant 0 : index
    %c0_80 = arith.constant 0 : index
    %90 = vector.load %arg15[%c0_78, %c0_79, %c0_80] : memref<7x8x32xf32, #tpu.memory_space<vmem>>, vector<1x8x32xf32>
    %91 = vector.shape_cast %90 : vector<1x8x32xf32> to vector<8x32xf32>
    %92 = vector.shape_cast %89 : vector<8x32xf32> to vector<1x8x32xf32>
    tpu.vector_store %arg15[%c0_78, %c0_79, %c0_80], %92 {strides = array<i32>} : memref<7x8x32xf32, #tpu.memory_space<vmem>>, vector<1x8x32xf32>,
    %c1_81 = arith.constant 1 : index
    %c0_82 = arith.constant 0 : index
    %c0_83 = arith.constant 0 : index
    %93 = vector.load %arg15[%c1_81, %c0_82, %c0_83] : memref<7x8x32xf32, #tpu.memory_space<vmem>>, vector<1x8x32xf32>
    %94 = vector.shape_cast %93 : vector<1x8x32xf32> to vector<8x32xf32>
    %cst_84 = arith.constant dense<0.000000e+00> : vector<8x32xf32>
    %95 = tpu.matmul %89, %19, %cst_84 {dimension_numbers = #tpu.dot_dimension_numbers<[1], [0], [0], [1], [0, 0, 1, 1], [], []>} : vector<8x32xf32>, vector<32x32xf32>, vector<8x32xf32> -> vector<8x32xf32>
    %96 = arith.addf %94, %95 : vector<8x32xf32>
    %97 = math.tanh %96 : vector<8x32xf32>
    %c1_85 = arith.constant 1 : index
    %c0_86 = arith.constant 0 : index
    %c0_87 = arith.constant 0 : index
    %98 = vector.load %arg15[%c1_85, %c0_86, %c0_87] : memref<7x8x32xf32, #tpu.memory_space<vmem>>, vector<1x8x32xf32>
    %99 = vector.shape_cast %98 : vector<1x8x32xf32> to vector<8x32xf32>
    %100 = vector.shape_cast %97 : vector<8x32xf32> to vector<1x8x32xf32>
    tpu.vector_store %arg15[%c1_85, %c0_86, %c0_87], %100 {strides = array<i32>} : memref<7x8x32xf32, #tpu.memory_space<vmem>>, vector<1x8x32xf32>,
    %c2_88 = arith.constant 2 : index
    %c0_89 = arith.constant 0 : index
    %c0_90 = arith.constant 0 : index
    %101 = vector.load %arg15[%c2_88, %c0_89, %c0_90] : memref<7x8x32xf32, #tpu.memory_space<vmem>>, vector<1x8x32xf32>
    %102 = vector.shape_cast %101 : vector<1x8x32xf32> to vector<8x32xf32>
    %cst_91 = arith.constant dense<0.000000e+00> : vector<8x32xf32>
    %103 = tpu.matmul %97, %19, %cst_91 {dimension_numbers = #tpu.dot_dimension_numbers<[1], [0], [0], [1], [0, 0, 1, 1], [], []>} : vector<8x32xf32>, vector<32x32xf32>, vector<8x32xf32> -> vector<8x32xf32>
    %104 = arith.addf %102, %103 : vector<8x32xf32>
    %105 = math.tanh %104 : vector<8x32xf32>
    %c2_92 = arith.constant 2 : index
    %c0_93 = arith.constant 0 : index
    %c0_94 = arith.constant 0 : index
    %106 = vector.load %arg15[%c2_92, %c0_93, %c0_94] : memref<7x8x32xf32, #tpu.memory_space<vmem>>, vector<1x8x32xf32>
    %107 = vector.shape_cast %106 : vector<1x8x32xf32> to vector<8x32xf32>
    %108 = vector.shape_cast %105 : vector<8x32xf32> to vector<1x8x32xf32>
    tpu.vector_store %arg15[%c2_92, %c0_93, %c0_94], %108 {strides = array<i32>} : memref<7x8x32xf32, #tpu.memory_space<vmem>>, vector<1x8x32xf32>,
    %c3_95 = arith.constant 3 : index
    %c0_96 = arith.constant 0 : index
    %c0_97 = arith.constant 0 : index
    %109 = vector.load %arg15[%c3_95, %c0_96, %c0_97] : memref<7x8x32xf32, #tpu.memory_space<vmem>>, vector<1x8x32xf32>
    %110 = vector.shape_cast %109 : vector<1x8x32xf32> to vector<8x32xf32>
    %cst_98 = arith.constant dense<0.000000e+00> : vector<8x32xf32>
    %111 = tpu.matmul %105, %19, %cst_98 {dimension_numbers = #tpu.dot_dimension_numbers<[1], [0], [0], [1], [0, 0, 1, 1], [], []>} : vector<8x32xf32>, vector<32x32xf32>, vector<8x32xf32> -> vector<8x32xf32>
    %112 = arith.addf %110, %111 : vector<8x32xf32>
    %113 = math.tanh %112 : vector<8x32xf32>
    %c3_99 = arith.constant 3 : index
    %c0_100 = arith.constant 0 : index
    %c0_101 = arith.constant 0 : index
    %114 = vector.load %arg15[%c3_99, %c0_100, %c0_101] : memref<7x8x32xf32, #tpu.memory_space<vmem>>, vector<1x8x32xf32>
    %115 = vector.shape_cast %114 : vector<1x8x32xf32> to vector<8x32xf32>
    %116 = vector.shape_cast %113 : vector<8x32xf32> to vector<1x8x32xf32>
    tpu.vector_store %arg15[%c3_99, %c0_100, %c0_101], %116 {strides = array<i32>} : memref<7x8x32xf32, #tpu.memory_space<vmem>>, vector<1x8x32xf32>,
    %c4_102 = arith.constant 4 : index
    %c0_103 = arith.constant 0 : index
    %c0_104 = arith.constant 0 : index
    %117 = vector.load %arg15[%c4_102, %c0_103, %c0_104] : memref<7x8x32xf32, #tpu.memory_space<vmem>>, vector<1x8x32xf32>
    %118 = vector.shape_cast %117 : vector<1x8x32xf32> to vector<8x32xf32>
    %cst_105 = arith.constant dense<0.000000e+00> : vector<8x32xf32>
    %119 = tpu.matmul %113, %19, %cst_105 {dimension_numbers = #tpu.dot_dimension_numbers<[1], [0], [0], [1], [0, 0, 1, 1], [], []>} : vector<8x32xf32>, vector<32x32xf32>, vector<8x32xf32> -> vector<8x32xf32>
    %120 = arith.addf %118, %119 : vector<8x32xf32>
    %121 = math.tanh %120 : vector<8x32xf32>
    %c4_106 = arith.constant 4 : index
    %c0_107 = arith.constant 0 : index
    %c0_108 = arith.constant 0 : index
    %122 = vector.load %arg15[%c4_106, %c0_107, %c0_108] : memref<7x8x32xf32, #tpu.memory_space<vmem>>, vector<1x8x32xf32>
    %123 = vector.shape_cast %122 : vector<1x8x32xf32> to vector<8x32xf32>
    %124 = vector.shape_cast %121 : vector<8x32xf32> to vector<1x8x32xf32>
    tpu.vector_store %arg15[%c4_106, %c0_107, %c0_108], %124 {strides = array<i32>} : memref<7x8x32xf32, #tpu.memory_space<vmem>>, vector<1x8x32xf32>,
    %c5_109 = arith.constant 5 : index
    %c0_110 = arith.constant 0 : index
    %c0_111 = arith.constant 0 : index
    %125 = vector.load %arg15[%c5_109, %c0_110, %c0_111] : memref<7x8x32xf32, #tpu.memory_space<vmem>>, vector<1x8x32xf32>
    %126 = vector.shape_cast %125 : vector<1x8x32xf32> to vector<8x32xf32>
    %cst_112 = arith.constant dense<0.000000e+00> : vector<8x32xf32>
    %127 = tpu.matmul %121, %19, %cst_112 {dimension_numbers = #tpu.dot_dimension_numbers<[1], [0], [0], [1], [0, 0, 1, 1], [], []>} : vector<8x32xf32>, vector<32x32xf32>, vector<8x32xf32> -> vector<8x32xf32>
    %128 = arith.addf %126, %127 : vector<8x32xf32>
    %129 = math.tanh %128 : vector<8x32xf32>
    %c5_113 = arith.constant 5 : index
    %c0_114 = arith.constant 0 : index
    %c0_115 = arith.constant 0 : index
    %130 = vector.load %arg15[%c5_113, %c0_114, %c0_115] : memref<7x8x32xf32, #tpu.memory_space<vmem>>, vector<1x8x32xf32>
    %131 = vector.shape_cast %130 : vector<1x8x32xf32> to vector<8x32xf32>
    %132 = vector.shape_cast %129 : vector<8x32xf32> to vector<1x8x32xf32>
    tpu.vector_store %arg15[%c5_113, %c0_114, %c0_115], %132 {strides = array<i32>} : memref<7x8x32xf32, #tpu.memory_space<vmem>>, vector<1x8x32xf32>,
    %c6_116 = arith.constant 6 : index
    %c0_117 = arith.constant 0 : index
    %c0_118 = arith.constant 0 : index
    %133 = vector.load %arg15[%c6_116, %c0_117, %c0_118] : memref<7x8x32xf32, #tpu.memory_space<vmem>>, vector<1x8x32xf32>
    %134 = vector.shape_cast %133 : vector<1x8x32xf32> to vector<8x32xf32>
    %cst_119 = arith.constant dense<0.000000e+00> : vector<8x32xf32>
    %135 = tpu.matmul %129, %19, %cst_119 {dimension_numbers = #tpu.dot_dimension_numbers<[1], [0], [0], [1], [0, 0, 1, 1], [], []>} : vector<8x32xf32>, vector<32x32xf32>, vector<8x32xf32> -> vector<8x32xf32>
    %136 = arith.addf %134, %135 : vector<8x32xf32>
    %137 = math.tanh %136 : vector<8x32xf32>
    %c6_120 = arith.constant 6 : index
    %c0_121 = arith.constant 0 : index
    %c0_122 = arith.constant 0 : index
    %138 = vector.load %arg15[%c6_120, %c0_121, %c0_122] : memref<7x8x32xf32, #tpu.memory_space<vmem>>, vector<1x8x32xf32>
    %139 = vector.shape_cast %138 : vector<1x8x32xf32> to vector<8x32xf32>
    %140 = vector.shape_cast %137 : vector<8x32xf32> to vector<1x8x32xf32>
    tpu.vector_store %arg15[%c6_120, %c0_121, %c0_122], %140 {strides = array<i32>} : memref<7x8x32xf32, #tpu.memory_space<vmem>>, vector<1x8x32xf32>,
    %c0_123 = arith.constant 0 : index
    %c0_124 = arith.constant 0 : index
    %141 = vector.load %arg13[%c0_123, %c0_124] : memref<8x32xf32, #tpu.memory_space<vmem>>, vector<8x32xf32>
    tpu.vector_store %arg13[%c0_123, %c0_124], %137 {strides = array<i32>} : memref<8x32xf32, #tpu.memory_space<vmem>>, vector<8x32xf32>,
    %c0_125 = arith.constant 0 : index
    %c0_126 = arith.constant 0 : index
    %c0_127 = arith.constant 0 : index
    %142 = vector.load %arg14[%c0_125, %c0_126, %c0_127] : memref<8x8x32xf32, #tpu.memory_space<vmem>>, vector<8x8x32xf32>
    %143 = tpu.transpose %142, [1, 0, 2] : vector<8x8x32xf32> -> vector<8x8x32xf32>
    %c0_128 = arith.constant 0 : index
    %c0_129 = arith.constant 0 : index
    %c0_130 = arith.constant 0 : index
    %144 = vector.load %arg15[%c0_128, %c0_129, %c0_130] : memref<7x8x32xf32, #tpu.memory_space<vmem>>, vector<7x8x32xf32>
    %145 = tpu.transpose %144, [1, 0, 2] : vector<7x8x32xf32> -> vector<8x7x32xf32>
    "tpu.trace_start"() <{level = 10 : i32, message = "bth,bsh->bts"}> : () -> ()
    %cst_131 = arith.constant dense<0.000000e+00> : vector<8x7x8xf32>
    %146 = tpu.matmul %145, %143, %cst_131 {dimension_numbers = #tpu.dot_dimension_numbers<[2], [2], [1], [1], [0, 0, 0, 1, 1, 1], [0], [0]>} : vector<8x7x32xf32>, vector<8x8x32xf32>, vector<8x7x8xf32> -> vector<8x7x8xf32>
    "tpu.trace_stop"() : () -> ()
    %c0_132 = arith.constant 0 : index
    %c0_133 = arith.constant 0 : index
    %147 = vector.load %arg3[%c0_132, %c0_133] : memref<8x8xf32, #tpu.memory_space<vmem>>, vector<8x8xf32>
    %148 = vector.shape_cast %147 : vector<8x8xf32> to vector<8x1x8xf32>
    %149 = vector.broadcast %148 : vector<8x1x8xf32> to vector<8x7x8xf32>
    %150 = arith.addf %146, %149 : vector<8x7x8xf32>
    %cst_134 = arith.constant dense<0xFF800000> : vector<8x7xf32>
    %151 = vector.multi_reduction <maximumf>, %150, %cst_134 [2] : vector<8x7x8xf32> to vector<8x7xf32>
    %152 = vector.shape_cast %151 : vector<8x7xf32> to vector<8x7x1xf32>
    %153 = vector.broadcast %152 : vector<8x7x1xf32> to vector<8x7x8xf32>
    %154 = arith.subf %150, %153 : vector<8x7x8xf32>
    %155 = math.exp %154 : vector<8x7x8xf32>
    %cst_135 = arith.constant dense<0.000000e+00> : vector<8x7xf32>
    %156 = vector.multi_reduction <add>, %155, %cst_135 [2] : vector<8x7x8xf32> to vector<8x7xf32>
    %157 = vector.shape_cast %156 : vector<8x7xf32> to vector<8x7x1xf32>
    %158 = tpu.reciprocal %157 {approx = true} : vector<8x7x1xf32> -> vector<8x7x1xf32>
    %159 = vector.broadcast %158 : vector<8x7x1xf32> to vector<8x7x8xf32>
    %160 = arith.mulf %155, %159 : vector<8x7x8xf32>
    "tpu.trace_start"() <{level = 10 : i32, message = "bts,bsh->bth"}> : () -> ()
    %cst_136 = arith.constant dense<0.000000e+00> : vector<8x7x32xf32>
    %161 = tpu.matmul %160, %143, %cst_136 {dimension_numbers = #tpu.dot_dimension_numbers<[2], [1], [1], [2], [0, 0, 0, 1, 1, 2], [0], [0]>} : vector<8x7x8xf32>, vector<8x8x32xf32>, vector<8x7x32xf32> -> vector<8x7x32xf32>
    "tpu.trace_stop"() : () -> ()
    %162 = vector.shape_cast %161 : vector<8x7x32xf32> to vector<56x32xf32>
    %163 = vector.shape_cast %145 : vector<8x7x32xf32> to vector<56x32xf32>
    %164 = tpu.concatenate %162, %163 in 1 : vector<56x32xf32>, vector<56x32xf32> -> vector<56x64xf32>
    %c0_137 = arith.constant 0 : index
    %c0_138 = arith.constant 0 : index
    %165 = vector.load %arg10[%c0_137, %c0_138] : memref<64x32xf32, #tpu.memory_space<vmem>>, vector<64x32xf32>
    %cst_139 = arith.constant dense<0.000000e+00> : vector<56x32xf32>
    %166 = tpu.matmul %164, %165, %cst_139 {dimension_numbers = #tpu.dot_dimension_numbers<[1], [0], [0], [1], [0, 0, 1, 1], [], []>} : vector<56x64xf32>, vector<64x32xf32>, vector<56x32xf32> -> vector<56x32xf32>
    %167 = math.tanh %166 : vector<56x32xf32>
    %168 = vector.shape_cast %167 : vector<56x32xf32> to vector<8x7x32xf32>
    %169 = tpu.transpose %168, [1, 0, 2] : vector<8x7x32xf32> -> vector<7x8x32xf32>
    %c0_140 = arith.constant 0 : index
    %c0_141 = arith.constant 0 : index
    %c0_142 = arith.constant 0 : index
    %170 = vector.load %arg11[%c0_140, %c0_141, %c0_142] : memref<7x8x32xf32, #tpu.memory_space<vmem>>, vector<7x8x32xf32>
    tpu.vector_store %arg11[%c0_140, %c0_141, %c0_142], %169 {strides = array<i32>} : memref<7x8x32xf32, #tpu.memory_space<vmem>>, vector<7x8x32xf32>,
    %171 = tpu.transpose %160, [1, 0, 2] : vector<8x7x8xf32> -> vector<7x8x8xf32>
    %c0_143 = arith.constant 0 : index
    %c0_144 = arith.constant 0 : index
    %c0_145 = arith.constant 0 : index
    %172 = vector.load %arg12[%c0_143, %c0_144, %c0_145] : memref<7x8x8xf32, #tpu.memory_space<vmem>>, vector<7x8x8xf32>
    tpu.vector_store %arg12[%c0_143, %c0_144, %c0_145], %171 {strides = array<i32>} : memref<7x8x8xf32, #tpu.memory_space<vmem>>, vector<7x8x8xf32>,
    return
  }
  func.func @transform_0(%arg0: i32) -> (i32, i32, i32) {
    %c0_i32 = arith.constant 0 : i32
    %c0_i32_0 = arith.constant 0 : i32
    %c0_i32_1 = arith.constant 0 : i32
    return %c0_i32, %arg0, %c0_i32_0 : i32, i32, i32
  }
  func.func @transform_1(%arg0: i32) -> (i32, i32, i32) {
    %c0_i32 = arith.constant 0 : i32
    %c0_i32_0 = arith.constant 0 : i32
    %c0_i32_1 = arith.constant 0 : i32
    return %c0_i32, %arg0, %c0_i32_0 : i32, i32, i32
  }
  func.func @transform_2(%arg0: i32) -> (i32, i32) {
    %c0_i32 = arith.constant 0 : i32
    %c0_i32_0 = arith.constant 0 : i32
    return %arg0, %c0_i32 : i32, i32
  }
  func.func @transform_3(%arg0: i32) -> (i32, i32) {
    %c0_i32 = arith.constant 0 : i32
    %c0_i32_0 = arith.constant 0 : i32
    %c0_i32_1 = arith.constant 0 : i32
    return %c0_i32, %c0_i32_0 : i32, i32
  }
  func.func @transform_4(%arg0: i32) -> (i32, i32) {
    %c0_i32 = arith.constant 0 : i32
    %c0_i32_0 = arith.constant 0 : i32
    %c0_i32_1 = arith.constant 0 : i32
    return %c0_i32, %c0_i32_0 : i32, i32
  }
  func.func @transform_5(%arg0: i32) -> (i32, i32) {
    %c0_i32 = arith.constant 0 : i32
    %c0_i32_0 = arith.constant 0 : i32
    %c0_i32_1 = arith.constant 0 : i32
    return %c0_i32, %c0_i32_0 : i32, i32
  }
  func.func @transform_6(%arg0: i32) -> (i32, i32) {
    %c0_i32 = arith.constant 0 : i32
    %c0_i32_0 = arith.constant 0 : i32
    %c0_i32_1 = arith.constant 0 : i32
    return %c0_i32, %c0_i32_0 : i32, i32
  }
  func.func @transform_7(%arg0: i32) -> (i32, i32) {
    %c0_i32 = arith.constant 0 : i32
    %c0_i32_0 = arith.constant 0 : i32
    %c0_i32_1 = arith.constant 0 : i32
    return %c0_i32, %c0_i32_0 : i32, i32
  }
  func.func @transform_8(%arg0: i32) -> (i32, i32) {
    %c0_i32 = arith.constant 0 : i32
    %c0_i32_0 = arith.constant 0 : i32
    %c0_i32_1 = arith.constant 0 : i32
    return %c0_i32, %c0_i32_0 : i32, i32
  }
  func.func @transform_9(%arg0: i32) -> (i32, i32) {
    %c0_i32 = arith.constant 0 : i32
    %c0_i32_0 = arith.constant 0 : i32
    %c0_i32_1 = arith.constant 0 : i32
    return %c0_i32, %c0_i32_0 : i32, i32
  }
  func.func @transform_10(%arg0: i32) -> (i32, i32, i32) {
    %c0_i32 = arith.constant 0 : i32
    %c0_i32_0 = arith.constant 0 : i32
    %c0_i32_1 = arith.constant 0 : i32
    return %c0_i32, %arg0, %c0_i32_0 : i32, i32, i32
  }
  func.func @transform_11(%arg0: i32) -> (i32, i32, i32) {
    %c0_i32 = arith.constant 0 : i32
    %c0_i32_0 = arith.constant 0 : i32
    %c0_i32_1 = arith.constant 0 : i32
    return %c0_i32, %arg0, %c0_i32_0 : i32, i32, i32
  }
  func.func @transform_12(%arg0: i32) -> (i32, i32) {
    %c0_i32 = arith.constant 0 : i32
    %c0_i32_0 = arith.constant 0 : i32
    return %arg0, %c0_i32 : i32, i32
  }
}

</mosaic_0001>

<bundles_post_ra>
// kernel: tpu_custom_call.1
= control target key start
LH: loop header
LB: loop body
LE: loop exit
PB: predicated region body
PF: predicated region fallthrough
CT: control target
= control target key end

     0   :  { %18 = vsyncpa [#allocation5], 0  ;;  %s7752_s0 = inlined_call_operand.vmem [shape: bf16[8,8,16], index: 0, kind: input, shape index: {}]   ;;  %s7753_s1 = inlined_call_operand.hbm [shape: bf16[7,8,16], index: 1, kind: input, shape index: {}]   ;;  %s7754_s2 = inlined_call_operand.hbm [shape: f32[8,8], index: 2, kind: input, shape index: {}]   ;;  %s7755_s3 = inlined_call_operand.hbm [shape: bf16[16,32], index: 3, kind: input, shape index: {}]   ;;  %s7756_s4 = inlined_call_operand.vmem [shape: f32[1,32], index: 4, kind: input, shape index: {}]   ;;  %s7757_s5 = inlined_call_operand.vmem [shape: f32[32,32], index: 5, kind: input, shape index: {}]   ;;  %s7758_s6 = inlined_call_operand.hbm [shape: bf16[16,32], index: 6, kind: input, shape index: {}]   ;;  %s7759_s7 = inlined_call_operand.vmem [shape: f32[1,32], index: 7, kind: input, shape index: {}]   ;;  %s7760_s8 = inlined_call_operand.vmem [shape: f32[32,32], index: 8, kind: input, shape index: {}]   ;;  %s7761_s9 = inlined_call_operand.vmem [shape: f32[64,32], index: 9, kind: input, shape index: {}]   ;;  %s7762_s10 = inlined_call_operand.hbm [shape: f32[7,8,32], index: 10, kind: output, shape index: {0}]   ;;  %s7763_s11 = inlined_call_operand.hbm [shape: f32[7,8,8], index: 11, kind: output, shape index: {1}]   ;;  %s7764_s12 = inlined_call_operand.hbm [shape: f32[8,32], index: 12, kind: output, shape index: {2}]  }
   0x1   :  { %19 = vsyncpa [#allocation8], 0 }
   0x2   :  { %20 = vsyncpa [#allocation11], 0 }
   0x3   :  { %21 = vsyncpa [#allocation6], 0 }
   0x4   :  { %22 = vsyncpa [#allocation14], 0  ;;  %s6623_s21 = smov [#allocation7]   ;;  %s6624_s23 = smov [#allocation4]  }
   0x5   :  { %s43_s22 = sshll.u32 %s6623_s21, 4  ;;  %s30_s24 = sshll.u32 %s6624_s23, 4  ;;  %s44_s22 = int_to_ptr.vmem [resolvable:$true] %s43_s22  ;;  %s6706_s24 = int_to_ptr.vmem [resolvable:$true] %s30_s24 }
   0x6   :  { %s6459_s27 = scalar_lea.hbm %s7754_s2, 128 }
   0x7   :  { %p6460_p0 = scmp.ne.s32.totalorder %s7754_s2, %s6459_s27  ;;  %p6463_p1 = scmp.lt.u32.totalorder %s6459_s27, %s7754_s2 }
   0x9   :  { %p6465_p2 = pnand %p6463_p1, %p6460_p0 }
   0xb   :  { %6468 = shalt.err (!%p6465_p2)
}
   0xc   :  { %s6469_s14 = scalar_lea.vmem %s44_s22, 128  ;;  %p6474_p4 = scmp.lt.s32.totalorder %s44_s22, %s44_s22 }
   0xd   :  { %p6470_p3 = scmp.ne.s32.totalorder %s44_s22, %s6469_s14  ;;  %p6475_p5 = scmp.lt.s32.totalorder %s6469_s14, %s6469_s14 }
   0xf   :  { %p6476_p6 = por %p6475_p5, %p6474_p4 }
  0x11   :  { %p6477_p7 = pnand %p6476_p6, %p6470_p3 }
  0x13   :  { %6480 = shalt.err (!%p6477_p7)
}
  0x14   :  { %46 = dma.hbm_to_vmem [thread:$0]  %s7754_s2, 128, %s44_s22, [#allocation8]  }
  0x15   :  { %s6481_s19 = scalar_lea.hbm %s7753_s1, 448 }
  0x16   :  { %p6482_p8 = scmp.ne.s32.totalorder %s7753_s1, %s6481_s19  ;;  %p6485_p9 = scmp.lt.u32.totalorder %s6481_s19, %s7753_s1 }
  0x18   :  { %p6487_p10 = pnand %p6485_p9, %p6482_p8 }
  0x1a   :  { %6490 = shalt.err (!%p6487_p10)
}
  0x1b   :  { %s6491_s26 = scalar_lea.vmem %s6706_s24, 448  ;;  %p6496_p12 = scmp.lt.s32.totalorder %s6706_s24, %s6706_s24 }
  0x1c   :  { %p6492_p11 = scmp.ne.s32.totalorder %s6706_s24, %s6491_s26  ;;  %p6497_p13 = scmp.lt.s32.totalorder %s6491_s26, %s6491_s26 }
  0x1e   :  { %p6498_p0 = por %p6497_p13, %p6496_p12 }
  0x20   :  { %p6499_p1 = pnand %p6498_p0, %p6492_p11 }
  0x22   :  { %6502 = shalt.err (!%p6499_p1)
}
  0x23   :  { %s6625_s2 = smov 64   ;;  %s6626_s22 = smov 4  }
  0x24   :  { %36 = dma.hbm_to_vmem [thread:$0]  %s7753_s1, 448, %s6706_s24, [#allocation5], %s6625_s2, %s6625_s2, %s6626_s22  }
  0x25   :  { %s6627_s29 = smov [#allocation9]   ;;  %s6628_s13 = smov [#allocation10]  }
  0x26   :  { %s52_s30 = sshll.u32 %s6627_s29, 4  ;;  %s68_s14 = sshll.u32 %s6628_s13, 4  ;;  %s53_s30 = int_to_ptr.vmem [resolvable:$true] %s52_s30  ;;  %s6740_s14 = int_to_ptr.vmem [resolvable:$true] %s68_s14 }
  0x27   :  { %s6503_s17 = scalar_lea.hbm %s7755_s3, 128 }
  0x28   :  { %p6504_p2 = scmp.ne.s32.totalorder %s7755_s3, %s6503_s17  ;;  %p6507_p3 = scmp.lt.u32.totalorder %s6503_s17, %s7755_s3 }
  0x2a   :  { %p6509_p4 = pnand %p6507_p3, %p6504_p2 }
  0x2c   :  { %6512 = shalt.err (!%p6509_p4)
}
  0x2d   :  { %s6513_s1 = scalar_lea.vmem %s53_s30, 128  ;;  %p6518_p6 = scmp.lt.s32.totalorder %s53_s30, %s53_s30 }
  0x2e   :  { %p6514_p5 = scmp.ne.s32.totalorder %s53_s30, %s6513_s1  ;;  %p6519_p7 = scmp.lt.s32.totalorder %s6513_s1, %s6513_s1 }
  0x30   :  { %p6520_p8 = por %p6519_p7, %p6518_p6 }
  0x32   :  { %p6521_p9 = pnand %p6520_p8, %p6514_p5 }
  0x34   :  { %6524 = shalt.err (!%p6521_p9)
}
  0x35   :  { %58 = dma.hbm_to_vmem [thread:$0]  %s7755_s3, 128, %s53_s30, [#allocation8], %s6625_s2, %s6625_s2, %s6626_s22  }
  0x36   :  { %s6525_s27 = scalar_lea.hbm %s7758_s6, 128 }
  0x37   :  { %p6526_p10 = scmp.ne.s32.totalorder %s7758_s6, %s6525_s27  ;;  %p6529_p11 = scmp.lt.u32.totalorder %s6525_s27, %s7758_s6 }
  0x39   :  { %p6531_p12 = pnand %p6529_p11, %p6526_p10 }
  0x3b   :  { %6534 = shalt.err (!%p6531_p12)
}
  0x3c   :  { %s6535_s16 = scalar_lea.vmem %s6740_s14, 128  ;;  %p6540_p0 = scmp.lt.s32.totalorder %s6740_s14, %s6740_s14 }
  0x3d   :  { %p6536_p13 = scmp.ne.s32.totalorder %s6740_s14, %s6535_s16  ;;  %p6541_p1 = scmp.lt.s32.totalorder %s6535_s16, %s6535_s16 }
  0x3f   :  { %p6542_p2 = por %p6541_p1, %p6540_p0 }
  0x41   :  { %p6543_p3 = pnand %p6542_p2, %p6536_p13 }
  0x43   :  { %6546 = shalt.err (!%p6543_p3)
}
  0x44   :  { %74 = dma.hbm_to_vmem [thread:$0]  %s7758_s6, 128, %s6740_s14, [#allocation11], %s6625_s2, %s6625_s2, %s6626_s22  }
  0x45   :  { %6613 = dma.done.wait [#allocation5], 448  }
  0x46   :  { %6614 = vsyncadd [#allocation5], 4294966848 }
  0x47   :  { %6615 = dma.done.wait [#allocation8], 256  }
  0x48   :  { %6616 = vsyncadd [#allocation8], 4294967040 }
  0x49   :  { %6617 = dma.done.wait [#allocation11], 128  }
  0x4a   :  { %6618 = vsyncadd [#allocation11], 4294967168  ;;  %v6629_v0 = vmov 0.0|0.0   ;;  %vm6630_vm0 = vmmov 0   ;;  %v6631_v1 = vmov 0.0   ;;  %v6355_v2 = vld [vmem:[#allocation9] sm:$0xff]  }
  0x4b   :  { %6247 = vmatprep.subr.bf16.mxu0 %v6629_v0  ;;  %5983 = vmatprep.mubr.msk.f32.mxu0 %vm6630_vm0, %v6631_v1  ;;  %vm137_vm1 = vcmask 130048   ;;  %v6356_v3 = vld [vmem:[%s7752_s0] sm:$0xff]   ;;  %v6357_v4 = vld [vmem:[%s7752_s0 + $0x8] sm:$0xff]   ;;  %v6359_v6 = vld [vmem:[%s7752_s0 + $0x10] sm:$0xff]   ;;  %vm215_vm2 = vcmask 261120   ;;  %vm2509_vm3 = vcmask 63488  }
  0x4c   :  { %5933 = vmatprep.subr.bf16.mxu1 %v6355_v2  ;;  %5935 = vmatprep.mubr.msk.bf16.mxu1 %vm137_vm1, %v6356_v3  ;;  %v6358_v5 = vld [vmem:[#allocation10] sm:$0xff]   ;;  %v6360_v10 = vld [vmem:[%s7752_s0 + $0x18] sm:$0xff]   ;;  %v349_v11 = vld [vmem:[%s7757_s5 + $0x10] sm:$0xff]  ;;  %vm2598_vm4 = vcmask 64512   ;;  %vm4688_vm5 = vcmask 523264  }
  0x4d   :  { %5934 = vmatpush3.bf16.msra.mxu1 %v6355_v2  ;;  %v347_v7 = vld [vmem:[%s7757_s5] sm:$0xff]  ;;  %v348_v8 = vld [vmem:[%s7757_s5 + $0x8] sm:$0xff]  ;;  %v350_v12 = vld [vmem:[%s7757_s5 + $0x18] sm:$0xff] }
  0x4e   :  { %5943 = vmatprep.subr.bf16.mxu1 %v6358_v5  ;;  %v6799_v9 = vpack.c.bf16 %v348_v8, %v347_v7  ;;  %v6361_v13 = vld [vmem:[#allocation4] sm:$0xff]   ;;  %v6812_v14 = vpack.c.bf16 %v350_v12, %v349_v11  ;;  %v6362_v15 = vld [vmem:[#allocation4 + $0x8] sm:$0xff]   ;;  %v6363_v16 = vld [vmem:[#allocation4 + $0x10] sm:$0xff]   ;;  %v6632_v8 = vmov 1983009808   ;;  %v1537_v11 = vlaneseq }
  0x4f   :  { %v6364_v17 = vld [vmem:[#allocation4 + $0x18] ss:$0 sps:$4 sm:$0xff]   ;;  %v5714_v18 = vld [vmem:[%s7756_s4] ss:$0 sm:$0xff] }
  0x50   :  { %5936 = vmatmul.mubr.msk.bf16.vlgmr.msra.gmra.mrb[0].mxu1 %vm137_vm1, %v6357_v4  ;;  %6249 = vmatpush3.bf16.msra.mxu0 %v6799_v9  ;;  %v5724_v35 = vld [vmem:[%s7759_s7] ss:$0 sm:$0xff] }
  0x51   :  { %5944 = vmatpush3.bf16.msra.mxu1 %v6358_v5  ;;  %5939 = vmatprep.mubr.msk.bf16.mxu1 %vm137_vm1, %v6359_v6 }
  0x52   :  { %6235 = vmatprep.subr.bf16.mxu1 %v6629_v0  ;;  %6250 = vmatprep.subr.bf16.mxu0 %v6629_v0 }
  0x54   :  { %6252 = vmatpush3.bf16.msra.mxu0 %v6812_v14 }
  0x55   :  { %6259 = vmatprep.subr.bf16.mxu0 %v6629_v0 }
  0x58   :  { %5940 = vmatmul.mubr.msk.bf16.gmra.mrb[4].mxu1 %vm137_vm1, %v6360_v10  ;;  %v1535_v10 = vunpack.c.l.s4 %v6632_v8 }
  0x59   :  { %5945 = vmatprep.mubr.msk.bf16.mxu1 %vm137_vm1, %v6361_v13 }
  0x5a   :  { %v1536_v13 = vunpack.c.0.s8 %v1535_v10 }
  0x60   :  { %5946 = vmatmul.mubr.msk.bf16.vlgmr.msra.gmra.mrb[8].mxu1 %vm137_vm1, %v6362_v15  ;;  %v6884_v15 = vshrl.u32 %v1537_v11, 7 }
  0x61   :  { %6237 = vmatpush3.bf16.msra.mxu1 %v6799_v9  ;;  %5949 = vmatprep.mubr.msk.bf16.mxu1 %vm137_vm1, %v6363_v16 }
  0x62   :  { %6238 = vmatprep.subr.bf16.mxu1 %v6629_v0 }
  0x65   :  { %6240 = vmatpush3.bf16.msra.mxu1 %v6812_v14 }
  0x66   :  { %6241 = vmatprep.subr.bf16.mxu1 %v6629_v0 }
  0x68   :  { %5950 = vmatmul.mubr.msk.bf16.gmra.mrb[12].mxu1 %vm137_vm1, %v6364_v17  ;;  %v6889_v17 = vsub.s32 %v1536_v13, %v6884_v15 }
  0x69   :  { %5961 = vmatprep.mubr.msk.f32.mxu1 %vm6630_vm0, %v6631_v1 }
  0x70   :  { %5962 = vmatmul.mubr.f32.vlgmr.msra.gmra.mrb[16].mxu1 %v6631_v1 }
  0x71   :  { %6243 = vmatpush3.bf16.msra.mxu1 %v6799_v9  ;;  %5972 = vmatprep.mubr.msk.f32.mxu1 %vm6630_vm0, %v6631_v1 }
  0x72   :  { %6244 = vmatprep.subr.bf16.mxu1 %v6629_v0 }
  0x75   :  { %6246 = vmatpush3.bf16.msra.mxu1 %v6812_v14 }
  0x76   :  { %6253 = vmatprep.subr.bf16.mxu1 %v6629_v0 }
 0x123   :  { %v5937_v19 = vpop.f32.mrb[0].mxu1 }
 0x124   :  { %v193_v20 = vadd.f32 %v5937_v19, %v5714_v18  ;;  %v184_v21 = vpop.f32.mrb[1].mxu1 }
 0x125   :  { %v185_v22 = vadd.f32 %v5714_v18, %v184_v21  ;;  %v5938_v23 = vpop.f32.mrb[2].mxu1 }
 0x126   :  { %218 = vst.msk [vmem:[#allocation2 + $0x10] sm:$0xff] %vm215_vm2, %v193_v20  ;;  %v196_v24 = vadd.f32 %v5938_v23, %v5714_v18  ;;  %v187_v25 = vpop.f32.mrb[3].mxu1 }
 0x127   :  { %216 = vst.msk [vmem:[#allocation2] sm:$0xff] %vm215_vm2, %v185_v22  ;;  %v188_v26 = vadd.f32 %v5714_v18, %v187_v25 }
 0x128   :  { %219 = vst.msk [vmem:[#allocation2 + $0x18] sm:$0xff] %vm215_vm2, %v196_v24 }
 0x129   :  { %217 = vst.msk [vmem:[#allocation2 + $0x8] sm:$0xff] %vm215_vm2, %v188_v26 }
 0x12b   :  { %v5941_v27 = vpop.f32.mrb[4].mxu1 }
 0x12c   :  { %v209_v28 = vadd.f32 %v5941_v27, %v5714_v18  ;;  %v200_v29 = vpop.f32.mrb[5].mxu1 }
 0x12d   :  { %v201_v30 = vadd.f32 %v5714_v18, %v200_v29  ;;  %v5942_v31 = vpop.f32.mrb[6].mxu1  ;;  %v511_v61 = vld [vmem:[#allocation2 + $0x10] sm:$0xff] }
 0x12e   :  { %222 = vst.msk [vmem:[#allocation2 + $0x30] sm:$0xff] %vm215_vm2, %v209_v28  ;;  %v212_v32 = vadd.f32 %v5942_v31, %v5714_v18  ;;  %v203_v33 = vpop.f32.mrb[7].mxu1  ;;  %v355_v51 = vld [vmem:[#allocation2] sm:$0xff] }
 0x12f   :  { %220 = vst.msk [vmem:[#allocation2 + $0x20] sm:$0xff] %vm215_vm2, %v201_v30  ;;  %v204_v34 = vadd.f32 %v5714_v18, %v203_v33  ;;  %v589_v4 = vld [vmem:[#allocation2 + $0x18] sm:$0xff] }
 0x130   :  { %223 = vst.msk [vmem:[#allocation2 + $0x38] sm:$0xff] %vm215_vm2, %v212_v32  ;;  %v433_v56 = vld [vmem:[#allocation2 + $0x8] sm:$0xff] }
 0x131   :  { %221 = vst.msk [vmem:[#allocation2 + $0x28] sm:$0xff] %vm215_vm2, %v204_v34 }
 0x133   :  { %v5947_v36 = vpop.f32.mrb[8].mxu1 }
 0x134   :  { %v319_v37 = vadd.f32 %v5947_v36, %v5724_v35  ;;  %v310_v38 = vpop.f32.mrb[9].mxu1  ;;  %v352_v36 = vld [vmem:[%s7760_s8 + $0x8] sm:$0xff] }
 0x135   :  { %v311_v39 = vadd.f32 %v5724_v35, %v310_v38  ;;  %v5948_v40 = vpop.f32.mrb[10].mxu1  ;;  %v353_v38 = vld [vmem:[%s7760_s8 + $0x10] sm:$0xff] }
 0x136   :  { %342 = vst.msk [vmem:[#allocation3 + $0x10] sm:$0xff] %vm215_vm2, %v319_v37  ;;  %v322_v41 = vadd.f32 %v5948_v40, %v5724_v35  ;;  %v313_v42 = vpop.f32.mrb[11].mxu1  ;;  %v667_v22 = vld [vmem:[#allocation2 + $0x20] sm:$0xff] }
 0x137   :  { %340 = vst.msk [vmem:[#allocation3] sm:$0xff] %vm215_vm2, %v311_v39  ;;  %v314_v43 = vadd.f32 %v5724_v35, %v313_v42  ;;  %v354_v39 = vld [vmem:[%s7760_s8 + $0x18] sm:$0xff] }
 0x138   :  { %343 = vst.msk [vmem:[#allocation3 + $0x18] sm:$0xff] %vm215_vm2, %v322_v41  ;;  %v745_v27 = vld [vmem:[#allocation2 + $0x28] sm:$0xff]  ;;  %v6934_v40 = vpack.c.bf16 %v354_v39, %v353_v38  ;;  %v901_v41 = vld [vmem:[#allocation2 + $0x38] sm:$0xff] }
 0x139   :  { %341 = vst.msk [vmem:[#allocation3 + $0x8] sm:$0xff] %vm215_vm2, %v314_v43 }
 0x13b   :  { %v5951_v44 = vpop.f32.mrb[12].mxu1 }
 0x13c   :  { %v335_v45 = vadd.f32 %v5951_v44, %v5724_v35  ;;  %v326_v46 = vpop.f32.mrb[13].mxu1 }
 0x13d   :  { %v327_v47 = vadd.f32 %v5724_v35, %v326_v46  ;;  %v5952_v48 = vpop.f32.mrb[14].mxu1  ;;  %v6633_v46 = vmov 1934713408   ;;  %v1134_v13 = vld [vmem:[#allocation3 + $0x10] sm:$0xff] }
 0x13e   :  { %346 = vst.msk [vmem:[#allocation3 + $0x30] sm:$0xff] %vm215_vm2, %v335_v45  ;;  %v329_v49 = vpop.f32.mrb[15].mxu1 }
 0x13f   :  { %344 = vst.msk [vmem:[#allocation3 + $0x20] sm:$0xff] %vm215_vm2, %v327_v47  ;;  %v330_v50 = vadd.f32 %v5724_v35, %v329_v49  ;;  %v351_v35 = vld [vmem:[%s7760_s8] sm:$0xff]  ;;  %v1599_v47 = vunpack.c.l.s4 %v6633_v46  ;;  %s6635_s8 = smov 32  }
 0x140   :  { %v6922_v37 = vpack.c.bf16 %v352_v36, %v351_v35 }
 0x141   :  { %345 = vst.msk [vmem:[#allocation3 + $0x28] sm:$0xff] %vm215_vm2, %v330_v50  ;;  %v1600_v49 = vunpack.c.0.s8 %v1599_v47 }
 0x143   :  { %v425_v52 = vpop.f32.mrb[16].mxu1 }
 0x144   :  { %v429_v53 = vadd.f32 %v425_v52, %v355_v51  ;;  %v5963_v54 = vpop.f32.mrb[17].mxu1 }
 0x145   :  { %v6953_v54 = vsub.s32 %v1600_v49, %v6884_v15  ;;  %v1446_v35 = vld [vmem:[#allocation3 + $0x30] sm:$0xff] }
 0x146   :  { %6383 = vtanh.f32 %v429_v53 }
 0x150   :  { %v6384_v55 = vpop.eup %6383 }
 0x151   :  { %431 = vst.msk [vmem:[#allocation2] sm:$0xff] %vm215_vm2, %v6384_v55  ;;  %5973 = vmatmul.mubr.msk.f32.vlgmr.msra.gmra.mrb[18].mxu1 %vm215_vm2, %v6384_v55 }
 0x152   :  { %6255 = vmatpush3.bf16.msra.mxu1 %v6799_v9  ;;  %5994 = vmatprep.mubr.msk.f32.mxu1 %vm6630_vm0, %v6631_v1 }
 0x153   :  { %6256 = vmatprep.subr.bf16.mxu1 %v6629_v0 }
 0x156   :  { %6258 = vmatpush3.bf16.msra.mxu1 %v6812_v14 }
 0x157   :  { %6265 = vmatprep.subr.bf16.mxu1 %v6629_v0 }
 0x224   :  { %v503_v57 = vpop.f32.mrb[18].mxu1 }
 0x225   :  { %v507_v58 = vadd.f32 %v503_v57, %v433_v56  ;;  %v5974_v59 = vpop.f32.mrb[19].mxu1 }
 0x227   :  { %6385 = vtanh.f32 %v507_v58 }
 0x231   :  { %v6386_v60 = vpop.eup %6385 }
 0x232   :  { %509 = vst.msk [vmem:[#allocation2 + $0x8] sm:$0xff] %vm215_vm2, %v6386_v60  ;;  %5984 = vmatmul.mubr.msk.f32.vlgmr.msra.gmra.mrb[0].mxu0 %vm215_vm2, %v6386_v60 }
 0x233   :  { %6261 = vmatpush3.bf16.msra.mxu0 %v6799_v9  ;;  %6005 = vmatprep.mubr.msk.f32.mxu0 %vm6630_vm0, %v6631_v1 }
 0x234   :  { %6262 = vmatprep.subr.bf16.mxu0 %v6629_v0 }
 0x237   :  { %6264 = vmatpush3.bf16.msra.mxu0 %v6812_v14 }
 0x238   :  { %6271 = vmatprep.subr.bf16.mxu0 %v6629_v0 }
 0x305   :  { %v581_v62 = vpop.f32.mrb[0].mxu0 }
 0x306   :  { %v585_v63 = vadd.f32 %v581_v62, %v511_v61  ;;  %v5985_v2 = vpop.f32.mrb[1].mxu0 }
 0x307   :  { %v978_v2 = vld [vmem:[#allocation3] sm:$0xff] }
 0x308   :  { %6387 = vtanh.f32 %v585_v63 }
 0x312   :  { %v6388_v3 = vpop.eup %6387 }
 0x313   :  { %587 = vst.msk [vmem:[#allocation2 + $0x10] sm:$0xff] %vm215_vm2, %v6388_v3  ;;  %5995 = vmatmul.mubr.msk.f32.vlgmr.msra.gmra.mrb[20].mxu1 %vm215_vm2, %v6388_v3 }
 0x314   :  { %6267 = vmatpush3.bf16.msra.mxu1 %v6799_v9  ;;  %6016 = vmatprep.mubr.msk.f32.mxu1 %vm6630_vm0, %v6631_v1 }
 0x315   :  { %6268 = vmatprep.subr.bf16.mxu1 %v6629_v0 }
 0x318   :  { %6270 = vmatpush3.bf16.msra.mxu1 %v6812_v14 }
 0x319   :  { %6277 = vmatprep.subr.bf16.mxu1 %v6629_v0 }
 0x31a   :  { %v6365_v16 = vld [vmem:[#allocation2] ss:$16 sps:$4 sm:$0xff]  }
 0x31b   :  { %v6893_v19 = vrot.slane %v6365_v16, %v6889_v17 }
 0x3e6   :  { %v659_v5 = vpop.f32.mrb[20].mxu1 }
 0x3e7   :  { %v663_v6 = vadd.f32 %v659_v5, %v589_v4  ;;  %v5996_v7 = vpop.f32.mrb[21].mxu1 }
 0x3e8   :  { %v1056_v7 = vld [vmem:[#allocation3 + $0x8] sm:$0xff] }
 0x3e9   :  { %6389 = vtanh.f32 %v663_v6 }
 0x3f3   :  { %v6390_v12 = vpop.eup %6389 }
 0x3f4   :  { %665 = vst.msk [vmem:[#allocation2 + $0x18] sm:$0xff] %vm215_vm2, %v6390_v12  ;;  %6006 = vmatmul.mubr.msk.f32.vlgmr.msra.gmra.mrb[2].mxu0 %vm215_vm2, %v6390_v12 }
 0x3f5   :  { %6273 = vmatpush3.bf16.msra.mxu0 %v6799_v9  ;;  %6027 = vmatprep.mubr.msk.f32.mxu0 %vm6630_vm0, %v6631_v1 }
 0x3f6   :  { %6274 = vmatprep.subr.bf16.mxu0 %v6629_v0 }
 0x3f9   :  { %6276 = vmatpush3.bf16.msra.mxu0 %v6812_v14 }
 0x3fa   :  { %6283 = vmatprep.subr.bf16.mxu0 %v6629_v0 }
 0x3fb   :  { %v6367_v18 = vld [vmem:[#allocation2 + $0x8] ss:$16 sps:$4 sm:$0xff]  }
 0x3fc   :  { %v6896_v20 = vrot.slane %v6367_v18, %v6889_v17 }
 0x3fe   :  { %v1597_v21 = vcombine.high %v6893_v19, %v6896_v20  ;;  %v1596_v53 = vcombine.low %v6893_v19, %v6896_v20 }
 0x400   :  { %v6956_v57 = vrot.slane %v1596_v53, %v6953_v54  ;;  %v1611_v59 = vrot.slane %v1597_v21, %v6953_v54  ;;  %v1212_v21 = vld [vmem:[#allocation3 + $0x18] sm:$0xff] }
 0x4c7   :  { %v737_v23 = vpop.f32.mrb[2].mxu0 }
 0x4c8   :  { %v741_v24 = vadd.f32 %v737_v23, %v667_v22  ;;  %v6007_v25 = vpop.f32.mrb[3].mxu0 }
 0x4ca   :  { %6391 = vtanh.f32 %v741_v24 }
 0x4d4   :  { %v6392_v26 = vpop.eup %6391 }
 0x4d5   :  { %743 = vst.msk [vmem:[#allocation2 + $0x20] sm:$0xff] %vm215_vm2, %v6392_v26  ;;  %6017 = vmatmul.mubr.msk.f32.vlgmr.msra.gmra.mrb[22].mxu1 %vm215_vm2, %v6392_v26  ;;  %v1290_v26 = vld [vmem:[#allocation3 + $0x20] sm:$0xff] }
 0x4d6   :  { %6279 = vmatpush3.bf16.msra.mxu1 %v6799_v9  ;;  %6038 = vmatprep.mubr.msk.f32.mxu1 %vm6630_vm0, %v6631_v1  ;;  %v823_v9 = vld [vmem:[#allocation2 + $0x30] sm:$0xff] }
 0x4d7   :  { %6280 = vmatprep.subr.bf16.mxu1 %v6629_v0 }
 0x4da   :  { %6282 = vmatpush3.bf16.msra.mxu1 %v6812_v14 }
 0x4db   :  { %6289 = vmatprep.subr.bf16.mxu1 %v6629_v0 }
 0x4dc   :  { %v1528_v46 = vld [vmem:[#allocation2 + $0x20] sm:$0xff] }
 0x5a8   :  { %v815_v28 = vpop.f32.mrb[22].mxu1 }
 0x5a9   :  { %v819_v29 = vadd.f32 %v815_v28, %v745_v27  ;;  %v6018_v30 = vpop.f32.mrb[23].mxu1 }
 0x5ab   :  { %6393 = vtanh.f32 %v819_v29 }
 0x5b5   :  { %v6394_v31 = vpop.eup %6393 }
 0x5b6   :  { %821 = vst.msk [vmem:[#allocation2 + $0x28] sm:$0xff] %vm215_vm2, %v6394_v31  ;;  %6028 = vmatmul.mubr.msk.f32.vlgmr.msra.gmra.mrb[4].mxu0 %vm215_vm2, %v6394_v31 }
 0x5b7   :  { %6049 = vmatprep.mubr.msk.f32.mxu0 %vm6630_vm0, %v6631_v1  ;;  %6285 = vmatpush3.bf16.msra.mxu0 %v6922_v37 }
 0x5b8   :  { %6286 = vmatprep.subr.bf16.mxu0 %v6629_v0 }
 0x5bb   :  { %6288 = vmatpush3.bf16.msra.mxu0 %v6934_v40 }
 0x5bc   :  { %6295 = vmatprep.subr.bf16.mxu0 %v6629_v0 }
 0x689   :  { %v893_v32 = vpop.f32.mrb[4].mxu0 }
 0x68a   :  { %v897_v33 = vadd.f32 %v893_v32, %v823_v9  ;;  %v6029_v34 = vpop.f32.mrb[5].mxu0  ;;  %v1368_v9 = vld [vmem:[#allocation3 + $0x28] sm:$0xff] }
 0x68c   :  { %6395 = vtanh.f32 %v897_v33 }
 0x696   :  { %v6396_v14 = vpop.eup %6395 }
 0x697   :  { %899 = vst.msk [vmem:[#allocation2 + $0x30] sm:$0xff] %vm215_vm2, %v6396_v14  ;;  %6039 = vmatmul.mubr.msk.f32.vlgmr.msra.gmra.mrb[24].mxu1 %vm215_vm2, %v6396_v14 }
 0x698   :  { %6060 = vmatprep.mubr.msk.f32.mxu1 %vm6630_vm0, %v6631_v1  ;;  %6291 = vmatpush3.bf16.msra.mxu1 %v6922_v37 }
 0x699   :  { %6292 = vmatprep.subr.bf16.mxu1 %v6629_v0 }
 0x69c   :  { %6294 = vmatpush3.bf16.msra.mxu1 %v6934_v40 }
 0x69d   :  { %6301 = vmatprep.subr.bf16.mxu1 %v6629_v0 }
 0x69e   :  { %v6369_v48 = vld [vmem:[#allocation2 + $0x20] ss:$16 sps:$4 sm:$0xff]  }
 0x69f   :  { %v1572_v51 = vrot.slane %v6369_v48, %v6889_v17  ;;  %v1524_v48 = vld [vmem:[#allocation2] sm:$0xff] }
 0x76a   :  { %v971_v42 = vpop.f32.mrb[24].mxu1 }
 0x76b   :  { %v975_v43 = vadd.f32 %v971_v42, %v901_v41  ;;  %v6040_v44 = vpop.f32.mrb[25].mxu1  ;;  %v1529_v41 = vld [vmem:[#allocation2 + $0x28] sm:$0xff]  ;;  %v1530_v42 = vld [vmem:[#allocation2 + $0x30] sm:$0xff] }
 0x76c   :  { %v1526_v44 = vld [vmem:[#allocation2 + $0x10] sm:$0xff]  ;;  %v1565_v49 = vcombine.high %v1528_v46, %v1530_v42 }
 0x76d   :  { %6397 = vtanh.f32 %v975_v43  ;;  %v1525_v43 = vld [vmem:[#allocation2 + $0x8] sm:$0xff] }
 0x777   :  { %v6398_v45 = vpop.eup %6397 }
 0x778   :  { %977 = vst.msk [vmem:[#allocation2 + $0x38] sm:$0xff] %vm215_vm2, %v6398_v45  ;;  %6050 = vmatmul.mubr.msk.f32.vlgmr.msra.gmra.mrb[6].mxu0 %vm215_vm2, %v6398_v45 }
 0x779   :  { %6297 = vmatpush3.bf16.msra.mxu0 %v6922_v37  ;;  %6071 = vmatprep.mubr.msk.f32.mxu0 %vm6630_vm0, %v6631_v1 }
 0x77a   :  { %6298 = vmatprep.subr.bf16.mxu0 %v6629_v0 }
 0x77d   :  { %6300 = vmatpush3.bf16.msra.mxu0 %v6934_v40 }
 0x77e   :  { %6307 = vmatprep.subr.bf16.mxu0 %v6629_v0 }
 0x77f   :  { %v6371_v50 = vld [vmem:[#allocation2 + $0x28] ss:$16 sps:$4 sm:$0xff]  }
 0x780   :  { %v1588_v52 = vrot.slane %v6371_v50, %v6889_v17  ;;  %v1531_v39 = vld [vmem:[#allocation2 + $0x38] sm:$0xff]  ;;  %v1533_v50 = vcombine.high %v1524_v48, %v1526_v44 }
 0x781   :  { %v1581_v45 = vcombine.high %v1529_v41, %v1531_v39 }
 0x782   :  { %v1628_v55 = vcombine.low %v1572_v51, %v1588_v52  ;;  %v1629_v56 = vcombine.high %v1572_v51, %v1588_v52 }
 0x783   :  { %v1595_v51 = vrot.slane %v1581_v45, %v6889_v17 }
 0x784   :  { %v6959_v58 = vrot.slane %v1628_v55, %v6953_v54  ;;  %v1643_v60 = vrot.slane %v1629_v56, %v6953_v54  ;;  %v1579_v56 = vrot.slane %v1565_v49, %v6889_v17 }
 0x786   :  { %v6966_v61 = vcombine.low %v1611_v59, %v1643_v60  ;;  %v6970_v62 = vcombine.high %v6956_v57, %v6959_v58  ;;  %v6972_v63 = vcombine.high %v1611_v59, %v1643_v60  ;;  %v7008_v31 = vcombine.low %v6956_v57, %v6959_v58 }
 0x787   :  { %v1547_v58 = vrot.slane %v1533_v50, %v6889_v17 }
 0x84b   :  { %v1048_v3 = vpop.f32.mrb[6].mxu0 }
 0x84c   :  { %v1052_v4 = vadd.f32 %v1048_v3, %v978_v2  ;;  %v6051_v5 = vpop.f32.mrb[7].mxu0  ;;  %v1644_v2 = vcombine.low %v1579_v56, %v1595_v51 }
 0x84d   :  { %v6634_v5 = vmov 1966171168  }
 0x84e   :  { %6399 = vtanh.f32 %v1052_v4 }
 0x858   :  { %v6400_v6 = vpop.eup %6399 }
 0x859   :  { %1054 = vst.msk [vmem:[#allocation3] sm:$0xff] %vm215_vm2, %v6400_v6  ;;  %6061 = vmatmul.mubr.msk.f32.vlgmr.msra.gmra.mrb[26].mxu1 %vm215_vm2, %v6400_v6  ;;  %v1814_v6 = vunpack.c.l.s4 %v6634_v5 }
 0x85a   :  { %6303 = vmatpush3.bf16.msra.mxu1 %v6922_v37  ;;  %6082 = vmatprep.mubr.msk.f32.mxu1 %vm6630_vm0, %v6631_v1 }
 0x85b   :  { %6304 = vmatprep.subr.bf16.mxu1 %v6629_v0 }
 0x85e   :  { %6306 = vmatpush3.bf16.msra.mxu1 %v6934_v40 }
 0x85f   :  { %6313 = vmatprep.subr.bf16.mxu1 %v6629_v0 }
 0x92c   :  { %v1126_v8 = vpop.f32.mrb[26].mxu1 }
 0x92d   :  { %v1130_v10 = vadd.f32 %v1126_v8, %v1056_v7  ;;  %v6062_v11 = vpop.f32.mrb[27].mxu1 }
 0x92f   :  { %6401 = vtanh.f32 %v1130_v10 }
 0x939   :  { %v6402_v12 = vpop.eup %6401 }
 0x93a   :  { %1132 = vst.msk [vmem:[#allocation3 + $0x8] sm:$0xff] %vm215_vm2, %v6402_v12  ;;  %6072 = vmatmul.mubr.msk.f32.vlgmr.msra.gmra.mrb[8].mxu0 %vm215_vm2, %v6402_v12 }
 0x93b   :  { %6309 = vmatpush3.bf16.msra.mxu0 %v6922_v37  ;;  %6093 = vmatprep.mubr.msk.f32.mxu0 %vm6630_vm0, %v6631_v1 }
 0x93c   :  { %6310 = vmatprep.subr.bf16.mxu0 %v6629_v0 }
 0x93f   :  { %6312 = vmatpush3.bf16.msra.mxu0 %v6934_v40 }
 0x940   :  { %6319 = vmatprep.subr.bf16.mxu0 %v6629_v0 }
 0xa0d   :  { %v1204_v16 = vpop.f32.mrb[8].mxu0 }
 0xa0e   :  { %v1208_v18 = vadd.f32 %v1204_v16, %v1134_v13  ;;  %v6073_v19 = vpop.f32.mrb[9].mxu0  ;;  %v1652_v13 = vrot.slane %v1644_v2, %v6953_v54 }
 0xa10   :  { %6403 = vtanh.f32 %v1208_v18  ;;  %v1645_v18 = vcombine.high %v1579_v56, %v1595_v51 }
 0xa1a   :  { %v6404_v20 = vpop.eup %6403 }
 0xa1b   :  { %1210 = vst.msk [vmem:[#allocation3 + $0x10] sm:$0xff] %vm215_vm2, %v6404_v20  ;;  %6083 = vmatmul.mubr.msk.f32.vlgmr.msra.gmra.mrb[28].mxu1 %vm215_vm2, %v6404_v20 }
 0xa1c   :  { %6315 = vmatpush3.bf16.msra.mxu1 %v6922_v37  ;;  %6104 = vmatprep.mubr.msk.f32.mxu1 %vm6630_vm0, %v6631_v1 }
 0xa1d   :  { %6316 = vmatprep.subr.bf16.mxu1 %v6629_v0 }
 0xa20   :  { %6318 = vmatpush3.bf16.msra.mxu1 %v6934_v40 }
 0xa21   :  { %6118 = vmatprep.subr.mxu1 %v6631_v1 }
 0xa22   :  { %v6373_v60 = vld [vmem:[#allocation3] ss:$16 sps:$4 sm:$0xff]   ;;  %v6379_v3 = vld [vmem:[#allocation3 + $0x4] ss:$16 sps:$4 sm:$0xff]  }
 0xa23   :  { %v1683_v12 = vrot.slane %v6373_v60, %v6889_v17  ;;  %v1690_v16 = vrot.slane %v6379_v3, %v6889_v17 }
 0xaee   :  { %v1282_v22 = vpop.f32.mrb[28].mxu1 }
 0xaef   :  { %v1286_v23 = vadd.f32 %v1282_v22, %v1212_v21  ;;  %v6084_v24 = vpop.f32.mrb[29].mxu1  ;;  %v1815_v22 = vunpack.c.0.s8 %v1814_v6 }
 0xaf1   :  { %6405 = vtanh.f32 %v1286_v23 }
 0xafb   :  { %v6406_v25 = vpop.eup %6405 }
 0xafc   :  { %1288 = vst.msk [vmem:[#allocation3 + $0x18] sm:$0xff] %vm215_vm2, %v6406_v25  ;;  %6094 = vmatmul.mubr.msk.f32.vlgmr.msra.gmra.mrb[10].mxu0 %vm215_vm2, %v6406_v25 }
 0xafd   :  { %6321 = vmatpush3.bf16.msra.mxu0 %v6922_v37  ;;  %6115 = vmatprep.mubr.msk.f32.mxu0 %vm6630_vm0, %v6631_v1 }
 0xafe   :  { %6322 = vmatprep.subr.bf16.mxu0 %v6629_v0 }
 0xb01   :  { %6324 = vmatpush3.bf16.msra.mxu0 %v6934_v40  ;;  %v1527_v40 = vld [vmem:[#allocation2 + $0x18] sm:$0xff] }
 0xb02   :  { %6128 = vmatprep.subr.mxu0 %v6631_v1  ;;  %v1549_v47 = vcombine.high %v1525_v43, %v1527_v40 }
 0xb03   :  { %v6375_v55 = vld [vmem:[#allocation3 + $0x8] ss:$16 sps:$4 sm:$0xff]   ;;  %v6380_v57 = vld [vmem:[#allocation3 + $0xc] ss:$16 sps:$4 sm:$0xff]  }
 0xb04   :  { %v1563_v53 = vrot.slane %v1549_v47, %v6889_v17  ;;  %v1699_v7 = vrot.slane %v6375_v55, %v6889_v17  ;;  %v1706_v8 = vrot.slane %v6380_v57, %v6889_v17 }
 0xb06   :  { %v1612_v4 = vcombine.low %v1547_v58, %v1563_v53  ;;  %v1613_v11 = vcombine.high %v1547_v58, %v1563_v53  ;;  %v1738_v23 = vcombine.low %v1683_v12, %v1699_v7  ;;  %v1739_v24 = vcombine.high %v1683_v12, %v1699_v7 }
 0xb07   :  { %v1754_v25 = vcombine.low %v1690_v16, %v1706_v8 }
 0xb08   :  { %v1620_v20 = vrot.slane %v1612_v4, %v6953_v54  ;;  %v1753_v39 = vrot.slane %v1739_v24, %v6953_v54 }
 0xb09   :  { %v1762_v40 = vrot.slane %v1754_v25, %v6953_v54 }
 0xb0a   :  { %v7063_v46 = vcombine.high %v1620_v20, %v1652_v13 }
 0xbcf   :  { %v1360_v27 = vpop.f32.mrb[10].mxu0 }
 0xbd0   :  { %v1364_v28 = vadd.f32 %v1360_v27, %v1290_v26  ;;  %v6095_v29 = vpop.f32.mrb[11].mxu0 }
 0xbd2   :  { %6407 = vtanh.f32 %v1364_v28 }
 0xbdc   :  { %v6408_v30 = vpop.eup %6407 }
 0xbdd   :  { %1366 = vst.msk [vmem:[#allocation3 + $0x20] sm:$0xff] %vm215_vm2, %v6408_v30  ;;  %6105 = vmatmul.mubr.msk.f32.vlgmr.msra.gmra.mrb[30].mxu1 %vm215_vm2, %v6408_v30  ;;  %v7041_v30 = vcombine.low %v1620_v20, %v1652_v13 }
 0xbde   :  { %6119 = vmatpush3.xpose.msk.msra.mxu1 %vm215_vm2, %v7008_v31  ;;  %6120 = vmatprep.mubr.msk.f32.mxu1 %vm6630_vm0, %v6631_v1 }
 0xbdf   :  { %6123 = vmatprep.subr.mxu1 %v6631_v1 }
 0xcb0   :  { %v1438_v32 = vpop.f32.mrb[30].mxu1 }
 0xcb1   :  { %v1442_v33 = vadd.f32 %v1438_v32, %v1368_v9  ;;  %v6106_v34 = vpop.f32.mrb[31].mxu1  ;;  %v1627_v9 = vrot.slane %v1613_v11, %v6953_v54  ;;  %v1659_v32 = vrot.slane %v1645_v18, %v6953_v54 }
 0xcb3   :  { %6409 = vtanh.f32 %v1442_v33  ;;  %v1755_v33 = vcombine.high %v1690_v16, %v1706_v8  ;;  %v7061_v45 = vcombine.low %v1627_v9, %v1659_v32  ;;  %v7066_v48 = vcombine.high %v1627_v9, %v1659_v32 }
 0xcb5   :  { %v1769_v47 = vrot.slane %v1755_v33, %v6953_v54 }
 0xcbd   :  { %v6410_v14 = vpop.eup %6409 }
 0xcbe   :  { %1444 = vst.msk [vmem:[#allocation3 + $0x28] sm:$0xff] %vm215_vm2, %v6410_v14  ;;  %6116 = vmatmul.mubr.msk.f32.vlgmr.msra.gmra.mrb[12].mxu0 %vm215_vm2, %v6410_v14 }
 0xcbf   :  { %6129 = vmatpush3.xpose.msk.msra.mxu0 %vm215_vm2, %v6966_v61  ;;  %6130 = vmatprep.mubr.msk.f32.mxu0 %vm6630_vm0, %v6631_v1 }
 0xcc0   :  { %6138 = vmatprep.subr.mxu0 %v6631_v1 }
 0xcc5   :  { %v1673_v59 = vld [vmem:[#allocation3 + $0x28] sm:$0xff] }
 0xcc6   :  { %v1723_v10 = vcombine.high %v1673_v59, %v6631_v1  ;;  %v1730_v27 = vrot.slane %v1673_v59, %v6889_v17 }
 0xcc8   :  { %v1737_v29 = vrot.slane %v1723_v10, %v6889_v17 }
 0xd91   :  { %v1516_v36 = vpop.f32.mrb[12].mxu0 }
 0xd92   :  { %v1520_v37 = vadd.f32 %v1516_v36, %v1446_v35  ;;  %v6117_v38 = vpop.f32.mrb[13].mxu0 }
 0xd93   :  { %v1746_v38 = vrot.slane %v1738_v23, %v6953_v54 }
 0xd94   :  { %6411 = vtanh.f32 %v1520_v37  ;;  %v7046_v37 = vsub.s32 %v1815_v22, %v6884_v15 }
 0xd9e   :  { %v6412_v52 = vpop.eup %6411 }
 0xd9f   :  { %1522 = vst.msk [vmem:[#allocation3 + $0x30] sm:$0xff] %vm215_vm2, %v6412_v52  ;;  %1523 = vst.msk [vmem:[#allocation15] sm:$0xff] %vm215_vm2, %v6412_v52 }
 0xda6   :  { %v6377_v19 = vld [vmem:[#allocation3 + $0x20] ss:$16 sps:$4 sm:$0xff]   ;;  %v6381_v21 = vld [vmem:[#allocation3 + $0x24] ss:$16 sps:$4 sm:$0xff]  }
 0xda7   :  { %v1715_v26 = vrot.slane %v6377_v19, %v6889_v17  ;;  %v1722_v28 = vrot.slane %v6381_v21, %v6889_v17 }
 0xda9   :  { %v1770_v34 = vcombine.low %v1715_v26, %v1730_v27  ;;  %v1771_v14 = vcombine.high %v1715_v26, %v1730_v27  ;;  %v1786_v35 = vcombine.low %v1722_v28, %v1737_v29  ;;  %v1787_v36 = vcombine.high %v1722_v28, %v1737_v29 }
 0xdab   :  { %v1778_v41 = vrot.slane %v1770_v34, %v6953_v54  ;;  %v7053_v42 = vrot.slane %v1771_v14, %v6953_v54  ;;  %v7056_v43 = vrot.slane %v1786_v35, %v6953_v54  ;;  %v7059_v44 = vrot.slane %v1787_v36, %v6953_v54 }
 0xdad   :  { %v1802_v49 = vcombine.low %v1746_v38, %v1778_v41  ;;  %v1804_v50 = vcombine.low %v1753_v39, %v7053_v42  ;;  %v1803_v51 = vcombine.high %v1746_v38, %v1778_v41  ;;  %v1806_v52 = vcombine.low %v1762_v40, %v7056_v43 }
 0xdae   :  { %v1805_v53 = vcombine.high %v1753_v39, %v7053_v42  ;;  %v1808_v55 = vcombine.low %v1769_v47, %v7059_v44  ;;  %v1807_v56 = vcombine.high %v1762_v40, %v7056_v43  ;;  %v7074_v57 = vcombine.high %v1769_v47, %v7059_v44 }
 0xdaf   :  { %6121 = vmatmul.mubr.msk.f32.vlgmr.msra.gmra.mrb[32].mxu1 %vm215_vm2, %v1802_v49  ;;  %v3582_v58 = vrot.slane %v1802_v49, %v7046_v37  ;;  %6131 = vmatmul.mubr.msk.f32.vlgmr.msra.gmra.mrb[14].mxu0 %vm215_vm2, %v1804_v50  ;;  %v3678_v59 = vrot.slane %v1804_v50, %v7046_v37  ;;  %v3630_v60 = vrot.slane %v1803_v51, %v7046_v37 }
 0xdb0   :  { %6124 = vmatpush3.xpose.msk.msra.mxu1 %vm215_vm2, %v6970_v62  ;;  %6139 = vmatpush3.xpose.msk.msra.mxu0 %vm215_vm2, %v7041_v30  ;;  %v7086_v2 = vrot.slane %v1806_v52, %v7046_v37  ;;  %v7089_v3 = vrot.slane %v1805_v53, %v7046_v37  ;;  %v7092_v4 = vrot.slane %v1808_v55, %v7046_v37 }
 0xdb1   :  { %6125 = vmatprep.mubr.msk.f32.mxu1 %vm6630_vm0, %v6631_v1  ;;  %6133 = vmatprep.subr.mxu1 %v6631_v1  ;;  %v7098_v5 = vrot.slane %v1807_v56, %v7046_v37  ;;  %v7102_v6 = vrot.slane %v7074_v57, %v7046_v37  ;;  %v5773_v7 = vcombine.high %v1778_v41, %v1778_v41 }
 0xdb2   :  { %6140 = vmatprep.mubr.msk.f32.mxu0 %vm6630_vm0, %v6631_v1  ;;  %6148 = vmatprep.subr.mxu0 %v6631_v1  ;;  %v3638_v8 = vcombine.high %v3630_v60, %v3630_v60  ;;  %v3646_v10 = vrot.slane %v3630_v60, %v7046_v37  ;;  %v3686_v11 = vcombine.high %v3678_v59, %v3678_v59 }
 0xdb3   :  { %6126 = vmatmul.mubr.msk.f32.vlgmr.msra.gmra.mrb[34].mxu1 %vm215_vm2, %v1803_v51  ;;  %6141 = vmatmul.mubr.msk.f32.vlgmr.msra.gmra.mrb[16].mxu0 %vm215_vm2, %v1806_v52  ;;  %v3637_v12 = vrot.slane %v5773_v7, %v7046_v37  ;;  %v7112_v13 = vrot.slane %v3678_v59, %v7046_v37  ;;  %v5772_v16 = vcombine.low %v1778_v41, %v1778_v41 }
 0xdb4   :  { %6134 = vmatpush3.xpose.msk.msra.mxu1 %vm215_vm2, %v6972_v63  ;;  %6149 = vmatpush3.xpose.msk.msra.mxu0 %vm215_vm2, %v7061_v45  ;;  %v3660_v18 = vrot.slane %v3638_v8, %v7046_v37  ;;  %v3668_v19 = vcombine.high %v3646_v10, %v3646_v10  ;;  %v7120_v20 = vrot.slane %v3686_v11, %v7046_v37 }
 0xdb5   :  { %6135 = vmatprep.mubr.msk.f32.mxu1 %vm6630_vm0, %v6631_v1  ;;  %6143 = vmatprep.subr.mxu1 %v6631_v1  ;;  %v3639_v21 = vcombine.high %v3637_v12, %v3637_v12  ;;  %v3653_v22 = vrot.slane %v3637_v12, %v7046_v37  ;;  %v3589_v23 = vrot.slane %v5772_v16, %v7046_v37 }
 0xdb6   :  { %6150 = vmatprep.mubr.msk.f32.mxu0 %vm6630_vm0, %v6631_v1  ;;  %6158 = vmatprep.subr.mxu0 %v6631_v1  ;;  %v3670_v24 = vcombine.high %v3660_v18, %v3660_v18  ;;  %v4358_v25 = vcombine.low %v3660_v18, %v3668_v19  ;;  %v4361_v26 = vcombine.low %v7112_v13, %v7120_v20 }
 0xdb7   :  { %6136 = vmatmul.mubr.msk.f32.vlgmr.msra.gmra.mrb[36].mxu1 %vm215_vm2, %v1805_v53  ;;  %6151 = vmatmul.mubr.msk.f32.vlgmr.msra.gmra.mrb[18].mxu0 %vm215_vm2, %v1808_v55  ;;  %v3667_v27 = vrot.slane %v3639_v21, %v7046_v37  ;;  %v3669_v28 = vcombine.high %v3653_v22, %v3653_v22  ;;  %v3590_v29 = vcombine.high %v3582_v58, %v3582_v58 }
 0xdb8   :  { %6144 = vmatpush3.xpose.msk.msra.mxu1 %vm215_vm2, %v7063_v46  ;;  %6159 = vmatpush3.msra.mxu0 %v7008_v31  ;;  %v4359_v9 = vcombine.low %v3670_v24, %v3653_v22  ;;  %v4368_v32 = vrot.slane %v4358_v25, %v7046_v37  ;;  %v4389_v33 = vrot.slane %v4361_v26, %v7046_v37 }
 0xdb9   :  { %6145 = vmatprep.mubr.msk.f32.mxu1 %vm6630_vm0, %v6631_v1  ;;  %6153 = vmatprep.subr.mxu1 %v6631_v1  ;;  %v4360_v34 = vcombine.low %v3667_v27, %v3669_v28  ;;  %v3591_v14 = vcombine.high %v3589_v23, %v3589_v23  ;;  %v3598_v35 = vrot.slane %v3582_v58, %v7046_v37 }
 0xdba   :  { %v4375_v36 = vrot.slane %v4359_v9, %v7046_v37  ;;  %v3605_v38 = vrot.slane %v3589_v23, %v7046_v37  ;;  %v3612_v31 = vrot.slane %v3590_v29, %v7046_v37  ;;  %v5774_v39 = vcombine.low %v7053_v42, %v7053_v42  ;;  %6160 = vmatprep.mubr.msk.f32.mxu0 %vm6630_vm0, %v6631_v1 }
 0xdbb   :  { %6146 = vmatmul.mubr.msk.f32.vlgmr.msra.gmra.mrb[38].mxu1 %vm215_vm2, %v1807_v56  ;;  %v4382_v40 = vrot.slane %v4360_v34, %v7046_v37  ;;  %v3619_v41 = vrot.slane %v3591_v14, %v7046_v37  ;;  %v3734_v47 = vcombine.high %v7089_v3, %v7089_v3  ;;  %v3742_v49 = vrot.slane %v7089_v3, %v7046_v37 }
 0xdbc   :  { %6154 = vmatpush3.xpose.msk.msra.mxu1 %vm215_vm2, %v7066_v48  ;;  %6155 = vmatprep.mubr.msk.f32.mxu1 %vm6630_vm0, %v6631_v1  ;;  %v4390_v50 = vcombine.low %v4368_v32, %v4375_v36  ;;  %v3621_v51 = vcombine.high %v3605_v38, %v3605_v38  ;;  %v4309_v52 = vcombine.low %v3598_v35, %v3612_v31 }
 0xdbd   :  { %6163 = vmatprep.subr.mxu1 %v6631_v1  ;;  %v4391_v53 = vcombine.low %v4382_v40, %v4389_v33  ;;  %v5784_v55 = vcombine.high %v3598_v35, %v3612_v31  ;;  %v4311_v56 = vcombine.low %v3605_v38, %v3619_v41  ;;  %v3685_v58 = vrot.slane %v5774_v39, %v7046_v37 }
 0xdbe   :  { %v4398_v59 = vrot.slane %v4390_v50, %v7046_v37  ;;  %v4312_v60 = vcombine.low %v3621_v51, %v3646_v10  ;;  %v4319_v3 = vrot.slane %v4309_v52, %v7046_v37  ;;  %v7167_v7 = vrot.slane %v3734_v47, %v7046_v37  ;;  %6168 = vmatprep.subr.mxu0 %v6631_v1 }
 0xdbf   :  { %6156 = vmatmul.mubr.msk.f32.vlgmr.msra.gmra.mrb[40].mxu1 %vm215_vm2, %v7074_v57  ;;  %v4405_v8 = vrot.slane %v4391_v53, %v7046_v37  ;;  %v4326_v11 = vrot.slane %v5784_v55, %v7046_v37  ;;  %v4333_v12 = vrot.slane %v4311_v56, %v7046_v37  ;;  %v3687_v16 = vcombine.high %v3685_v58, %v3685_v58 }
 0xdc0   :  { %6164 = vmatpush3.msra.mxu1 %v6970_v62  ;;  %v4340_v10 = vrot.slane %v4312_v60, %v7046_v37  ;;  %v3701_v18 = vrot.slane %v3685_v58, %v7046_v37  ;;  %v3764_v19 = vcombine.high %v3742_v49, %v3742_v49  ;;  %v5785_v21 = vcombine.high %v7112_v13, %v7120_v20 }
 0xdc1   :  { %v7180_v22 = vcombine.low %v4398_v59, %v4405_v8  ;;  %v4341_v57 = vcombine.low %v4319_v3, %v4326_v11  ;;  %v3715_v23 = vrot.slane %v3687_v16, %v7046_v37  ;;  %v5776_v24 = vcombine.low %v7056_v43, %v7056_v43  ;;  %6165 = vmatprep.mubr.msk.f32.mxu1 %vm6630_vm0, %v6631_v1 }
 0xdc2   :  { %v4342_v62 = vcombine.low %v4333_v12, %v4340_v10  ;;  %v3717_v25 = vcombine.high %v3701_v18, %v3701_v18  ;;  %v4410_v26 = vcombine.low %v7167_v7, %v3764_v19  ;;  %v4417_v27 = vrot.slane %v5785_v21, %v7046_v37  ;;  %6173 = vmatprep.subr.mxu1 %v6631_v1 }
 0xdc3   :  { %v4349_v13 = vrot.slane %v4341_v57, %v7046_v37  ;;  %v4408_v20 = vcombine.low %v3701_v18, %v3715_v23  ;;  %v3781_v28 = vrot.slane %v5776_v24, %v7046_v37  ;;  %v5777_v29 = vcombine.high %v7056_v43, %v7056_v43 }
 0xdc4   :  { %v4356_v9 = vrot.slane %v4342_v62, %v7046_v37  ;;  %v4409_v32 = vcombine.low %v3717_v25, %v3742_v49  ;;  %v4438_v33 = vrot.slane %v4410_v26, %v7046_v37  ;;  %v3830_v34 = vcombine.high %v7098_v5, %v7098_v5 }
 0xdc5   :  { %v4424_v14 = vrot.slane %v4408_v20, %v7046_v37  ;;  %v3783_v35 = vcombine.high %v3781_v28, %v3781_v28  ;;  %v3797_v36 = vrot.slane %v3781_v28, %v7046_v37  ;;  %v7201_v38 = vrot.slane %v5777_v29, %v7046_v37 }
 0xdc6   :  { %v7203_v31 = vcombine.low %v4349_v13, %v4356_v9  ;;  %v4431_v43 = vrot.slane %v4409_v32, %v7046_v37  ;;  %v3838_v39 = vrot.slane %v7098_v5, %v7046_v37  ;;  %v3852_v40 = vrot.slane %v3830_v34, %v7046_v37 }
 0xdc7   :  { %v4439_v41 = vcombine.low %v4417_v27, %v4424_v14  ;;  %v3811_v47 = vrot.slane %v3783_v35, %v7046_v37  ;;  %v3813_v49 = vcombine.high %v3797_v36, %v3797_v36  ;;  %v7212_v50 = vrot.slane %v7201_v38, %v7046_v37 }
 0xdc8   :  { %v4440_v51 = vcombine.low %v4431_v43, %v4438_v33  ;;  %v3860_v52 = vcombine.high %v3838_v39, %v3838_v39  ;;  %v3862_v53 = vcombine.high %v3852_v40, %v3852_v40  ;;  %v5775_v55 = vcombine.high %v7053_v42, %v7053_v42 }
 0xdc9   :  { %v4447_v56 = vrot.slane %v4439_v41, %v7046_v37  ;;  %v4505_v58 = vcombine.low %v3797_v36, %v3811_v47  ;;  %v4506_v5 = vcombine.low %v3813_v49, %v3838_v39  ;;  %v3766_v59 = vcombine.high %v7167_v7, %v7167_v7 }
 0xdca   :  { %v4454_v60 = vrot.slane %v4440_v51, %v7046_v37  ;;  %v4507_v3 = vcombine.low %v3852_v40, %v3860_v52  ;;  %v4508_v8 = vcombine.low %v3862_v53, %v7212_v50  ;;  %v3733_v11 = vrot.slane %v5775_v55, %v7046_v37 }
 0xdcb   :  { %v4515_v12 = vrot.slane %v4505_v58, %v7046_v37  ;;  %v4522_v16 = vrot.slane %v4506_v5, %v7046_v37  ;;  %v3782_v42 = vcombine.high %v7086_v2, %v7086_v2  ;;  %v3790_v10 = vrot.slane %v7086_v2, %v7046_v37 }
 0xdcc   :  { %v7228_v18 = vcombine.low %v4447_v56, %v4454_v60  ;;  %v4529_v7 = vrot.slane %v4507_v3, %v7046_v37  ;;  %v4536_v19 = vrot.slane %v4508_v8, %v7046_v37  ;;  %v3735_v21 = vcombine.high %v3733_v11, %v3733_v11 }
 0xdcd   :  { %v4537_v57 = vcombine.low %v4515_v12, %v4522_v16  ;;  %v3749_v23 = vrot.slane %v3733_v11, %v7046_v37  ;;  %v3804_v24 = vrot.slane %v3782_v42, %v7046_v37  ;;  %v5778_v62 = vcombine.low %v7059_v44, %v7059_v44 }
 0xdce   :  { %v4538_v25 = vcombine.low %v4529_v7, %v4536_v19  ;;  %v3763_v26 = vrot.slane %v3735_v21, %v7046_v37  ;;  %v5779_v2 = vcombine.high %v7059_v44, %v7059_v44  ;;  %v3926_v27 = vcombine.high %v7102_v6, %v7102_v6 }
 0xdcf   :  { %v4545_v13 = vrot.slane %v4537_v57, %v7046_v37  ;;  %v3765_v20 = vcombine.high %v3749_v23, %v3749_v23  ;;  %v4456_v28 = vcombine.low %v3766_v59, %v3749_v23  ;;  %v4458_v29 = vcombine.low %v3790_v10, %v3804_v24 }
 0xdd0   :  { %v4552_v9 = vrot.slane %v4538_v25, %v7046_v37  ;;  %v5786_v32 = vcombine.high %v3790_v10, %v3804_v24  ;;  %v3877_v33 = vrot.slane %v5778_v62, %v7046_v37  ;;  %v3925_v34 = vrot.slane %v5779_v2, %v7046_v37 }
 0xdd1   :  { %v4457_v14 = vcombine.low %v3763_v26, %v3765_v20  ;;  %v4466_v35 = vrot.slane %v4456_v28, %v7046_v37  ;;  %v4480_v44 = vrot.slane %v4458_v29, %v7046_v37  ;;  %v3934_v36 = vrot.slane %v7102_v6, %v7046_v37 }
 0xdd2   :  { %v7249_v43 = vcombine.low %v4545_v13, %v4552_v9  ;;  %v4487_v39 = vrot.slane %v5786_v32, %v7046_v37  ;;  %v3893_v40 = vrot.slane %v3877_v33, %v7046_v37  ;;  %v3927_v41 = vcombine.high %v3925_v34, %v3925_v34 }
 0xdd3   :  { %v4473_v47 = vrot.slane %v4457_v14, %v7046_v37  ;;  %v3941_v49 = vrot.slane %v3925_v34, %v7046_v37  ;;  %v3948_v51 = vrot.slane %v3926_v27, %v7046_v37  ;;  %v3956_v52 = vcombine.high %v3934_v36, %v3934_v36 }
 0xdd4   :  { %v4489_v53 = vcombine.low %v4480_v44, %v4487_v39  ;;  %v3909_v55 = vcombine.high %v3893_v40, %v3893_v40  ;;  %v3955_v56 = vrot.slane %v3927_v41, %v7046_v37  ;;  %v3831_v6 = vcombine.high %v7201_v38, %v7201_v38  ;;  %v1810_v41 = vld [vmem:[#allocation7] sm:$0xff] }
 0xdd5   :  { %v4488_v58 = vcombine.low %v4466_v35, %v4473_v47  ;;  %v3957_v5 = vcombine.high %v3941_v49, %v3941_v49  ;;  %v3958_v59 = vcombine.high %v3948_v51, %v3948_v51  ;;  %v4604_v60 = vcombine.low %v3948_v51, %v3956_v52 }
 0xdd6   :  { %v4503_v3 = vrot.slane %v4489_v53, %v7046_v37  ;;  %v4603_v8 = vcombine.low %v3909_v55, %v3934_v36  ;;  %v3859_v11 = vrot.slane %v3831_v6, %v7046_v37  ;;  %v3861_v12 = vcombine.high %v7212_v50, %v7212_v50 }
 0xdd7   :  { %v4496_v16 = vrot.slane %v4488_v58, %v7046_v37  ;;  %v4605_v42 = vcombine.low %v3958_v59, %v3941_v49  ;;  %v4606_v10 = vcombine.low %v3955_v56, %v3957_v5  ;;  %v4620_v7 = vrot.slane %v4604_v60, %v7046_v37 }
 0xdd8   :  { %v4613_v38 = vrot.slane %v4603_v8, %v7046_v37  ;;  %v3878_v19 = vcombine.high %v7092_v4, %v7092_v4  ;;  %v3879_v21 = vcombine.high %v3877_v33, %v3877_v33  ;;  %v4554_v62 = vcombine.low %v3859_v11, %v3861_v12 }
 0xdd9   :  { %v7268_v57 = vcombine.low %v4496_v16, %v4503_v3  ;;  %v4627_v23 = vrot.slane %v4605_v42, %v7046_v37  ;;  %v4634_v24 = vrot.slane %v4606_v10, %v7046_v37  ;;  %v3886_v25 = vrot.slane %v7092_v4, %v7046_v37 }
 0xdda   :  { %v4635_v50 = vcombine.low %v4613_v38, %v4620_v7  ;;  %v3900_v26 = vrot.slane %v3878_v19, %v7046_v37  ;;  %v3907_v2 = vrot.slane %v3879_v21, %v7046_v37  ;;  %v4564_v29 = vrot.slane %v4554_v62, %v7046_v37 }
 0xddb   :  { %v4636_v27 = vcombine.low %v4627_v23, %v4634_v24  ;;  %v1819_v47 = vrot.slane %v1810_v41, %v7046_v37  ;;  %v1812_v51 = vcombine.high %v1810_v41, %v1810_v41  ;;  %v1863_v53 = vsub.s32 0, %v6884_v15 }
 0xddc   :  { %v4555_v13 = vcombine.low %v3886_v25, %v3900_v26  ;;  %v5787_v20 = vcombine.high %v3886_v25, %v3900_v26  ;;  %v4557_v28 = vcombine.low %v3893_v40, %v3907_v2  ;;  %v4643_v9 = vrot.slane %v4635_v50, %v7046_v37 }
 0xddd   :  { %v4650_v32 = vrot.slane %v4636_v27, %v7046_v37  ;;  %v1835_v49 = vrot.slane %v1819_v47, %v7046_v37  ;;  %v1827_v52 = vcombine.high %v1819_v47, %v1819_v47  ;;  %v1826_v56 = vrot.slane %v1812_v51, %v7046_v37 }
 0xdde   :  { %v4571_v33 = vrot.slane %v4555_v13, %v7046_v37  ;;  %v4578_v34 = vrot.slane %v5787_v20, %v7046_v37  ;;  %v4585_v4 = vrot.slane %v4557_v28, %v7046_v37 }
 0xddf   :  { %v7282_v14 = vcombine.low %v4643_v9, %v4650_v32  ;;  %v1857_v55 = vcombine.high %v1835_v49, %v1835_v49  ;;  %v1849_v6 = vrot.slane %v1827_v52, %v7046_v37  ;;  %v1864_v58 = vrot.slane %v1835_v49, %v1863_v53 }
 0xde0   :  { %v4586_v35 = vcombine.low %v4564_v29, %v4571_v33  ;;  %v4587_v44 = vcombine.low %v4578_v34, %v4585_v4  ;;  %v1842_v59 = vrot.slane %v1826_v56, %v7046_v37  ;;  %v1828_v7 = vcombine.high %v1826_v56, %v1826_v56 }
 0xde1   :  { %v1872_v5 = vrot.slane %v1857_v55, %v1863_v53  ;;  %v1868_v8 = vrot.slane %v1849_v6, %v1863_v53  ;;  %v1859_v10 = vcombine.high %v1849_v6, %v1849_v6 }
 0xde2   :  { %v4594_v36 = vrot.slane %v4586_v35, %v7046_v37  ;;  %v4601_v39 = vrot.slane %v4587_v44, %v7046_v37  ;;  %v1880_v38 = vrot.slane %v1842_v59, %v1863_v53  ;;  %v1858_v21 = vcombine.high %v1842_v59, %v1842_v59 }
 0xde3   :  { %v1876_v26 = vrot.slane %v1859_v10, %v1863_v53  ;;  %v1856_v2 = vrot.slane %v1828_v7, %v7046_v37 }
 0xde4   :  { %v7286_v40 = vcombine.low %v4594_v36, %v4601_v39  ;;  %v1888_v13 = vrot.slane %v1858_v21, %v1863_v53 }
 0xde5   :  { %v1884_v34 = vrot.slane %v1856_v2, %v1863_v53  ;;  %v1860_v4 = vcombine.high %v1856_v2, %v1856_v2 }
 0xde7   :  { %v1892_v49 = vrot.slane %v1860_v4, %v1863_v53 }
 0xe82   :  { %v1973_v60 = vpop.f32.mrb[32].mxu1  ;;  %v2125_v3 = vpop.f32.mrb[14].mxu0 }
 0xe83   :  { %v1974_v11 = vadd.f32 %v1973_v60, %v1864_v58  ;;  %v2126_v12 = vadd.f32 %v2125_v3, %v1872_v5  ;;  %v6122_v16 = vpop.f32.mrb[33].mxu1  ;;  %v6132_v42 = vpop.f32.mrb[15].mxu0 }
 0xe85   :  { %v2516_v15 = vsel %vm2509_vm3, %v2126_v12, -inf  ;;  %v2510_v19 = vsel %vm2509_vm3, %v1974_v11, -inf }
 0xe86   :  { %2517 = vmax.xlane.f32.xlu1 %v2516_v15  ;;  %v2277_v23 = vpop.f32.mrb[16].mxu0  ;;  %2511 = vmax.xlane.f32.xlu0 %v2510_v19  ;;  %v2049_v24 = vpop.f32.mrb[34].mxu1 }
 0xe87   :  { %v2050_v62 = vadd.f32 %v2049_v24, %v1868_v8  ;;  %v6127_v50 = vpop.f32.mrb[35].mxu1  ;;  %v6142_v25 = vpop.f32.mrb[17].mxu0  ;;  %v2278_v27 = vadd.f32 %v2277_v23, %v1880_v38 }
 0xe89   :  { %v2513_v20 = vsel %vm2509_vm3, %v2050_v62, -inf  ;;  %v2522_v44 = vsel %vm2509_vm3, %v2278_v27, -inf }
 0xe8a   :  { %v2429_v28 = vpop.f32.mrb[18].mxu0  ;;  %2514 = vmax.xlane.f32.xlu0 %v2513_v20  ;;  %v2201_v29 = vpop.f32.mrb[36].mxu1 }
 0xe8b   :  { %v2202_v9 = vadd.f32 %v2201_v29, %v1876_v26  ;;  %v6137_v32 = vpop.f32.mrb[37].mxu1  ;;  %v6152_v33 = vpop.f32.mrb[19].mxu0  ;;  %v2430_v35 = vadd.f32 %v2429_v28, %v1888_v13 }
 0xe8d   :  { %v2519_v36 = vsel %vm2509_vm3, %v2202_v9, -inf  ;;  %v2528_v51 = vsel %vm2509_vm3, %v2430_v35, -inf }
 0xe8e   :  { %2523 = vmax.xlane.f32.xlu0 %v2522_v44  ;;  %2520 = vmax.xlane.f32.xlu1 %v2519_v36  ;;  %v2353_v39 = vpop.f32.mrb[38].mxu1 }
 0xe8f   :  { %v2354_v41 = vadd.f32 %v2353_v39, %v1884_v34  ;;  %v6147_v47 = vpop.f32.mrb[39].mxu1 }
 0xe91   :  { %v2525_v52 = vsel %vm2509_vm3, %v2354_v41, -inf }
 0xe92   :  { %2529 = vmax.xlane.f32.xlu0 %v2528_v51  ;;  %2526 = vmax.xlane.f32.xlu1 %v2525_v52  ;;  %v2505_v55 = vpop.f32.mrb[40].mxu1 }
 0xe93   :  { %v2506_v56 = vadd.f32 %v2505_v55, %v1892_v49  ;;  %v6157_v6 = vpop.f32.mrb[41].mxu1 }
 0xe95   :  { %v2531_v58 = vsel %vm2509_vm3, %v2506_v56, -inf }
 0xe96   :  { %2532 = vmax.xlane.f32.xlu1 %v2531_v58 }
 0xf13   :  { %v2518_v5 = vpop.xlane.xlu1 %2517  ;;  %v2512_v59 = vpop.xlane.xlu0 %2511 }
 0xf14   :  { %v2536_v60 = vsub.f32 %v2126_v12, %v2518_v5  ;;  %v2534_v3 = vsub.f32 %v1974_v11, %v2512_v59 }
 0xf16   :  { %v2542_v8 = vmul.f32 1.442695, %v2534_v3  ;;  %v2546_v16 = vmul.f32 1.442695, %v2536_v60 }
 0xf17   :  { %v2515_v42 = vpop.xlane.xlu0 %2514 }
 0xf18   :  { %v2535_v53 = vsub.f32 %v2050_v62, %v2515_v42  ;;  %6413 = vpow2.f32 %v2542_v8 }
 0xf19   :  { %6415 = vpow2.f32 %v2546_v16 }
 0xf1a   :  { %v2544_v10 = vmul.f32 1.442695, %v2535_v53 }
 0xf1b   :  { %v2524_v7 = vpop.xlane.xlu0 %2523  ;;  %v2521_v15 = vpop.xlane.xlu1 %2520 }
 0xf1c   :  { %6417 = vpow2.f32 %v2544_v10  ;;  %v2538_v38 = vsub.f32 %v2278_v27, %v2524_v7  ;;  %v2537_v19 = vsub.f32 %v2202_v9, %v2521_v15 }
 0xf1e   :  { %v2550_v21 = vmul.f32 1.442695, %v2538_v38  ;;  %v2548_v23 = vmul.f32 1.442695, %v2537_v19 }
 0xf1f   :  { %v2530_v24 = vpop.xlane.xlu0 %2529  ;;  %v2527_v50 = vpop.xlane.xlu1 %2526 }
 0xf20   :  { %6419 = vpow2.f32 %v2550_v21  ;;  %v2540_v25 = vsub.f32 %v2430_v35, %v2530_v24  ;;  %v2539_v12 = vsub.f32 %v2354_v41, %v2527_v50 }
 0xf21   :  { %6421 = vpow2.f32 %v2548_v23 }
 0xf22   :  { %v2554_v11 = vmul.f32 1.442695, %v2540_v25  ;;  %v2552_v26 = vmul.f32 1.442695, %v2539_v12  ;;  %v6414_v2 = vpop.eup %6413 }
 0xf23   :  { %v2533_v62 = vpop.xlane.xlu1 %2532  ;;  %v2558_v20 = vsel %vm2509_vm3, %v6414_v2, 0.0  ;;  %v6416_v28 = vpop.eup %6415 }
 0xf24   :  { %6423 = vpow2.f32 %v2554_v11  ;;  %v2541_v13 = vsub.f32 %v2506_v56, %v2533_v62  ;;  %2559 = vadd.xlane.f32.xlu0 %v2558_v20  ;;  %v2564_v32 = vsel %vm2509_vm3, %v6416_v28, 0.0 }
 0xf25   :  { %6425 = vpow2.f32 %v2552_v26 }
 0xf26   :  { %v6418_v27 = vpop.eup %6417  ;;  %v2556_v29 = vmul.f32 1.442695, %v2541_v13 }
 0xf27   :  { %v2561_v9 = vsel %vm2509_vm3, %v6418_v27, 0.0 }
 0xf28   :  { %6427 = vpow2.f32 %v2556_v29  ;;  %2562 = vadd.xlane.f32.xlu1 %v2561_v9  ;;  %2565 = vadd.xlane.f32.xlu0 %v2564_v32 }
 0xf2a   :  { %v6420_v33 = vpop.eup %6419 }
 0xf2b   :  { %v6422_v34 = vpop.eup %6421  ;;  %v2570_v4 = vsel %vm2509_vm3, %v6420_v33, 0.0 }
 0xf2c   :  { %v2567_v35 = vsel %vm2509_vm3, %v6422_v34, 0.0  ;;  %2571 = vadd.xlane.f32.xlu0 %v2570_v4 }
 0xf2d   :  { %2568 = vadd.xlane.f32.xlu1 %v2567_v35 }
 0xf2e   :  { %v6424_v44 = vpop.eup %6423 }
 0xf2f   :  { %v7308_v36 = vpop.eup %6425  ;;  %v2576_v39 = vsel %vm2509_vm3, %v6424_v44, 0.0 }
 0xf30   :  { %v2573_v41 = vsel %vm2509_vm3, %v7308_v36, 0.0  ;;  %2577 = vadd.xlane.f32.xlu0 %v2576_v39 }
 0xf31   :  { %2574 = vadd.xlane.f32.xlu1 %v2573_v41 }
 0xf32   :  { %v7313_v47 = vpop.eup %6427 }
 0xf33   :  { %v2579_v49 = vsel %vm2509_vm3, %v7313_v47, 0.0 }
 0xf35   :  { %2580 = vadd.xlane.f32.xlu1 %v2579_v49 }
 0xf46   :  { %4654 = vrot.lane.b32.xlu1 %v7180_v22, %s6635_s8  ;;  %4652 = vrot.lane.b32.xlu0 %v7203_v31, %s6635_s8 }
 0xf4a   :  { %4656 = vrot.lane.b32.xlu1 %v7228_v18, %s6635_s8  ;;  %4660 = vrot.lane.b32.xlu0 %v7249_v43, %s6635_s8 }
 0xf4e   :  { %4658 = vrot.lane.b32.xlu1 %v7268_v57, %s6635_s8  ;;  %4664 = vrot.lane.b32.xlu0 %v7282_v14, %s6635_s8 }
 0xf52   :  { %4662 = vrot.lane.b32.xlu1 %v7286_v40, %s6635_s8 }
 0xfb1   :  { %v2560_v51 = vpop.xlane.xlu0 %2559 }
 0xfb2   :  { %6429 = vrcp.f32 %v2560_v51 }
 0xfb5   :  { %v2563_v52 = vpop.xlane.xlu1 %2562  ;;  %v2566_v55 = vpop.xlane.xlu0 %2565 }
 0xfb6   :  { %6431 = vrcp.f32 %v2563_v52 }
 0xfb7   :  { %6433 = vrcp.f32 %v2566_v55 }
 0xfb9   :  { %v2572_v56 = vpop.xlane.xlu0 %2571 }
 0xfba   :  { %v2569_v22 = vpop.xlane.xlu1 %2568  ;;  %6435 = vrcp.f32 %v2572_v56  ;;  %v4681_v56 = vld [vmem:[%s7761_s9 + $0x8] sm:$0xff] }
 0xfbb   :  { %6437 = vrcp.f32 %v2569_v22 }
 0xfbc   :  { %v6430_v31 = vpop.eup %6429 }
 0xfbd   :  { %v2590_v18 = vmul.f32 %v6430_v31, %v6414_v2  ;;  %v2578_v43 = vpop.xlane.xlu0 %2577  ;;  %v4682_v31 = vld [vmem:[%s7761_s9 + $0x10] sm:$0xff] }
 0xfbe   :  { %v2575_v6 = vpop.xlane.xlu1 %2574  ;;  %6439 = vrcp.f32 %v2578_v43 }
 0xfbf   :  { %6441 = vrcp.f32 %v2575_v6  ;;  %6161 = vmatmul.mubr.msk.f32.vlgmr.msra.gmra.mrb[20].mxu0 %vm2598_vm4, %v2590_v18  ;;  %v4684_v6 = vld [vmem:[%s7761_s9 + $0x20] sm:$0xff] }
 0xfc0   :  { %v6432_v57 = vpop.eup %6431  ;;  %6169 = vmatpush3.msra.mxu0 %v6966_v61  ;;  %6170 = vmatprep.mubr.msk.f32.mxu0 %vm6630_vm0, %v6631_v1 }
 0xfc1   :  { %v6434_v14 = vpop.eup %6433  ;;  %v2591_v40 = vmul.f32 %v6432_v57, %v6418_v27  ;;  %6178 = vmatprep.subr.mxu0 %v6631_v1  ;;  %v4685_v57 = vld [vmem:[%s7761_s9 + $0x28] sm:$0xff] }
 0xfc2   :  { %v2592_v58 = vmul.f32 %v6434_v14, %v6416_v28  ;;  %v2581_v5 = vpop.xlane.xlu1 %2580  ;;  %v6332_v14 = vpack.c.bf16 %v4685_v57, %v4684_v6 }
 0xfc3   :  { %6443 = vrcp.f32 %v2581_v5  ;;  %6166 = vmatmul.mubr.msk.f32.vlgmr.msra.gmra.mrb[42].mxu1 %vm2598_vm4, %v2591_v40 }
 0xfc4   :  { %6171 = vmatmul.mubr.msk.f32.vlgmr.msra.gmra.mrb[22].mxu0 %vm2598_vm4, %v2592_v58  ;;  %6174 = vmatpush3.msra.mxu1 %v6972_v63  ;;  %v6436_v59 = vpop.eup %6435  ;;  %v5524_v42 = vcombine.low %v2590_v18, %v2592_v58  ;;  %v5525_v7 = vcombine.high %v2590_v18, %v2592_v58  ;;  %v4683_v18 = vld [vmem:[%s7761_s9 + $0x18] sm:$0xff] }
 0xfc5   :  { %6179 = vmatpush3.msra.mxu0 %v7041_v30  ;;  %6175 = vmatprep.mubr.msk.f32.mxu1 %vm6630_vm0, %v6631_v1  ;;  %v6438_v61 = vpop.eup %6437  ;;  %v2594_v60 = vmul.f32 %v6436_v59, %v6420_v33  ;;  %v6329_v43 = vpack.c.bf16 %v4683_v18, %v4682_v31  ;;  %v4687_v58 = vld [vmem:[%s7761_s9 + $0x38] sm:$0xff] }
 0xfc6   :  { %6180 = vmatprep.mubr.msk.f32.mxu0 %vm6630_vm0, %v6631_v1  ;;  %6183 = vmatprep.subr.mxu1 %v6631_v1  ;;  %v2593_v3 = vmul.f32 %v6438_v61, %v6422_v34  ;;  %v5532_v21 = vrot.slane %v5524_v42, %v6889_v17  ;;  %v5539_v25 = vrot.slane %v5525_v7, %v6889_v17 }
 0xfc7   :  { %6188 = vmatprep.subr.mxu0 %v6631_v1 }
 0xfc8   :  { %6181 = vmatmul.mubr.msk.f32.vlgmr.msra.gmra.mrb[24].mxu0 %vm2598_vm4, %v2594_v60  ;;  %v6440_v8 = vpop.eup %6439  ;;  %v5540_v63 = vcombine.low %v2591_v40, %v2593_v3  ;;  %6176 = vmatmul.mubr.msk.f32.vlgmr.msra.gmra.mrb[44].mxu1 %vm2598_vm4, %v2593_v3  ;;  %v5541_v53 = vcombine.high %v2591_v40, %v2593_v3  ;;  %v4686_v40 = vld [vmem:[%s7761_s9 + $0x30] sm:$0xff] }
 0xfc9   :  { %6189 = vmatpush3.msra.mxu0 %v7061_v45  ;;  %v6442_v30 = vpop.eup %6441  ;;  %v2596_v16 = vmul.f32 %v6440_v8, %v6424_v44  ;;  %6184 = vmatpush3.msra.mxu1 %v7063_v46  ;;  %v6335_v5 = vpack.c.bf16 %v4687_v58, %v4686_v40 }
 0xfca   :  { %6185 = vmatprep.mubr.msk.f32.mxu1 %vm6630_vm0, %v6631_v1  ;;  %v2595_v10 = vmul.f32 %v6442_v30, %v7308_v36  ;;  %6190 = vmatprep.mubr.msk.f32.mxu0 %vm6630_vm0, %v6631_v1  ;;  %v5548_v46 = vrot.slane %v5540_v63, %v6889_v17  ;;  %v5555_v23 = vrot.slane %v5541_v53, %v6889_v17 }
 0xfcb   :  { %6193 = vmatprep.subr.mxu1 %v6631_v1  ;;  %6325 = vmatprep.subr.bf16.mxu0 %v6629_v0  ;;  %v5556_v15 = vcombine.low %v2594_v60, %v2596_v16  ;;  %v5557_v38 = vcombine.high %v2594_v60, %v2596_v16 }
 0xfcc   :  { %6191 = vmatmul.mubr.msk.f32.vlgmr.msra.gmra.mrb[26].mxu0 %vm2598_vm4, %v2596_v16  ;;  %6186 = vmatmul.mubr.msk.f32.vlgmr.msra.gmra.mrb[46].mxu1 %vm2598_vm4, %v2595_v10  ;;  %v5588_v12 = vcombine.low %v5532_v21, %v5548_v46  ;;  %v5589_v11 = vcombine.high %v5532_v21, %v5548_v46  ;;  %v5604_v13 = vcombine.low %v5539_v25, %v5555_v23 }
 0xfcd   :  { %v6444_v45 = vpop.eup %6443  ;;  %6194 = vmatpush3.msra.mxu1 %v7066_v48  ;;  %6195 = vmatprep.mubr.msk.f32.mxu1 %vm6630_vm0, %v6631_v1  ;;  %v5564_v48 = vrot.slane %v5556_v15, %v6889_v17  ;;  %v5571_v26 = vrot.slane %v5557_v38, %v6889_v17  ;;  %v5605_v20 = vcombine.high %v5539_v25, %v5555_v23 }
 0xfce   :  { %v2597_v19 = vmul.f32 %v6444_v45, %v7313_v47  ;;  %6214 = vmatprep.mubr.msk.f32.mxu0 %vm6630_vm0, %v6631_v1  ;;  %v5596_v32 = vrot.slane %v5588_v12, %v6953_v54  ;;  %v5603_v33 = vrot.slane %v5589_v11, %v6953_v54 }
 0xfcf   :  { %v5619_v36 = vrot.slane %v5605_v20, %v6953_v54 }
 0xfd0   :  { %v5572_v24 = vcombine.low %v2595_v10, %v2597_v19  ;;  %v5573_v50 = vcombine.high %v2595_v10, %v2597_v19  ;;  %6196 = vmatmul.mubr.msk.f32.vlgmr.msra.gmra.mrb[48].mxu1 %vm2598_vm4, %v2597_v19 }
 0xfd2   :  { %v5580_v2 = vrot.slane %v5572_v24, %v6889_v17  ;;  %v5587_v62 = vrot.slane %v5573_v50, %v6889_v17  ;;  %v5612_v17 = vrot.slane %v5604_v13, %v6953_v54 }
 0xfd4   :  { %v5620_v28 = vcombine.low %v5564_v48, %v5580_v2  ;;  %v5621_v27 = vcombine.high %v5564_v48, %v5580_v2  ;;  %v5636_v29 = vcombine.low %v5571_v26, %v5587_v62  ;;  %v5637_v9 = vcombine.high %v5571_v26, %v5587_v62 }
 0xfd6   :  { %v5628_v34 = vrot.slane %v5620_v28, %v6953_v54  ;;  %v5635_v4 = vrot.slane %v5621_v27, %v6953_v54  ;;  %v5644_v35 = vrot.slane %v5636_v29, %v6953_v54  ;;  %v5651_v44 = vrot.slane %v5637_v9, %v6953_v54  ;;  %v4680_v54 = vld [vmem:[%s7761_s9] sm:$0xff]  ;;  %s6636_s9 = smov [#allocation13]  }
 0xfd7   :  { %v6326_v22 = vpack.c.bf16 %v4681_v56, %v4680_v54  ;;  %s5683_s4 = sshll.u32 %s6636_s9, 4  ;;  %s5684_s4 = int_to_ptr.vmem [resolvable:$true] %s5683_s4 }
 0xfd8   :  { %v5652_v39 = vcombine.low %v5596_v32, %v5628_v34  ;;  %v5653_v41 = vcombine.high %v5596_v32, %v5628_v34  ;;  %v5654_v47 = vcombine.low %v5603_v33, %v5635_v4  ;;  %v5655_v49 = vcombine.high %v5603_v33, %v5635_v4  ;;  %s6547_s29 = scalar_lea.vmem %s5684_s4, 896  ;;  %p6552_p5 = scmp.lt.s32.totalorder %s5684_s4, %s5684_s4 }
 0xfd9   :  { %v5656_v51 = vcombine.low %v5612_v17, %v5644_v35  ;;  %v5657_v52 = vcombine.high %v5612_v17, %v5644_v35  ;;  %v5658_v55 = vcombine.low %v5619_v36, %v5651_v44  ;;  %6327 = vmatpush3.bf16.msra.mxu0 %v6326_v22  ;;  %p6548_p4 = scmp.ne.s32.totalorder %s5684_s4, %s6547_s29  ;;  %p6553_p6 = scmp.lt.s32.totalorder %s6547_s29, %s6547_s29 }
 0xfda   :  { %5659 = vst.msk [vmem:[#allocation13] sm:$0xff] %vm2598_vm4, %v5652_v39  ;;  %5660 = vst.msk [vmem:[#allocation13 + $0x8] sm:$0xff] %vm2598_vm4, %v5653_v41  ;;  %6328 = vmatprep.subr.bf16.mxu0 %v6629_v0 }
 0xfdb   :  { %5661 = vst.msk [vmem:[#allocation13 + $0x10] sm:$0xff] %vm2598_vm4, %v5654_v47  ;;  %5662 = vst.msk [vmem:[#allocation13 + $0x18] sm:$0xff] %vm2598_vm4, %v5655_v49  ;;  %p6554_p7 = por %p6553_p6, %p6552_p5 }
 0xfdc   :  { %5663 = vst.msk [vmem:[#allocation13 + $0x20] sm:$0xff] %vm2598_vm4, %v5656_v51  ;;  %5664 = vst.msk [vmem:[#allocation13 + $0x28] sm:$0xff] %vm2598_vm4, %v5657_v52 }
 0xfdd   :  { %5665 = vst.msk [vmem:[#allocation13 + $0x30] sm:$0xff] %vm2598_vm4, %v5658_v55  ;;  %6330 = vmatpush3.bf16.msra.mxu0 %v6329_v43  ;;  %p6555_p8 = pnand %p6554_p7, %p6548_p4 }
 0xfde   :  { %6331 = vmatprep.subr.bf16.mxu0 %v6629_v0 }
 0xfe1   :  { %6333 = vmatpush3.bf16.msra.mxu0 %v6332_v14 }
 0xfe2   :  { %6334 = vmatprep.subr.bf16.mxu0 %v6629_v0 }
 0xfe5   :  { %6336 = vmatpush3.bf16.msra.mxu0 %v6335_v5 }
0x1092   :  { %v2668_v59 = vpop.f32.mrb[20].mxu0 }
0x1093   :  { %v3191_v61 = vcombine.high %v2668_v59, %v2668_v59  ;;  %v3198_v60 = vrot.slane %v2668_v59, %v7046_v37  ;;  %v6162_v3 = vpop.f32.mrb[21].mxu0 }
0x1095   :  { %v3205_v8 = vrot.slane %v3191_v61, %v7046_v37  ;;  %v3206_v63 = vcombine.high %v3198_v60, %v3198_v60  ;;  %v3214_v0 = vrot.slane %v3198_v60, %v7046_v37 }
0x1096   :  { %v2741_v30 = vpop.f32.mrb[42].mxu1 }
0x1097   :  { %v3239_v16 = vcombine.high %v2741_v30, %v2741_v30  ;;  %v3246_v42 = vrot.slane %v2741_v30, %v7046_v37  ;;  %v2814_v53 = vpop.f32.mrb[22].mxu0  ;;  %v6167_v10 = vpop.f32.mrb[43].mxu1  ;;  %v3207_v45 = vcombine.high %v3205_v8, %v3205_v8  ;;  %v3221_v7 = vrot.slane %v3205_v8, %v7046_v37 }
0x1098   :  { %v3228_v46 = vrot.slane %v3206_v63, %v7046_v37  ;;  %v3287_v15 = vcombine.high %v2814_v53, %v2814_v53  ;;  %v6172_v38 = vpop.f32.mrb[23].mxu0  ;;  %v3294_v24 = vrot.slane %v2814_v53, %v7046_v37 }
0x1099   :  { %v3253_v19 = vrot.slane %v3239_v16, %v7046_v37  ;;  %v3254_v21 = vcombine.high %v3246_v42, %v3246_v42  ;;  %v3262_v23 = vrot.slane %v3246_v42, %v7046_v37  ;;  %v3235_v50 = vrot.slane %v3207_v45, %v7046_v37 }
0x109a   :  { %v3959_v25 = vcombine.low %v3214_v0, %v3228_v46  ;;  %v5780_v12 = vcombine.high %v3214_v0, %v3228_v46  ;;  %v3237_v11 = vcombine.high %v3221_v7, %v3221_v7  ;;  %v3301_v41 = vrot.slane %v3287_v15, %v7046_v37 }
0x109b   :  { %v3255_v48 = vcombine.high %v3253_v19, %v3253_v19  ;;  %v3269_v26 = vrot.slane %v3253_v19, %v7046_v37  ;;  %v3276_v2 = vrot.slane %v3254_v21, %v7046_v37  ;;  %v3284_v62 = vcombine.high %v3262_v23, %v3262_v23  ;;  %v2960_v13 = vpop.f32.mrb[24].mxu0  ;;  %v2887_v9 = vpop.f32.mrb[44].mxu1 }
0x109c   :  { %v3961_v20 = vcombine.low %v3221_v7, %v3235_v50  ;;  %v3969_v28 = vrot.slane %v3959_v25, %v7046_v37  ;;  %v3976_v27 = vrot.slane %v5780_v12, %v7046_v37  ;;  %v3962_v29 = vcombine.low %v3237_v11, %v3262_v23  ;;  %v6182_v32 = vpop.f32.mrb[25].mxu0  ;;  %v6177_v44 = vpop.f32.mrb[45].mxu1 }
0x109d   :  { %v3283_v33 = vrot.slane %v3255_v48, %v7046_v37  ;;  %v3285_v34 = vcombine.high %v3269_v26, %v3269_v26  ;;  %v3286_v4 = vcombine.high %v3276_v2, %v3276_v2  ;;  %v4008_v35 = vcombine.low %v3276_v2, %v3284_v62 }
0x109e   :  { %v3983_v17 = vrot.slane %v3961_v20, %v7046_v37  ;;  %v3991_v36 = vcombine.low %v3969_v28, %v3976_v27  ;;  %v3990_v39 = vrot.slane %v3962_v29, %v7046_v37  ;;  %v3302_v52 = vcombine.high %v3294_v24, %v3294_v24 }
0x109f   :  { %v4009_v47 = vcombine.low %v3286_v4, %v3269_v26  ;;  %v4010_v49 = vcombine.low %v3283_v33, %v3285_v34  ;;  %v4018_v51 = vrot.slane %v4008_v35, %v7046_v37  ;;  %v7428_v55 = vpop.f32.mrb[26].mxu0  ;;  %v3303_v22 = vcombine.high %v3301_v41, %v3301_v41  ;;  %v3033_v18 = vpop.f32.mrb[46].mxu1 }
0x10a0   :  { %v7431_v54 = vrot.slane %v3991_v36, %v7046_v37  ;;  %v7433_v56 = vcombine.low %v3983_v17, %v3990_v39  ;;  %v3310_v31 = vrot.slane %v3294_v24, %v7046_v37  ;;  %v6192_v43 = vpop.f32.mrb[27].mxu0  ;;  %v3317_v57 = vrot.slane %v3301_v41, %v7046_v37  ;;  %v6187_v58 = vpop.f32.mrb[47].mxu1 }
0x10a1   :  { %v4025_v6 = vrot.slane %v4009_v47, %v7046_v37  ;;  %v3324_v14 = vrot.slane %v3302_v52, %v7046_v37  ;;  %v4032_v40 = vrot.slane %v4010_v49, %v7046_v37  ;;  %v3331_v59 = vrot.slane %v3303_v22, %v7046_v37 }
0x10a2   :  { %v4006_v5 = vrot.slane %v7433_v56, %v7046_v37  ;;  %v3335_v61 = vcombine.high %v2887_v9, %v2887_v9  ;;  %v3342_v60 = vrot.slane %v2887_v9, %v7046_v37  ;;  %v3333_v30 = vcombine.high %v3317_v57, %v3317_v57 }
0x10a3   :  { %v7444_v3 = vcombine.low %v4018_v51, %v4025_v6  ;;  %v4011_v8 = vcombine.low %v3310_v31, %v3324_v14  ;;  %v5781_v63 = vcombine.high %v3310_v31, %v3324_v14  ;;  %v4058_v0 = vcombine.low %v3317_v57, %v3331_v59  ;;  %v7448_v10 = vpop.f32.mrb[48].mxu1 }
0x10a4   :  { %v3349_v16 = vrot.slane %v3335_v61, %v7046_v37  ;;  %v3350_v42 = vcombine.high %v3342_v60, %v3342_v60  ;;  %v3358_v53 = vrot.slane %v3342_v60, %v7046_v37  ;;  %v3383_v46 = vcombine.high %v2960_v13, %v2960_v13  ;;  %v6197_v38 = vpop.f32.mrb[49].mxu1 }
0x10a5   :  { %v4039_v45 = vrot.slane %v4011_v8, %v7046_v37  ;;  %v7452_v7 = vrot.slane %v5781_v63, %v7046_v37  ;;  %v3390_v15 = vrot.slane %v2960_v13, %v7046_v37  ;;  %v7456_v19 = vrot.slane %v4058_v0, %v7046_v37 }
0x10a6   :  { %v3351_v21 = vcombine.high %v3349_v16, %v3349_v16  ;;  %v3365_v23 = vrot.slane %v3349_v16, %v7046_v37  ;;  %v3372_v24 = vrot.slane %v3350_v42, %v7046_v37  ;;  %v3380_v25 = vcombine.high %v3358_v53, %v3358_v53 }
0x10a7   :  { %v7460_v50 = vcombine.low %v4032_v40, %v4039_v45  ;;  %v4059_v12 = vcombine.low %v3333_v30, %v3358_v53  ;;  %v3397_v11 = vrot.slane %v3383_v46, %v7046_v37  ;;  %v4089_v48 = vcombine.low %v7452_v7, %v7456_v19 }
0x10a8   :  { %v3379_v26 = vrot.slane %v3351_v21, %v7046_v37  ;;  %v3381_v2 = vcombine.high %v3365_v23, %v3365_v23  ;;  %v3382_v62 = vcombine.high %v3372_v24, %v3372_v24  ;;  %v4060_v13 = vcombine.low %v3372_v24, %v3380_v25 }
0x10a9   :  { %v4081_v20 = vrot.slane %v4059_v12, %v7046_v37  ;;  %v3398_v28 = vcombine.high %v3390_v15, %v3390_v15  ;;  %v3399_v27 = vcombine.high %v3397_v11, %v3397_v11  ;;  %v3406_v32 = vrot.slane %v3390_v15, %v7046_v37 }
0x10aa   :  { %v4106_v29 = vcombine.low %v3382_v62, %v3365_v23  ;;  %v4107_v9 = vcombine.low %v3379_v26, %v3381_v2  ;;  %v3413_v33 = vrot.slane %v3397_v11, %v7046_v37  ;;  %v4088_v34 = vrot.slane %v4060_v13, %v7046_v37 }
0x10ab   :  { %v3420_v4 = vrot.slane %v3398_v28, %v7046_v37  ;;  %v3427_v35 = vrot.slane %v3399_v27, %v7046_v37  ;;  %v3431_v44 = vcombine.high %v3033_v18, %v3033_v18  ;;  %v3438_v41 = vrot.slane %v3033_v18, %v7046_v37 }
0x10ac   :  { %v4116_v17 = vrot.slane %v4106_v29, %v7046_v37  ;;  %v4123_v36 = vrot.slane %v4107_v9, %v7046_v37  ;;  %v3429_v39 = vcombine.high %v3413_v33, %v3413_v33  ;;  %v7475_v47 = vcombine.low %v4081_v20, %v4088_v34 }
0x10ad   :  { %v4108_v49 = vcombine.low %v3406_v32, %v3420_v4  ;;  %v5782_v51 = vcombine.high %v3406_v32, %v3420_v4  ;;  %v4155_v52 = vcombine.low %v3413_v33, %v3427_v35  ;;  %v3445_v31 = vrot.slane %v3431_v44, %v7046_v37 }
0x10ae   :  { %v7477_v22 = vcombine.low %v4116_v17, %v4123_v36  ;;  %v3446_v43 = vcombine.high %v3438_v41, %v3438_v41  ;;  %v3454_v6 = vrot.slane %v3438_v41, %v7046_v37  ;;  %v3479_v40 = vcombine.high %v7428_v55, %v7428_v55 }
0x10af   :  { %v7482_v57 = vrot.slane %v4108_v49, %v7046_v37  ;;  %v7485_v14 = vrot.slane %v5782_v51, %v7046_v37  ;;  %v4165_v18 = vrot.slane %v4155_v52, %v7046_v37  ;;  %v3447_v58 = vcombine.high %v3445_v31, %v3445_v31 }
0x10b0   :  { %v3461_v59 = vrot.slane %v3445_v31, %v7046_v37  ;;  %v3468_v61 = vrot.slane %v3446_v43, %v7046_v37  ;;  %v3476_v60 = vcombine.high %v3454_v6, %v3454_v6  ;;  %v4156_v63 = vcombine.low %v3429_v39, %v3454_v6  ;;  %v4653_v39 = vpop.permute.xlu0 %4652 }
0x10b1   :  { %v4139_v8 = vcombine.low %v7482_v57, %v7485_v14  ;;  %v3486_v30 = vrot.slane %v7428_v55, %v7046_v37  ;;  %v3493_v0 = vrot.slane %v3479_v40, %v7046_v37  ;;  %v3475_v16 = vrot.slane %v3447_v58, %v7046_v37 }
0x10b2   :  { %v3477_v42 = vcombine.high %v3461_v59, %v3461_v59  ;;  %v3478_v53 = vcombine.high %v3468_v61, %v3468_v61  ;;  %v4157_v45 = vcombine.low %v3468_v61, %v3476_v60  ;;  %v4172_v46 = vrot.slane %v4156_v63, %v7046_v37 }
0x10b3   :  { %v3494_v15 = vcombine.high %v3486_v30, %v3486_v30  ;;  %v3495_v38 = vcombine.high %v3493_v0, %v3493_v0  ;;  %v3502_v21 = vrot.slane %v3486_v30, %v7046_v37  ;;  %v3509_v55 = vrot.slane %v3493_v0, %v7046_v37 }
0x10b4   :  { %v4158_v23 = vcombine.low %v3478_v53, %v3461_v59  ;;  %v4179_v24 = vrot.slane %v4157_v45, %v7046_v37  ;;  %v4204_v25 = vcombine.low %v3475_v16, %v3477_v42  ;;  %v4187_v12 = vcombine.low %v4165_v18, %v4172_v46 }
0x10b5   :  { %v3516_v11 = vrot.slane %v3494_v15, %v7046_v37  ;;  %v3523_v26 = vrot.slane %v3495_v38, %v7046_v37  ;;  %v3527_v2 = vcombine.high %v7448_v10, %v7448_v10  ;;  %v3525_v20 = vcombine.high %v3509_v55, %v3509_v55 }
0x10b6   :  { %v4186_v62 = vrot.slane %v4158_v23, %v7046_v37  ;;  %v4214_v13 = vrot.slane %v4204_v25, %v7046_v37  ;;  %v3534_v28 = vrot.slane %v7448_v10, %v7046_v37  ;;  %v4007_v35 = vcombine.low %v7431_v54, %v4006_v5  ;;  %v4655_v5 = vpop.permute.xlu1 %4654 }
0x10b7   :  { %v4205_v27 = vcombine.low %v3502_v21, %v3516_v11  ;;  %v5783_v29 = vcombine.high %v3502_v21, %v3516_v11  ;;  %v4207_v9 = vcombine.low %v3509_v55, %v3523_v26  ;;  %v3541_v32 = vrot.slane %v3527_v2, %v7046_v37  ;;  %v4661_v26 = vpop.permute.xlu0 %4660 }
0x10b8   :  { %v4188_v33 = vcombine.low %v4179_v24, %v4186_v62  ;;  %v3542_v34 = vcombine.high %v3534_v28, %v3534_v28  ;;  %v3550_v4 = vrot.slane %v3534_v28, %v7046_v37  ;;  %v4673_v54 = vsel %vm215_vm2, %v4007_v35, %v4653_v39 }
0x10b9   :  { %v4221_v44 = vrot.slane %v4205_v27, %v7046_v37  ;;  %v4228_v17 = vrot.slane %v5783_v29, %v7046_v37  ;;  %v4235_v10 = vrot.slane %v4207_v9, %v7046_v37  ;;  %v3543_v36 = vcombine.high %v3541_v32, %v3541_v32  ;;  %6215 = vmatmul.mubr.msk.f32.vlgmr.msra.gmra.mrb[28].mxu0 %vm4688_vm5, %v4673_v54 }
0x10ba   :  { %v3557_v41 = vrot.slane %v3541_v32, %v7046_v37  ;;  %v3564_v49 = vrot.slane %v3542_v34, %v7046_v37  ;;  %v3572_v51 = vcombine.high %v3550_v4, %v3550_v4  ;;  %v4253_v52 = vcombine.low %v3525_v20, %v3550_v4  ;;  %6217 = vmatprep.mubr.msk.f32.mxu0 %vm6630_vm0, %v6631_v1  ;;  %v4657_v38 = vpop.permute.xlu1 %4656 }
0x10bb   :  { %v4236_v31 = vcombine.low %v4214_v13, %v4221_v44  ;;  %v4237_v43 = vcombine.low %v4228_v17, %v4235_v10  ;;  %v3571_v56 = vrot.slane %v3543_v36, %v7046_v37  ;;  %v4048_v59 = vrot.slane %v7444_v3, %v7046_v37  ;;  %v4665_v20 = vpop.permute.xlu0 %4664 }
0x10bc   :  { %v3573_v6 = vcombine.high %v3557_v41, %v3557_v41  ;;  %v3574_v18 = vcombine.high %v3564_v49, %v3564_v49  ;;  %v4254_v40 = vcombine.low %v3564_v49, %v3572_v51  ;;  %v4263_v58 = vrot.slane %v4253_v52, %v7046_v37 }
0x10bd   :  { %v4055_v61 = vrot.slane %v7460_v50, %v7046_v37  ;;  %v4097_v60 = vrot.slane %v4089_v48, %v7046_v37  ;;  %v4104_v63 = vrot.slane %v7475_v47, %v7046_v37  ;;  %v4146_v42 = vrot.slane %v7477_v22, %v7046_v37 }
0x10be   :  { %v4255_v30 = vcombine.low %v3574_v18, %v3557_v41  ;;  %v4256_v0 = vcombine.low %v3571_v56, %v3573_v6  ;;  %v4270_v16 = vrot.slane %v4254_v40, %v7046_v37  ;;  %v4153_v50 = vrot.slane %v4139_v8, %v7046_v37 }
0x10bf   :  { %v4056_v53 = vcombine.low %v4048_v59, %v4055_v61  ;;  %v4105_v3 = vcombine.low %v4097_v60, %v4104_v63  ;;  %v4195_v7 = vrot.slane %v4187_v12, %v7046_v37  ;;  %v4202_v45 = vrot.slane %v4188_v33, %v7046_v37  ;;  %v4659_v12 = vpop.permute.xlu1 %4658 }
0x10c0   :  { %v4277_v19 = vrot.slane %v4255_v30, %v7046_v37  ;;  %v4284_v48 = vrot.slane %v4256_v0, %v7046_v37  ;;  %v4285_v47 = vcombine.low %v4263_v58, %v4270_v16  ;;  %v4154_v15 = vcombine.low %v4146_v42, %v4153_v50 }
0x10c1   :  { %v4674_v46 = vsel %vm215_vm2, %v4056_v53, %v4655_v5  ;;  %v4244_v22 = vrot.slane %v4236_v31, %v7046_v37  ;;  %v4203_v57 = vcombine.low %v4195_v7, %v4202_v45  ;;  %v4251_v14 = vrot.slane %v4237_v43, %v7046_v37 }
0x10c2   :  { %v4286_v21 = vcombine.low %v4277_v19, %v4284_v48  ;;  %6218 = vmatmul.mubr.msk.f32.gmra.mrb[30].mxu0 %vm4688_vm5, %v4674_v46  ;;  %v4293_v23 = vrot.slane %v4285_v47, %v7046_v37  ;;  %v4675_v25 = vsel %vm215_vm2, %v4105_v3, %v4657_v38  ;;  %v4676_v11 = vsel %vm215_vm2, %v4154_v15, %v4659_v12 }
0x10c3   :  { %6220 = vmatprep.mubr.msk.f32.mxu0 %vm6630_vm0, %v6631_v1  ;;  %v4252_v8 = vcombine.low %v4244_v22, %v4251_v14  ;;  %v4677_v2 = vsel %vm215_vm2, %v4203_v57, %v4661_v26  ;;  %v4663_v62 = vpop.permute.xlu1 %4662 }
0x10c4   :  { %v4300_v24 = vrot.slane %v4286_v21, %v7046_v37 }
0x10c5   :  { %v4678_v13 = vsel %vm215_vm2, %v4252_v8, %v4663_v62 }
0x10c6   :  { %6221 = vmatmul.mubr.msk.f32.gmra.mrb[32].mxu0 %vm4688_vm5, %v4675_v25  ;;  %v4301_v55 = vcombine.low %v4293_v23, %v4300_v24 }
0x10c7   :  { %6223 = vmatprep.mubr.msk.f32.mxu0 %vm6630_vm0, %v6631_v1 }
0x10c8   :  { %v4679_v28 = vsel %vm215_vm2, %v4301_v55, %v4665_v20 }
0x10ca   :  { %6224 = vmatmul.mubr.msk.f32.gmra.mrb[34].mxu0 %vm4688_vm5, %v4676_v11 }
0x10cb   :  { %6226 = vmatprep.mubr.msk.f32.mxu0 %vm6630_vm0, %v6631_v1 }
0x10ce   :  { %6227 = vmatmul.mubr.msk.f32.gmra.mrb[36].mxu0 %vm4688_vm5, %v4677_v2 }
0x10cf   :  { %6229 = vmatprep.mubr.msk.f32.mxu0 %vm6630_vm0, %v6631_v1 }
0x10d2   :  { %6230 = vmatmul.mubr.msk.f32.gmra.mrb[38].mxu0 %vm4688_vm5, %v4678_v13 }
0x10d3   :  { %6232 = vmatprep.mubr.msk.f32.mxu0 %vm6630_vm0, %v6631_v1 }
0x10d6   :  { %6233 = vmatmul.mubr.msk.f32.gmra.mrb[40].mxu0 %vm4688_vm5, %v4679_v28 }
0x10d7   :  { %6558 = shalt.err (!%p6555_p8)
}
0x10d8   :  { %s6559_s15 = scalar_lea.hbm %s7763_s11, 896 }
0x10d9   :  { %p6560_p9 = scmp.ne.s32.totalorder %s7763_s11, %s6559_s15  ;;  %p6563_p10 = scmp.lt.u32.totalorder %s6559_s15, %s7763_s11 }
0x10db   :  { %p6565_p11 = pnand %p6563_p10, %p6560_p9 }
0x10dd   :  { %6568 = shalt.err (!%p6565_p11)
}
0x10de   :  { %s6637_s18 = smov 128   ;;  %s6638_s8 = smov 8  }
0x10df   :  { %5689 = dma.vmem_to_hbm [thread:$0]  %s5684_s4, 896, %s7763_s11, [#allocation14], %s6637_s18, %s6637_s18, %s6638_s8  }
0x10e0   :  { %s6639_s22 = smov [#allocation15]  }
0x10e1   :  { %s5696_s14 = sshll.u32 %s6639_s22, 4  ;;  %s5697_s14 = int_to_ptr.vmem [resolvable:$true] %s5696_s14 }
0x10e2   :  { %s6569_s19 = scalar_lea.vmem %s5697_s14, 128  ;;  %p6574_p13 = scmp.lt.s32.totalorder %s5697_s14, %s5697_s14 }
0x10e3   :  { %p6570_p12 = scmp.ne.s32.totalorder %s5697_s14, %s6569_s19  ;;  %p6575_p0 = scmp.lt.s32.totalorder %s6569_s19, %s6569_s19 }
0x10e5   :  { %p6576_p1 = por %p6575_p0, %p6574_p13 }
0x10e7   :  { %p6577_p2 = pnand %p6576_p1, %p6570_p12 }
0x10e9   :  { %6580 = shalt.err (!%p6577_p2)
}
0x10ea   :  { %s6581_s1 = scalar_lea.hbm %s7764_s12, 128 }
0x10eb   :  { %p6582_p3 = scmp.ne.s32.totalorder %s7764_s12, %s6581_s1  ;;  %p6585_p4 = scmp.lt.u32.totalorder %s6581_s1, %s7764_s12 }
0x10ed   :  { %p6587_p5 = pnand %p6585_p4, %p6582_p3 }
0x10ef   :  { %6590 = shalt.err (!%p6587_p5)
}
0x10f0   :  { %5699 = dma.vmem_to_hbm [thread:$0]  %s5697_s14, 128, %s7764_s12, [#allocation14]  }
0x10f1   :  { %s6640_s12 = smov [#allocation12]  }
0x10f2   :  { %s5671_s28 = sshll.u32 %s6640_s12, 4  ;;  %s5672_s28 = int_to_ptr.vmem [resolvable:$true] %s5671_s28 }
0x10f3   :  { %s6591_s0 = scalar_lea.vmem %s5672_s28, 896  ;;  %p6596_p7 = scmp.lt.s32.totalorder %s5672_s28, %s5672_s28 }
0x10f4   :  { %p6592_p6 = scmp.ne.s32.totalorder %s5672_s28, %s6591_s0  ;;  %p6597_p8 = scmp.lt.s32.totalorder %s6591_s0, %s6591_s0 }
0x10f6   :  { %p6598_p9 = por %p6597_p8, %p6596_p7 }
0x10f8   :  { %p6599_p10 = pnand %p6598_p9, %p6592_p6 }
0x118c   :  { %v4776_v1 = vpop.f32.mrb[28].mxu0 }
0x118d   :  { %6445 = vtanh.f32 %v4776_v1  ;;  %v6216_v27 = vpop.f32.mrb[29].mxu0 }
0x1195   :  { %v4781_v29 = vpop.f32.mrb[30].mxu0 }
0x1196   :  { %6447 = vtanh.f32 %v4781_v29  ;;  %v6219_v9 = vpop.f32.mrb[31].mxu0 }
0x1197   :  { %v6446_v33 = vpop.eup %6445 }
0x1198   :  { %v4824_v4 = vcombine.high %v6446_v33, %v6446_v33  ;;  %v4831_v35 = vrot.slane %v6446_v33, %v7046_v37 }
0x1199   :  { %v4786_v32 = vpop.f32.mrb[32].mxu0 }
0x119a   :  { %6449 = vtanh.f32 %v4786_v32  ;;  %v6222_v34 = vpop.f32.mrb[33].mxu0  ;;  %v4838_v44 = vrot.slane %v4824_v4, %v7046_v37  ;;  %v4839_v41 = vcombine.high %v4831_v35, %v4831_v35  ;;  %v4847_v49 = vrot.slane %v4831_v35, %v7046_v37 }
0x119c   :  { %v4840_v36 = vcombine.high %v4838_v44, %v4838_v44  ;;  %v4854_v56 = vrot.slane %v4838_v44, %v7046_v37  ;;  %v4861_v59 = vrot.slane %v4839_v41, %v7046_v37  ;;  %v4869_v61 = vcombine.high %v4847_v49, %v4847_v49 }
0x119d   :  { %v4791_v17 = vpop.f32.mrb[34].mxu0 }
0x119e   :  { %6451 = vtanh.f32 %v4791_v17  ;;  %v6225_v10 = vpop.f32.mrb[35].mxu0  ;;  %v4868_v51 = vrot.slane %v4840_v36, %v7046_v37  ;;  %v4870_v19 = vcombine.high %v4854_v56, %v4854_v56 }
0x11a0   :  { %v6448_v39 = vpop.eup %6447  ;;  %v4872_v5 = vcombine.high %v4868_v51, %v4868_v51 }
0x11a1   :  { %v4873_v52 = vcombine.high %v6448_v39, %v6448_v39  ;;  %v4880_v31 = vrot.slane %v6448_v39, %v7046_v37  ;;  %v4796_v43 = vpop.f32.mrb[36].mxu0 }
0x11a2   :  { %6453 = vtanh.f32 %v4796_v43  ;;  %v6228_v54 = vpop.f32.mrb[37].mxu0  ;;  %v5167_v60 = vcombine.low %v4847_v49, %v4872_v5 }
0x11a3   :  { %v4887_v6 = vrot.slane %v4873_v52, %v7046_v37  ;;  %v4888_v18 = vcombine.high %v4880_v31, %v4880_v31  ;;  %v4896_v40 = vrot.slane %v4880_v31, %v7046_v37 }
0x11a4   :  { %v6450_v58 = vpop.eup %6449  ;;  %v5177_v22 = vrot.slane %v5167_v60, %v7046_v37 }
0x11a5   :  { %v4889_v63 = vcombine.high %v4887_v6, %v4887_v6  ;;  %v4903_v30 = vrot.slane %v4887_v6, %v7046_v37  ;;  %v4910_v0 = vrot.slane %v4888_v18, %v7046_v37  ;;  %v7612_v16 = vpop.f32.mrb[38].mxu0  ;;  %v5216_v42 = vcombine.low %v4861_v59, %v4896_v40 }
0x11a6   :  { %v5797_v53 = vcombine.high %v4861_v59, %v4896_v40  ;;  %v4922_v3 = vcombine.high %v6450_v58, %v6450_v58  ;;  %v4929_v50 = vrot.slane %v6450_v58, %v7046_v37  ;;  %v6231_v7 = vpop.f32.mrb[39].mxu0  ;;  %6455 = vtanh.f32 %v7612_v16 }
0x11a7   :  { %v4917_v48 = vrot.slane %v4889_v63, %v7046_v37  ;;  %v4920_v47 = vcombine.high %v4910_v0, %v4910_v0  ;;  %v5265_v46 = vcombine.low %v4869_v61, %v4910_v0  ;;  %v5412_v15 = vcombine.low %v4868_v51, %v4903_v30 }
0x11a8   :  { %v6452_v45 = vpop.eup %6451  ;;  %v4936_v57 = vrot.slane %v4922_v3, %v7046_v37  ;;  %v4919_v8 = vcombine.high %v4903_v30, %v4903_v30  ;;  %v4937_v23 = vcombine.high %v4929_v50, %v4929_v50  ;;  %v4945_v24 = vrot.slane %v4929_v50, %v7046_v37 }
0x11a9   :  { %v5363_v38 = vcombine.low %v4854_v56, %v4920_v47  ;;  %v5461_v21 = vcombine.low %v4870_v19, %v4917_v48  ;;  %v7618_v14 = vpop.f32.mrb[40].mxu0  ;;  %v4971_v25 = vcombine.high %v6452_v45, %v6452_v45  ;;  %v7622_v12 = vrot.slane %v5216_v42, %v7046_v37 }
0x11aa   :  { %v6234_v55 = vpop.f32.mrb[41].mxu0  ;;  %v7625_v11 = vrot.slane %v5797_v53, %v7046_v37  ;;  %v4938_v26 = vcombine.high %v4936_v57, %v4936_v57  ;;  %v4952_v2 = vrot.slane %v4936_v57, %v7046_v37  ;;  %v5275_v13 = vrot.slane %v5265_v46, %v7046_v37 }
0x11ab   :  { %v7630_v20 = vrot.slane %v5412_v15, %v7046_v37  ;;  %v4978_v28 = vrot.slane %v6452_v45, %v7046_v37  ;;  %v4985_v1 = vrot.slane %v4971_v25, %v7046_v37  ;;  %v5373_v27 = vrot.slane %v5363_v38, %v7046_v37 }
0x11ac   :  { %v6454_v62 = vpop.eup %6453  ;;  %v4966_v29 = vrot.slane %v4938_v26, %v7046_v37  ;;  %v5795_v9 = vcombine.high %v4917_v48, %v4952_v2  ;;  %v4959_v33 = vrot.slane %v4937_v23, %v7046_v37  ;;  %v4967_v34 = vcombine.high %v4945_v24, %v4945_v24 }
0x11ad   :  { %v5020_v32 = vcombine.high %v6454_v62, %v6454_v62  ;;  %v4986_v4 = vcombine.high %v4978_v28, %v4978_v28  ;;  %v4994_v35 = vrot.slane %v4978_v28, %v7046_v37  ;;  %v5027_v36 = vrot.slane %v6454_v62, %v7046_v37 }
0x11ae   :  { %v4970_v44 = vcombine.high %v4966_v29, %v4966_v29  ;;  %v5168_v17 = vcombine.low %v4919_v8, %v4966_v29  ;;  %v5233_v10 = vrot.slane %v5795_v9, %v7046_v37  ;;  %v4987_v39 = vcombine.high %v4985_v1, %v4985_v1 }
0x11af   :  { %v5008_v41 = vrot.slane %v4986_v4, %v7046_v37  ;;  %v5315_v49 = vcombine.low %v4959_v33, %v4994_v35  ;;  %v5034_v51 = vrot.slane %v5020_v32, %v7046_v37  ;;  %v5799_v56 = vcombine.high %v4959_v33, %v4994_v35 }
0x11b0   :  { %v5184_v52 = vrot.slane %v5168_v17, %v7046_v37  ;;  %v5248_v31 = vcombine.low %v7622_v12, %v5233_v10  ;;  %v5266_v43 = vcombine.low %v4945_v24, %v4970_v44  ;;  %v5001_v54 = vrot.slane %v4985_v1, %v7046_v37  ;;  %v6456_v23 = vpop.eup %6455 }
0x11b1   :  { %v5018_v5 = vcombine.high %v5008_v41, %v5008_v41  ;;  %v5331_v6 = vrot.slane %v5315_v49, %v7046_v37  ;;  %v5364_v18 = vcombine.low %v4967_v34, %v5008_v41  ;;  %v7650_v59 = vrot.slane %v5799_v56, %v7046_v37 }
0x11b2   :  { %v7646_v40 = vcombine.low %v5177_v22, %v5184_v52  ;;  %v5282_v58 = vrot.slane %v5266_v43, %v7046_v37  ;;  %v5035_v61 = vcombine.high %v5027_v36, %v5027_v36  ;;  %v5036_v0 = vcombine.high %v5034_v51, %v5034_v51 }
0x11b3   :  { %v5346_v60 = vcombine.low %v7625_v11, %v5331_v6  ;;  %v5380_v63 = vrot.slane %v5364_v18, %v7046_v37  ;;  %v5462_v30 = vcombine.low %v4952_v2, %v5018_v5  ;;  %v5471_v42 = vrot.slane %v5461_v21, %v7046_v37 }
0x11b4   :  { %v7655_v53 = vcombine.low %v5275_v13, %v5282_v58  ;;  %v5444_v3 = vcombine.low %v7630_v20, %v7650_v59  ;;  %v5015_v50 = vrot.slane %v4987_v39, %v7046_v37  ;;  %v5050_v48 = vrot.slane %v5034_v51, %v7046_v37 }
0x11b5   :  { %v7660_v7 = vcombine.low %v5373_v27, %v5380_v63  ;;  %v5478_v19 = vrot.slane %v5462_v30, %v7046_v37  ;;  %v5017_v47 = vcombine.high %v5001_v54, %v5001_v54  ;;  %v5057_v45 = vrot.slane %v5035_v61, %v7046_v37 }
0x11b6   :  { %v5064_v46 = vrot.slane %v5036_v0, %v7046_v37  ;;  %v5218_v22 = vcombine.low %v5015_v50, %v5050_v48  ;;  %v5798_v57 = vcombine.high %v5015_v50, %v5050_v48  ;;  %6457 = vtanh.f32 %v7618_v14 }
0x11b7   :  { %v7666_v15 = vcombine.low %v5471_v42, %v5478_v19  ;;  %v5067_v38 = vcombine.high %v5057_v45, %v5057_v45  ;;  %v5043_v24 = vrot.slane %v5027_v36, %v7046_v37  ;;  %v5069_v25 = vcombine.high %v6456_v23, %v6456_v23 }
0x11b8   :  { %v7668_v21 = vcombine.low %v5017_v47, %v5064_v46  ;;  %v5076_v55 = vrot.slane %v6456_v23, %v7046_v37  ;;  %v7675_v11 = vrot.slane %v5248_v31, %v7046_v37  ;;  %v5068_v26 = vcombine.high %v5064_v46, %v5064_v46 }
0x11b9   :  { %v5169_v8 = vcombine.low %v5001_v54, %v5067_v38  ;;  %v5083_v2 = vrot.slane %v5069_v25, %v7046_v37  ;;  %v5207_v14 = vrot.slane %v7646_v40, %v7046_v37  ;;  %v5305_v28 = vrot.slane %v7655_v53, %v7046_v37 }
0x11ba   :  { %v5084_v62 = vcombine.high %v5076_v55, %v5076_v55  ;;  %v5092_v13 = vrot.slane %v5076_v55, %v7046_v37  ;;  %v7684_v1 = vrot.slane %v5346_v60, %v7046_v37  ;;  %v5065_v29 = vcombine.high %v5043_v24, %v5043_v24 }
0x11bb   :  { %v5240_v9 = vrot.slane %v5218_v22, %v7046_v37  ;;  %v5085_v32 = vcombine.high %v5083_v2, %v5083_v2  ;;  %v5365_v17 = vcombine.low %v5043_v24, %v5068_v26  ;;  %v5099_v10 = vrot.slane %v5083_v2, %v7046_v37 }
0x11bc   :  { %v5106_v33 = vrot.slane %v5084_v62, %v7046_v37  ;;  %v5414_v34 = vcombine.low %v5057_v45, %v5092_v13  ;;  %v5114_v36 = vcombine.high %v5092_v13, %v5092_v13  ;;  %v5191_v31 = vrot.slane %v5169_v8, %v7046_v37 }
0x11bd   :  { %v5113_v41 = vrot.slane %v5085_v32, %v7046_v37  ;;  %v5289_v43 = vrot.slane %v7668_v21, %v7046_v37  ;;  %v5338_v56 = vrot.slane %v5798_v57, %v7046_v37  ;;  %v5387_v58 = vrot.slane %v5365_v17, %v7046_v37 }
0x11be   :  { %v5463_v39 = vcombine.low %v5065_v29, %v5106_v33  ;;  %v5115_v61 = vcombine.high %v5099_v10, %v5099_v10  ;;  %v5436_v19 = vrot.slane %v5414_v34, %v7046_v37  ;;  %v5452_v2 = vrot.slane %v5444_v3, %v7046_v37 }
0x11bf   :  { %v5501_v59 = vrot.slane %v7666_v15, %v7046_v37 }
0x11c0   :  { %v6458_v12 = vpop.eup %6457  ;;  %v5485_v57 = vrot.slane %v5463_v39, %v7046_v37 }
0x11c1   :  { %v5118_v16 = vcombine.high %v6458_v12, %v6458_v12  ;;  %v5125_v27 = vrot.slane %v6458_v12, %v7046_v37 }
0x11c3   :  { %v5132_v4 = vrot.slane %v5118_v16, %v7046_v37  ;;  %v5133_v35 = vcombine.high %v5125_v27, %v5125_v27  ;;  %v5141_v44 = vrot.slane %v5125_v27, %v7046_v37 }
0x11c5   :  { %v5134_v49 = vcombine.high %v5132_v4, %v5132_v4  ;;  %v5148_v51 = vrot.slane %v5132_v4, %v7046_v37  ;;  %v5155_v52 = vrot.slane %v5133_v35, %v7046_v37  ;;  %v5796_v54 = vcombine.high %v5106_v33, %v5141_v44 }
0x11c6   :  { %v5403_v33 = vrot.slane %v7660_v7, %v7046_v37 }
0x11c7   :  { %v5162_v5 = vrot.slane %v5134_v49, %v7046_v37  ;;  %v5165_v6 = vcombine.high %v5155_v52, %v5155_v52  ;;  %v5170_v18 = vcombine.low %v5114_v36, %v5155_v52  ;;  %v5317_v40 = vcombine.low %v5113_v41, %v5148_v51 }
0x11c8   :  { %v5247_v60 = vrot.slane %v5796_v54, %v7046_v37  ;;  %v5800_v63 = vcombine.high %v5113_v41, %v5148_v51 }
0x11c9   :  { %v5166_v30 = vcombine.high %v5162_v5, %v5162_v5  ;;  %v5198_v0 = vrot.slane %v5170_v18, %v7046_v37  ;;  %v5268_v42 = vcombine.low %v5099_v10, %v5165_v6  ;;  %v5345_v50 = vrot.slane %v5317_v40, %v7046_v37 }
0x11ca   :  { %v5249_v48 = vcombine.low %v5240_v9, %v5247_v60  ;;  %v5366_v47 = vcombine.low %v5115_v61, %v5162_v5  ;;  %v5443_v45 = vrot.slane %v5800_v63, %v7046_v37 }
0x11cb   :  { %v5200_v46 = vcombine.low %v5191_v31, %v5198_v0  ;;  %v5296_v22 = vrot.slane %v5268_v42, %v7046_v37  ;;  %v5347_v38 = vcombine.low %v5338_v56, %v5345_v50  ;;  %v5464_v21 = vcombine.low %v5141_v44, %v5166_v30 }
0x11cc   :  { %v5263_v8 = vrot.slane %v5249_v48, %v7046_v37  ;;  %v5394_v23 = vrot.slane %v5366_v47, %v7046_v37  ;;  %v5445_v24 = vcombine.low %v5436_v19, %v5443_v45 }
0x11cd   :  { %v5214_v25 = vrot.slane %v5200_v46, %v7046_v37  ;;  %v5298_v55 = vcombine.low %v5289_v43, %v5296_v22  ;;  %v5361_v12 = vrot.slane %v5347_v38, %v7046_v37  ;;  %v5492_v26 = vrot.slane %v5464_v21, %v7046_v37 }
0x11ce   :  { %v5264_v62 = vcombine.low %v7675_v11, %v5263_v8  ;;  %v5396_v13 = vcombine.low %v5387_v58, %v5394_v23  ;;  %v5459_v16 = vrot.slane %v5445_v24, %v7046_v37 }
0x11cf   :  { %v5215_v27 = vcombine.low %v5207_v14, %v5214_v25  ;;  %v5312_v29 = vrot.slane %v5298_v55, %v7046_v37  ;;  %v5362_v9 = vcombine.low %v7684_v1, %v5361_v12  ;;  %v5494_v32 = vcombine.low %v5485_v57, %v5492_v26 }
0x11d0   :  { %v5410_v34 = vrot.slane %v5396_v13, %v7046_v37  ;;  %v5460_v4 = vcombine.low %v5452_v2, %v5459_v16  ;;  %5518 = vst.msk [vmem:[#allocation12 + $0x8] sm:$0xff] %vm215_vm2, %v5264_v62 }
0x11d1   :  { %v5313_v20 = vcombine.low %v5305_v28, %v5312_v29  ;;  %v5508_v3 = vrot.slane %v5494_v32, %v7046_v37  ;;  %5517 = vst.msk [vmem:[#allocation12] sm:$0xff] %vm215_vm2, %v5215_v27  ;;  %5520 = vst.msk [vmem:[#allocation12 + $0x18] sm:$0xff] %vm215_vm2, %v5362_v9 }
0x11d2   :  { %v5411_v7 = vcombine.low %v5403_v33, %v5410_v34  ;;  %5522 = vst.msk [vmem:[#allocation12 + $0x28] sm:$0xff] %vm215_vm2, %v5460_v4 }
0x11d3   :  { %v5509_v11 = vcombine.low %v5501_v59, %v5508_v3  ;;  %5519 = vst.msk [vmem:[#allocation12 + $0x10] sm:$0xff] %vm215_vm2, %v5313_v20 }
0x11d4   :  { %5521 = vst.msk [vmem:[#allocation12 + $0x20] sm:$0xff] %vm215_vm2, %v5411_v7 }
0x11d5   :  { %5523 = vst.msk [vmem:[#allocation12 + $0x30] sm:$0xff] %vm215_vm2, %v5509_v11 }
0x11d6   :  { %6602 = shalt.err (!%p6599_p10)
}
0x11d7   :  { %s6603_s4 = scalar_lea.hbm %s7762_s10, 896 }
0x11d8   :  { %p6604_p11 = scmp.ne.s32.totalorder %s7762_s10, %s6603_s4  ;;  %p6607_p12 = scmp.lt.u32.totalorder %s6603_s4, %s7762_s10 }
0x11da   :  { %p6609_p13 = pnand %p6607_p12, %p6604_p11 }
0x11dc   :  { %6612 = shalt.err (!%p6609_p13)
}
0x11dd   :  { %5677 = dma.vmem_to_hbm [thread:$0]  %s5672_s28, 896, %s7762_s10, [#allocation6], %s6637_s18, %s6637_s18, %s6638_s8  }
0x11de   :  { %6619 = dma.done.wait [#allocation6], 896  }
0x11df   :  { %6620 = vsyncadd [#allocation6], 4294966400 }
0x11e0   :  { %6621 = dma.done.wait [#allocation14], 1024  }
0x11e1   :  { %6622 = vsyncadd [#allocation14], 4294966272 }
0x11e2   :  { %5709 = vsyncpa [#allocation5], 1 }
0x11e3   :  { %5710 = vsyncpa [#allocation8], 1 }
0x11e4   :  { %5711 = vsyncpa [#allocation11], 1 }
0x11e5   :  { %5712 = vsyncpa [#allocation6], 1 }
0x11e6   :  { %5713 = vsyncpa [#allocation14], 1 }

// kernel: tpu_custom_call.1
= control target key start
LH: loop header
LB: loop body
LE: loop exit
PB: predicated region body
PF: predicated region fallthrough
CT: control target
= control target key end

     0   :  { %18 = vsyncpa [#allocation5], 0  ;;  %s7752_s0 = inlined_call_operand.vmem [shape: bf16[8,8,16], index: 0, kind: input, shape index: {}]   ;;  %s7753_s1 = inlined_call_operand.hbm [shape: bf16[7,8,16], index: 1, kind: input, shape index: {}]   ;;  %s7754_s2 = inlined_call_operand.hbm [shape: f32[8,8], index: 2, kind: input, shape index: {}]   ;;  %s7755_s3 = inlined_call_operand.hbm [shape: bf16[16,32], index: 3, kind: input, shape index: {}]   ;;  %s7756_s4 = inlined_call_operand.vmem [shape: f32[1,32], index: 4, kind: input, shape index: {}]   ;;  %s7757_s5 = inlined_call_operand.vmem [shape: f32[32,32], index: 5, kind: input, shape index: {}]   ;;  %s7758_s6 = inlined_call_operand.hbm [shape: bf16[16,32], index: 6, kind: input, shape index: {}]   ;;  %s7759_s7 = inlined_call_operand.vmem [shape: f32[1,32], index: 7, kind: input, shape index: {}]   ;;  %s7760_s8 = inlined_call_operand.vmem [shape: f32[32,32], index: 8, kind: input, shape index: {}]   ;;  %s7761_s9 = inlined_call_operand.vmem [shape: f32[64,32], index: 9, kind: input, shape index: {}]   ;;  %s7762_s10 = inlined_call_operand.hbm [shape: f32[7,8,32], index: 10, kind: output, shape index: {0}]   ;;  %s7763_s11 = inlined_call_operand.hbm [shape: f32[7,8,8], index: 11, kind: output, shape index: {1}]   ;;  %s7764_s12 = inlined_call_operand.hbm [shape: f32[8,32], index: 12, kind: output, shape index: {2}]  }
   0x1   :  { %19 = vsyncpa [#allocation8], 0 }
   0x2   :  { %20 = vsyncpa [#allocation11], 0 }
   0x3   :  { %21 = vsyncpa [#allocation6], 0 }
   0x4   :  { %22 = vsyncpa [#allocation14], 0  ;;  %s6623_s21 = smov [#allocation7]   ;;  %s6624_s23 = smov [#allocation4]  }
   0x5   :  { %s43_s22 = sshll.u32 %s6623_s21, 4  ;;  %s30_s24 = sshll.u32 %s6624_s23, 4  ;;  %s44_s22 = int_to_ptr.vmem [resolvable:$true] %s43_s22  ;;  %s6706_s24 = int_to_ptr.vmem [resolvable:$true] %s30_s24 }
   0x6   :  { %s6459_s27 = scalar_lea.hbm %s7754_s2, 128 }
   0x7   :  { %p6460_p0 = scmp.ne.s32.totalorder %s7754_s2, %s6459_s27  ;;  %p6463_p1 = scmp.lt.u32.totalorder %s6459_s27, %s7754_s2 }
   0x9   :  { %p6465_p2 = pnand %p6463_p1, %p6460_p0 }
   0xb   :  { %6468 = shalt.err (!%p6465_p2)
}
   0xc   :  { %s6469_s14 = scalar_lea.vmem %s44_s22, 128  ;;  %p6474_p4 = scmp.lt.s32.totalorder %s44_s22, %s44_s22 }
   0xd   :  { %p6470_p3 = scmp.ne.s32.totalorder %s44_s22, %s6469_s14  ;;  %p6475_p5 = scmp.lt.s32.totalorder %s6469_s14, %s6469_s14 }
   0xf   :  { %p6476_p6 = por %p6475_p5, %p6474_p4 }
  0x11   :  { %p6477_p7 = pnand %p6476_p6, %p6470_p3 }
  0x13   :  { %6480 = shalt.err (!%p6477_p7)
}
  0x14   :  { %46 = dma.hbm_to_vmem [thread:$0]  %s7754_s2, 128, %s44_s22, [#allocation8]  }
  0x15   :  { %s6481_s19 = scalar_lea.hbm %s7753_s1, 448 }
  0x16   :  { %p6482_p8 = scmp.ne.s32.totalorder %s7753_s1, %s6481_s19  ;;  %p6485_p9 = scmp.lt.u32.totalorder %s6481_s19, %s7753_s1 }
  0x18   :  { %p6487_p10 = pnand %p6485_p9, %p6482_p8 }
  0x1a   :  { %6490 = shalt.err (!%p6487_p10)
}
  0x1b   :  { %s6491_s26 = scalar_lea.vmem %s6706_s24, 448  ;;  %p6496_p12 = scmp.lt.s32.totalorder %s6706_s24, %s6706_s24 }
  0x1c   :  { %p6492_p11 = scmp.ne.s32.totalorder %s6706_s24, %s6491_s26  ;;  %p6497_p13 = scmp.lt.s32.totalorder %s6491_s26, %s6491_s26 }
  0x1e   :  { %p6498_p0 = por %p6497_p13, %p6496_p12 }
  0x20   :  { %p6499_p1 = pnand %p6498_p0, %p6492_p11 }
  0x22   :  { %6502 = shalt.err (!%p6499_p1)
}
  0x23   :  { %s6625_s2 = smov 64   ;;  %s6626_s22 = smov 4  }
  0x24   :  { %36 = dma.hbm_to_vmem [thread:$0]  %s7753_s1, 448, %s6706_s24, [#allocation5], %s6625_s2, %s6625_s2, %s6626_s22  }
  0x25   :  { %s6627_s29 = smov [#allocation9]   ;;  %s6628_s13 = smov [#allocation10]  }
  0x26   :  { %s52_s30 = sshll.u32 %s6627_s29, 4  ;;  %s68_s14 = sshll.u32 %s6628_s13, 4  ;;  %s53_s30 = int_to_ptr.vmem [resolvable:$true] %s52_s30  ;;  %s6740_s14 = int_to_ptr.vmem [resolvable:$true] %s68_s14 }
  0x27   :  { %s6503_s17 = scalar_lea.hbm %s7755_s3, 128 }
  0x28   :  { %p6504_p2 = scmp.ne.s32.totalorder %s7755_s3, %s6503_s17  ;;  %p6507_p3 = scmp.lt.u32.totalorder %s6503_s17, %s7755_s3 }
  0x2a   :  { %p6509_p4 = pnand %p6507_p3, %p6504_p2 }
  0x2c   :  { %6512 = shalt.err (!%p6509_p4)
}
  0x2d   :  { %s6513_s1 = scalar_lea.vmem %s53_s30, 128  ;;  %p6518_p6 = scmp.lt.s32.totalorder %s53_s30, %s53_s30 }
  0x2e   :  { %p6514_p5 = scmp.ne.s32.totalorder %s53_s30, %s6513_s1  ;;  %p6519_p7 = scmp.lt.s32.totalorder %s6513_s1, %s6513_s1 }
  0x30   :  { %p6520_p8 = por %p6519_p7, %p6518_p6 }
  0x32   :  { %p6521_p9 = pnand %p6520_p8, %p6514_p5 }
  0x34   :  { %6524 = shalt.err (!%p6521_p9)
}
  0x35   :  { %58 = dma.hbm_to_vmem [thread:$0]  %s7755_s3, 128, %s53_s30, [#allocation8], %s6625_s2, %s6625_s2, %s6626_s22  }
  0x36   :  { %s6525_s27 = scalar_lea.hbm %s7758_s6, 128 }
  0x37   :  { %p6526_p10 = scmp.ne.s32.totalorder %s7758_s6, %s6525_s27  ;;  %p6529_p11 = scmp.lt.u32.totalorder %s6525_s27, %s7758_s6 }
  0x39   :  { %p6531_p12 = pnand %p6529_p11, %p6526_p10 }
  0x3b   :  { %6534 = shalt.err (!%p6531_p12)
}
  0x3c   :  { %s6535_s16 = scalar_lea.vmem %s6740_s14, 128  ;;  %p6540_p0 = scmp.lt.s32.totalorder %s6740_s14, %s6740_s14 }
  0x3d   :  { %p6536_p13 = scmp.ne.s32.totalorder %s6740_s14, %s6535_s16  ;;  %p6541_p1 = scmp.lt.s32.totalorder %s6535_s16, %s6535_s16 }
  0x3f   :  { %p6542_p2 = por %p6541_p1, %p6540_p0 }
  0x41   :  { %p6543_p3 = pnand %p6542_p2, %p6536_p13 }
  0x43   :  { %6546 = shalt.err (!%p6543_p3)
}
  0x44   :  { %74 = dma.hbm_to_vmem [thread:$0]  %s7758_s6, 128, %s6740_s14, [#allocation11], %s6625_s2, %s6625_s2, %s6626_s22  }
  0x45   :  { %6613 = dma.done.wait [#allocation5], 448  }
  0x46   :  { %6614 = vsyncadd [#allocation5], 4294966848 }
  0x47   :  { %6615 = dma.done.wait [#allocation8], 256  }
  0x48   :  { %6616 = vsyncadd [#allocation8], 4294967040 }
  0x49   :  { %6617 = dma.done.wait [#allocation11], 128  }
  0x4a   :  { %6618 = vsyncadd [#allocation11], 4294967168  ;;  %v6629_v0 = vmov 0.0|0.0   ;;  %vm6630_vm0 = vmmov 0   ;;  %v6631_v1 = vmov 0.0   ;;  %v6355_v2 = vld [vmem:[#allocation9] sm:$0xff]  }
  0x4b   :  { %6247 = vmatprep.subr.bf16.mxu0 %v6629_v0  ;;  %5983 = vmatprep.mubr.msk.f32.mxu0 %vm6630_vm0, %v6631_v1  ;;  %vm137_vm1 = vcmask 130048   ;;  %v6356_v3 = vld [vmem:[%s7752_s0] sm:$0xff]   ;;  %v6357_v4 = vld [vmem:[%s7752_s0 + $0x8] sm:$0xff]   ;;  %v6359_v6 = vld [vmem:[%s7752_s0 + $0x10] sm:$0xff]   ;;  %vm215_vm2 = vcmask 261120   ;;  %vm2509_vm3 = vcmask 63488  }
  0x4c   :  { %5933 = vmatprep.subr.bf16.mxu1 %v6355_v2  ;;  %5935 = vmatprep.mubr.msk.bf16.mxu1 %vm137_vm1, %v6356_v3  ;;  %v6358_v5 = vld [vmem:[#allocation10] sm:$0xff]   ;;  %v6360_v10 = vld [vmem:[%s7752_s0 + $0x18] sm:$0xff]   ;;  %v349_v11 = vld [vmem:[%s7757_s5 + $0x10] sm:$0xff]  ;;  %vm2598_vm4 = vcmask 64512   ;;  %vm4688_vm5 = vcmask 523264  }
  0x4d   :  { %5934 = vmatpush3.bf16.msra.mxu1 %v6355_v2  ;;  %v347_v7 = vld [vmem:[%s7757_s5] sm:$0xff]  ;;  %v348_v8 = vld [vmem:[%s7757_s5 + $0x8] sm:$0xff]  ;;  %v350_v12 = vld [vmem:[%s7757_s5 + $0x18] sm:$0xff] }
  0x4e   :  { %5943 = vmatprep.subr.bf16.mxu1 %v6358_v5  ;;  %v6799_v9 = vpack.c.bf16 %v348_v8, %v347_v7  ;;  %v6361_v13 = vld [vmem:[#allocation4] sm:$0xff]   ;;  %v6812_v14 = vpack.c.bf16 %v350_v12, %v349_v11  ;;  %v6362_v15 = vld [vmem:[#allocation4 + $0x8] sm:$0xff]   ;;  %v6363_v16 = vld [vmem:[#allocation4 + $0x10] sm:$0xff]   ;;  %v6632_v8 = vmov 1983009808   ;;  %v1537_v11 = vlaneseq }
  0x4f   :  { %v6364_v17 = vld [vmem:[#allocation4 + $0x18] ss:$0 sps:$4 sm:$0xff]   ;;  %v5714_v18 = vld [vmem:[%s7756_s4] ss:$0 sm:$0xff] }
  0x50   :  { %5936 = vmatmul.mubr.msk.bf16.vlgmr.msra.gmra.mrb[0].mxu1 %vm137_vm1, %v6357_v4  ;;  %6249 = vmatpush3.bf16.msra.mxu0 %v6799_v9  ;;  %v5724_v35 = vld [vmem:[%s7759_s7] ss:$0 sm:$0xff] }
  0x51   :  { %5944 = vmatpush3.bf16.msra.mxu1 %v6358_v5  ;;  %5939 = vmatprep.mubr.msk.bf16.mxu1 %vm137_vm1, %v6359_v6 }
  0x52   :  { %6235 = vmatprep.subr.bf16.mxu1 %v6629_v0  ;;  %6250 = vmatprep.subr.bf16.mxu0 %v6629_v0 }
  0x54   :  { %6252 = vmatpush3.bf16.msra.mxu0 %v6812_v14 }
  0x55   :  { %6259 = vmatprep.subr.bf16.mxu0 %v6629_v0 }
  0x58   :  { %5940 = vmatmul.mubr.msk.bf16.gmra.mrb[4].mxu1 %vm137_vm1, %v6360_v10  ;;  %v1535_v10 = vunpack.c.l.s4 %v6632_v8 }
  0x59   :  { %5945 = vmatprep.mubr.msk.bf16.mxu1 %vm137_vm1, %v6361_v13 }
  0x5a   :  { %v1536_v13 = vunpack.c.0.s8 %v1535_v10 }
  0x60   :  { %5946 = vmatmul.mubr.msk.bf16.vlgmr.msra.gmra.mrb[8].mxu1 %vm137_vm1, %v6362_v15  ;;  %v6884_v15 = vshrl.u32 %v1537_v11, 7 }
  0x61   :  { %6237 = vmatpush3.bf16.msra.mxu1 %v6799_v9  ;;  %5949 = vmatprep.mubr.msk.bf16.mxu1 %vm137_vm1, %v6363_v16 }
  0x62   :  { %6238 = vmatprep.subr.bf16.mxu1 %v6629_v0 }
  0x65   :  { %6240 = vmatpush3.bf16.msra.mxu1 %v6812_v14 }
  0x66   :  { %6241 = vmatprep.subr.bf16.mxu1 %v6629_v0 }
  0x68   :  { %5950 = vmatmul.mubr.msk.bf16.gmra.mrb[12].mxu1 %vm137_vm1, %v6364_v17  ;;  %v6889_v17 = vsub.s32 %v1536_v13, %v6884_v15 }
  0x69   :  { %5961 = vmatprep.mubr.msk.f32.mxu1 %vm6630_vm0, %v6631_v1 }
  0x70   :  { %5962 = vmatmul.mubr.f32.vlgmr.msra.gmra.mrb[16].mxu1 %v6631_v1 }
  0x71   :  { %6243 = vmatpush3.bf16.msra.mxu1 %v6799_v9  ;;  %5972 = vmatprep.mubr.msk.f32.mxu1 %vm6630_vm0, %v6631_v1 }
  0x72   :  { %6244 = vmatprep.subr.bf16.mxu1 %v6629_v0 }
  0x75   :  { %6246 = vmatpush3.bf16.msra.mxu1 %v6812_v14 }
  0x76   :  { %6253 = vmatprep.subr.bf16.mxu1 %v6629_v0 }
 0x123   :  { %v5937_v19 = vpop.f32.mrb[0].mxu1 }
 0x124   :  { %v193_v20 = vadd.f32 %v5937_v19, %v5714_v18  ;;  %v184_v21 = vpop.f32.mrb[1].mxu1 }
 0x125   :  { %v185_v22 = vadd.f32 %v5714_v18, %v184_v21  ;;  %v5938_v23 = vpop.f32.mrb[2].mxu1 }
 0x126   :  { %218 = vst.msk [vmem:[#allocation2 + $0x10] sm:$0xff] %vm215_vm2, %v193_v20  ;;  %v196_v24 = vadd.f32 %v5938_v23, %v5714_v18  ;;  %v187_v25 = vpop.f32.mrb[3].mxu1 }
 0x127   :  { %216 = vst.msk [vmem:[#allocation2] sm:$0xff] %vm215_vm2, %v185_v22  ;;  %v188_v26 = vadd.f32 %v5714_v18, %v187_v25 }
 0x128   :  { %219 = vst.msk [vmem:[#allocation2 + $0x18] sm:$0xff] %vm215_vm2, %v196_v24 }
 0x129   :  { %217 = vst.msk [vmem:[#allocation2 + $0x8] sm:$0xff] %vm215_vm2, %v188_v26 }
 0x12b   :  { %v5941_v27 = vpop.f32.mrb[4].mxu1 }
 0x12c   :  { %v209_v28 = vadd.f32 %v5941_v27, %v5714_v18  ;;  %v200_v29 = vpop.f32.mrb[5].mxu1 }
 0x12d   :  { %v201_v30 = vadd.f32 %v5714_v18, %v200_v29  ;;  %v5942_v31 = vpop.f32.mrb[6].mxu1  ;;  %v511_v61 = vld [vmem:[#allocation2 + $0x10] sm:$0xff] }
 0x12e   :  { %222 = vst.msk [vmem:[#allocation2 + $0x30] sm:$0xff] %vm215_vm2, %v209_v28  ;;  %v212_v32 = vadd.f32 %v5942_v31, %v5714_v18  ;;  %v203_v33 = vpop.f32.mrb[7].mxu1  ;;  %v355_v51 = vld [vmem:[#allocation2] sm:$0xff] }
 0x12f   :  { %220 = vst.msk [vmem:[#allocation2 + $0x20] sm:$0xff] %vm215_vm2, %v201_v30  ;;  %v204_v34 = vadd.f32 %v5714_v18, %v203_v33  ;;  %v589_v4 = vld [vmem:[#allocation2 + $0x18] sm:$0xff] }
 0x130   :  { %223 = vst.msk [vmem:[#allocation2 + $0x38] sm:$0xff] %vm215_vm2, %v212_v32  ;;  %v433_v56 = vld [vmem:[#allocation2 + $0x8] sm:$0xff] }
 0x131   :  { %221 = vst.msk [vmem:[#allocation2 + $0x28] sm:$0xff] %vm215_vm2, %v204_v34 }
 0x133   :  { %v5947_v36 = vpop.f32.mrb[8].mxu1 }
 0x134   :  { %v319_v37 = vadd.f32 %v5947_v36, %v5724_v35  ;;  %v310_v38 = vpop.f32.mrb[9].mxu1  ;;  %v352_v36 = vld [vmem:[%s7760_s8 + $0x8] sm:$0xff] }
 0x135   :  { %v311_v39 = vadd.f32 %v5724_v35, %v310_v38  ;;  %v5948_v40 = vpop.f32.mrb[10].mxu1  ;;  %v353_v38 = vld [vmem:[%s7760_s8 + $0x10] sm:$0xff] }
 0x136   :  { %342 = vst.msk [vmem:[#allocation3 + $0x10] sm:$0xff] %vm215_vm2, %v319_v37  ;;  %v322_v41 = vadd.f32 %v5948_v40, %v5724_v35  ;;  %v313_v42 = vpop.f32.mrb[11].mxu1  ;;  %v667_v22 = vld [vmem:[#allocation2 + $0x20] sm:$0xff] }
 0x137   :  { %340 = vst.msk [vmem:[#allocation3] sm:$0xff] %vm215_vm2, %v311_v39  ;;  %v314_v43 = vadd.f32 %v5724_v35, %v313_v42  ;;  %v354_v39 = vld [vmem:[%s7760_s8 + $0x18] sm:$0xff] }
 0x138   :  { %343 = vst.msk [vmem:[#allocation3 + $0x18] sm:$0xff] %vm215_vm2, %v322_v41  ;;  %v745_v27 = vld [vmem:[#allocation2 + $0x28] sm:$0xff]  ;;  %v6934_v40 = vpack.c.bf16 %v354_v39, %v353_v38  ;;  %v901_v41 = vld [vmem:[#allocation2 + $0x38] sm:$0xff] }
 0x139   :  { %341 = vst.msk [vmem:[#allocation3 + $0x8] sm:$0xff] %vm215_vm2, %v314_v43 }
 0x13b   :  { %v5951_v44 = vpop.f32.mrb[12].mxu1 }
 0x13c   :  { %v335_v45 = vadd.f32 %v5951_v44, %v5724_v35  ;;  %v326_v46 = vpop.f32.mrb[13].mxu1 }
 0x13d   :  { %v327_v47 = vadd.f32 %v5724_v35, %v326_v46  ;;  %v5952_v48 = vpop.f32.mrb[14].mxu1  ;;  %v6633_v46 = vmov 1934713408   ;;  %v1134_v13 = vld [vmem:[#allocation3 + $0x10] sm:$0xff] }
 0x13e   :  { %346 = vst.msk [vmem:[#allocation3 + $0x30] sm:$0xff] %vm215_vm2, %v335_v45  ;;  %v329_v49 = vpop.f32.mrb[15].mxu1 }
 0x13f   :  { %344 = vst.msk [vmem:[#allocation3 + $0x20] sm:$0xff] %vm215_vm2, %v327_v47  ;;  %v330_v50 = vadd.f32 %v5724_v35, %v329_v49  ;;  %v351_v35 = vld [vmem:[%s7760_s8] sm:$0xff]  ;;  %v1599_v47 = vunpack.c.l.s4 %v6633_v46  ;;  %s6635_s8 = smov 32  }
 0x140   :  { %v6922_v37 = vpack.c.bf16 %v352_v36, %v351_v35 }
 0x141   :  { %345 = vst.msk [vmem:[#allocation3 + $0x28] sm:$0xff] %vm215_vm2, %v330_v50  ;;  %v1600_v49 = vunpack.c.0.s8 %v1599_v47 }
 0x143   :  { %v425_v52 = vpop.f32.mrb[16].mxu1 }
 0x144   :  { %v429_v53 = vadd.f32 %v425_v52, %v355_v51  ;;  %v5963_v54 = vpop.f32.mrb[17].mxu1 }
 0x145   :  { %v6953_v54 = vsub.s32 %v1600_v49, %v6884_v15  ;;  %v1446_v35 = vld [vmem:[#allocation3 + $0x30] sm:$0xff] }
 0x146   :  { %6383 = vtanh.f32 %v429_v53 }
 0x150   :  { %v6384_v55 = vpop.eup %6383 }
 0x151   :  { %431 = vst.msk [vmem:[#allocation2] sm:$0xff] %vm215_vm2, %v6384_v55  ;;  %5973 = vmatmul.mubr.msk.f32.vlgmr.msra.gmra.mrb[18].mxu1 %vm215_vm2, %v6384_v55 }
 0x152   :  { %6255 = vmatpush3.bf16.msra.mxu1 %v6799_v9  ;;  %5994 = vmatprep.mubr.msk.f32.mxu1 %vm6630_vm0, %v6631_v1 }
 0x153   :  { %6256 = vmatprep.subr.bf16.mxu1 %v6629_v0 }
 0x156   :  { %6258 = vmatpush3.bf16.msra.mxu1 %v6812_v14 }
 0x157   :  { %6265 = vmatprep.subr.bf16.mxu1 %v6629_v0 }
 0x224   :  { %v503_v57 = vpop.f32.mrb[18].mxu1 }
 0x225   :  { %v507_v58 = vadd.f32 %v503_v57, %v433_v56  ;;  %v5974_v59 = vpop.f32.mrb[19].mxu1 }
 0x227   :  { %6385 = vtanh.f32 %v507_v58 }
 0x231   :  { %v6386_v60 = vpop.eup %6385 }
 0x232   :  { %509 = vst.msk [vmem:[#allocation2 + $0x8] sm:$0xff] %vm215_vm2, %v6386_v60  ;;  %5984 = vmatmul.mubr.msk.f32.vlgmr.msra.gmra.mrb[0].mxu0 %vm215_vm2, %v6386_v60 }
 0x233   :  { %6261 = vmatpush3.bf16.msra.mxu0 %v6799_v9  ;;  %6005 = vmatprep.mubr.msk.f32.mxu0 %vm6630_vm0, %v6631_v1 }
 0x234   :  { %6262 = vmatprep.subr.bf16.mxu0 %v6629_v0 }
 0x237   :  { %6264 = vmatpush3.bf16.msra.mxu0 %v6812_v14 }
 0x238   :  { %6271 = vmatprep.subr.bf16.mxu0 %v6629_v0 }
 0x305   :  { %v581_v62 = vpop.f32.mrb[0].mxu0 }
 0x306   :  { %v585_v63 = vadd.f32 %v581_v62, %v511_v61  ;;  %v5985_v2 = vpop.f32.mrb[1].mxu0 }
 0x307   :  { %v978_v2 = vld [vmem:[#allocation3] sm:$0xff] }
 0x308   :  { %6387 = vtanh.f32 %v585_v63 }
 0x312   :  { %v6388_v3 = vpop.eup %6387 }
 0x313   :  { %587 = vst.msk [vmem:[#allocation2 + $0x10] sm:$0xff] %vm215_vm2, %v6388_v3  ;;  %5995 = vmatmul.mubr.msk.f32.vlgmr.msra.gmra.mrb[20].mxu1 %vm215_vm2, %v6388_v3 }
 0x314   :  { %6267 = vmatpush3.bf16.msra.mxu1 %v6799_v9  ;;  %6016 = vmatprep.mubr.msk.f32.mxu1 %vm6630_vm0, %v6631_v1 }
 0x315   :  { %6268 = vmatprep.subr.bf16.mxu1 %v6629_v0 }
 0x318   :  { %6270 = vmatpush3.bf16.msra.mxu1 %v6812_v14 }
 0x319   :  { %6277 = vmatprep.subr.bf16.mxu1 %v6629_v0 }
 0x31a   :  { %v6365_v16 = vld [vmem:[#allocation2] ss:$16 sps:$4 sm:$0xff]  }
 0x31b   :  { %v6893_v19 = vrot.slane %v6365_v16, %v6889_v17 }
 0x3e6   :  { %v659_v5 = vpop.f32.mrb[20].mxu1 }
 0x3e7   :  { %v663_v6 = vadd.f32 %v659_v5, %v589_v4  ;;  %v5996_v7 = vpop.f32.mrb[21].mxu1 }
 0x3e8   :  { %v1056_v7 = vld [vmem:[#allocation3 + $0x8] sm:$0xff] }
 0x3e9   :  { %6389 = vtanh.f32 %v663_v6 }
 0x3f3   :  { %v6390_v12 = vpop.eup %6389 }
 0x3f4   :  { %665 = vst.msk [vmem:[#allocation2 + $0x18] sm:$0xff] %vm215_vm2, %v6390_v12  ;;  %6006 = vmatmul.mubr.msk.f32.vlgmr.msra.gmra.mrb[2].mxu0 %vm215_vm2, %v6390_v12 }
 0x3f5   :  { %6273 = vmatpush3.bf16.msra.mxu0 %v6799_v9  ;;  %6027 = vmatprep.mubr.msk.f32.mxu0 %vm6630_vm0, %v6631_v1 }
 0x3f6   :  { %6274 = vmatprep.subr.bf16.mxu0 %v6629_v0 }
 0x3f9   :  { %6276 = vmatpush3.bf16.msra.mxu0 %v6812_v14 }
 0x3fa   :  { %6283 = vmatprep.subr.bf16.mxu0 %v6629_v0 }
 0x3fb   :  { %v6367_v18 = vld [vmem:[#allocation2 + $0x8] ss:$16 sps:$4 sm:$0xff]  }
 0x3fc   :  { %v6896_v20 = vrot.slane %v6367_v18, %v6889_v17 }
 0x3fe   :  { %v1597_v21 = vcombine.high %v6893_v19, %v6896_v20  ;;  %v1596_v53 = vcombine.low %v6893_v19, %v6896_v20 }
 0x400   :  { %v6956_v57 = vrot.slane %v1596_v53, %v6953_v54  ;;  %v1611_v59 = vrot.slane %v1597_v21, %v6953_v54  ;;  %v1212_v21 = vld [vmem:[#allocation3 + $0x18] sm:$0xff] }
 0x4c7   :  { %v737_v23 = vpop.f32.mrb[2].mxu0 }
 0x4c8   :  { %v741_v24 = vadd.f32 %v737_v23, %v667_v22  ;;  %v6007_v25 = vpop.f32.mrb[3].mxu0 }
 0x4ca   :  { %6391 = vtanh.f32 %v741_v24 }
 0x4d4   :  { %v6392_v26 = vpop.eup %6391 }
 0x4d5   :  { %743 = vst.msk [vmem:[#allocation2 + $0x20] sm:$0xff] %vm215_vm2, %v6392_v26  ;;  %6017 = vmatmul.mubr.msk.f32.vlgmr.msra.gmra.mrb[22].mxu1 %vm215_vm2, %v6392_v26  ;;  %v1290_v26 = vld [vmem:[#allocation3 + $0x20] sm:$0xff] }
 0x4d6   :  { %6279 = vmatpush3.bf16.msra.mxu1 %v6799_v9  ;;  %6038 = vmatprep.mubr.msk.f32.mxu1 %vm6630_vm0, %v6631_v1  ;;  %v823_v9 = vld [vmem:[#allocation2 + $0x30] sm:$0xff] }
 0x4d7   :  { %6280 = vmatprep.subr.bf16.mxu1 %v6629_v0 }
 0x4da   :  { %6282 = vmatpush3.bf16.msra.mxu1 %v6812_v14 }
 0x4db   :  { %6289 = vmatprep.subr.bf16.mxu1 %v6629_v0 }
 0x4dc   :  { %v1528_v46 = vld [vmem:[#allocation2 + $0x20] sm:$0xff] }
 0x5a8   :  { %v815_v28 = vpop.f32.mrb[22].mxu1 }
 0x5a9   :  { %v819_v29 = vadd.f32 %v815_v28, %v745_v27  ;;  %v6018_v30 = vpop.f32.mrb[23].mxu1 }
 0x5ab   :  { %6393 = vtanh.f32 %v819_v29 }
 0x5b5   :  { %v6394_v31 = vpop.eup %6393 }
 0x5b6   :  { %821 = vst.msk [vmem:[#allocation2 + $0x28] sm:$0xff] %vm215_vm2, %v6394_v31  ;;  %6028 = vmatmul.mubr.msk.f32.vlgmr.msra.gmra.mrb[4].mxu0 %vm215_vm2, %v6394_v31 }
 0x5b7   :  { %6049 = vmatprep.mubr.msk.f32.mxu0 %vm6630_vm0, %v6631_v1  ;;  %6285 = vmatpush3.bf16.msra.mxu0 %v6922_v37 }
 0x5b8   :  { %6286 = vmatprep.subr.bf16.mxu0 %v6629_v0 }
 0x5bb   :  { %6288 = vmatpush3.bf16.msra.mxu0 %v6934_v40 }
 0x5bc   :  { %6295 = vmatprep.subr.bf16.mxu0 %v6629_v0 }
 0x689   :  { %v893_v32 = vpop.f32.mrb[4].mxu0 }
 0x68a   :  { %v897_v33 = vadd.f32 %v893_v32, %v823_v9  ;;  %v6029_v34 = vpop.f32.mrb[5].mxu0  ;;  %v1368_v9 = vld [vmem:[#allocation3 + $0x28] sm:$0xff] }
 0x68c   :  { %6395 = vtanh.f32 %v897_v33 }
 0x696   :  { %v6396_v14 = vpop.eup %6395 }
 0x697   :  { %899 = vst.msk [vmem:[#allocation2 + $0x30] sm:$0xff] %vm215_vm2, %v6396_v14  ;;  %6039 = vmatmul.mubr.msk.f32.vlgmr.msra.gmra.mrb[24].mxu1 %vm215_vm2, %v6396_v14 }
 0x698   :  { %6060 = vmatprep.mubr.msk.f32.mxu1 %vm6630_vm0, %v6631_v1  ;;  %6291 = vmatpush3.bf16.msra.mxu1 %v6922_v37 }
 0x699   :  { %6292 = vmatprep.subr.bf16.mxu1 %v6629_v0 }
 0x69c   :  { %6294 = vmatpush3.bf16.msra.mxu1 %v6934_v40 }
 0x69d   :  { %6301 = vmatprep.subr.bf16.mxu1 %v6629_v0 }
 0x69e   :  { %v6369_v48 = vld [vmem:[#allocation2 + $0x20] ss:$16 sps:$4 sm:$0xff]  }
 0x69f   :  { %v1572_v51 = vrot.slane %v6369_v48, %v6889_v17  ;;  %v1524_v48 = vld [vmem:[#allocation2] sm:$0xff] }
 0x76a   :  { %v971_v42 = vpop.f32.mrb[24].mxu1 }
 0x76b   :  { %v975_v43 = vadd.f32 %v971_v42, %v901_v41  ;;  %v6040_v44 = vpop.f32.mrb[25].mxu1  ;;  %v1529_v41 = vld [vmem:[#allocation2 + $0x28] sm:$0xff]  ;;  %v1530_v42 = vld [vmem:[#allocation2 + $0x30] sm:$0xff] }
 0x76c   :  { %v1526_v44 = vld [vmem:[#allocation2 + $0x10] sm:$0xff]  ;;  %v1565_v49 = vcombine.high %v1528_v46, %v1530_v42 }
 0x76d   :  { %6397 = vtanh.f32 %v975_v43  ;;  %v1525_v43 = vld [vmem:[#allocation2 + $0x8] sm:$0xff] }
 0x777   :  { %v6398_v45 = vpop.eup %6397 }
 0x778   :  { %977 = vst.msk [vmem:[#allocation2 + $0x38] sm:$0xff] %vm215_vm2, %v6398_v45  ;;  %6050 = vmatmul.mubr.msk.f32.vlgmr.msra.gmra.mrb[6].mxu0 %vm215_vm2, %v6398_v45 }
 0x779   :  { %6297 = vmatpush3.bf16.msra.mxu0 %v6922_v37  ;;  %6071 = vmatprep.mubr.msk.f32.mxu0 %vm6630_vm0, %v6631_v1 }
 0x77a   :  { %6298 = vmatprep.subr.bf16.mxu0 %v6629_v0 }
 0x77d   :  { %6300 = vmatpush3.bf16.msra.mxu0 %v6934_v40 }
 0x77e   :  { %6307 = vmatprep.subr.bf16.mxu0 %v6629_v0 }
 0x77f   :  { %v6371_v50 = vld [vmem:[#allocation2 + $0x28] ss:$16 sps:$4 sm:$0xff]  }
 0x780   :  { %v1588_v52 = vrot.slane %v6371_v50, %v6889_v17  ;;  %v1531_v39 = vld [vmem:[#allocation2 + $0x38] sm:$0xff]  ;;  %v1533_v50 = vcombine.high %v1524_v48, %v1526_v44 }
 0x781   :  { %v1581_v45 = vcombine.high %v1529_v41, %v1531_v39 }
 0x782   :  { %v1628_v55 = vcombine.low %v1572_v51, %v1588_v52  ;;  %v1629_v56 = vcombine.high %v1572_v51, %v1588_v52 }
 0x783   :  { %v1595_v51 = vrot.slane %v1581_v45, %v6889_v17 }
 0x784   :  { %v6959_v58 = vrot.slane %v1628_v55, %v6953_v54  ;;  %v1643_v60 = vrot.slane %v1629_v56, %v6953_v54  ;;  %v1579_v56 = vrot.slane %v1565_v49, %v6889_v17 }
 0x786   :  { %v6966_v61 = vcombine.low %v1611_v59, %v1643_v60  ;;  %v6970_v62 = vcombine.high %v6956_v57, %v6959_v58  ;;  %v6972_v63 = vcombine.high %v1611_v59, %v1643_v60  ;;  %v7008_v31 = vcombine.low %v6956_v57, %v6959_v58 }
 0x787   :  { %v1547_v58 = vrot.slane %v1533_v50, %v6889_v17 }
 0x84b   :  { %v1048_v3 = vpop.f32.mrb[6].mxu0 }
 0x84c   :  { %v1052_v4 = vadd.f32 %v1048_v3, %v978_v2  ;;  %v6051_v5 = vpop.f32.mrb[7].mxu0  ;;  %v1644_v2 = vcombine.low %v1579_v56, %v1595_v51 }
 0x84d   :  { %v6634_v5 = vmov 1966171168  }
 0x84e   :  { %6399 = vtanh.f32 %v1052_v4 }
 0x858   :  { %v6400_v6 = vpop.eup %6399 }
 0x859   :  { %1054 = vst.msk [vmem:[#allocation3] sm:$0xff] %vm215_vm2, %v6400_v6  ;;  %6061 = vmatmul.mubr.msk.f32.vlgmr.msra.gmra.mrb[26].mxu1 %vm215_vm2, %v6400_v6  ;;  %v1814_v6 = vunpack.c.l.s4 %v6634_v5 }
 0x85a   :  { %6303 = vmatpush3.bf16.msra.mxu1 %v6922_v37  ;;  %6082 = vmatprep.mubr.msk.f32.mxu1 %vm6630_vm0, %v6631_v1 }
 0x85b   :  { %6304 = vmatprep.subr.bf16.mxu1 %v6629_v0 }
 0x85e   :  { %6306 = vmatpush3.bf16.msra.mxu1 %v6934_v40 }
 0x85f   :  { %6313 = vmatprep.subr.bf16.mxu1 %v6629_v0 }
 0x92c   :  { %v1126_v8 = vpop.f32.mrb[26].mxu1 }
 0x92d   :  { %v1130_v10 = vadd.f32 %v1126_v8, %v1056_v7  ;;  %v6062_v11 = vpop.f32.mrb[27].mxu1 }
 0x92f   :  { %6401 = vtanh.f32 %v1130_v10 }
 0x939   :  { %v6402_v12 = vpop.eup %6401 }
 0x93a   :  { %1132 = vst.msk [vmem:[#allocation3 + $0x8] sm:$0xff] %vm215_vm2, %v6402_v12  ;;  %6072 = vmatmul.mubr.msk.f32.vlgmr.msra.gmra.mrb[8].mxu0 %vm215_vm2, %v6402_v12 }
 0x93b   :  { %6309 = vmatpush3.bf16.msra.mxu0 %v6922_v37  ;;  %6093 = vmatprep.mubr.msk.f32.mxu0 %vm6630_vm0, %v6631_v1 }
 0x93c   :  { %6310 = vmatprep.subr.bf16.mxu0 %v6629_v0 }
 0x93f   :  { %6312 = vmatpush3.bf16.msra.mxu0 %v6934_v40 }
 0x940   :  { %6319 = vmatprep.subr.bf16.mxu0 %v6629_v0 }
 0xa0d   :  { %v1204_v16 = vpop.f32.mrb[8].mxu0 }
 0xa0e   :  { %v1208_v18 = vadd.f32 %v1204_v16, %v1134_v13  ;;  %v6073_v19 = vpop.f32.mrb[9].mxu0  ;;  %v1652_v13 = vrot.slane %v1644_v2, %v6953_v54 }
 0xa10   :  { %6403 = vtanh.f32 %v1208_v18  ;;  %v1645_v18 = vcombine.high %v1579_v56, %v1595_v51 }
 0xa1a   :  { %v6404_v20 = vpop.eup %6403 }
 0xa1b   :  { %1210 = vst.msk [vmem:[#allocation3 + $0x10] sm:$0xff] %vm215_vm2, %v6404_v20  ;;  %6083 = vmatmul.mubr.msk.f32.vlgmr.msra.gmra.mrb[28].mxu1 %vm215_vm2, %v6404_v20 }
 0xa1c   :  { %6315 = vmatpush3.bf16.msra.mxu1 %v6922_v37  ;;  %6104 = vmatprep.mubr.msk.f32.mxu1 %vm6630_vm0, %v6631_v1 }
 0xa1d   :  { %6316 = vmatprep.subr.bf16.mxu1 %v6629_v0 }
 0xa20   :  { %6318 = vmatpush3.bf16.msra.mxu1 %v6934_v40 }
 0xa21   :  { %6118 = vmatprep.subr.mxu1 %v6631_v1 }
 0xa22   :  { %v6373_v60 = vld [vmem:[#allocation3] ss:$16 sps:$4 sm:$0xff]   ;;  %v6379_v3 = vld [vmem:[#allocation3 + $0x4] ss:$16 sps:$4 sm:$0xff]  }
 0xa23   :  { %v1683_v12 = vrot.slane %v6373_v60, %v6889_v17  ;;  %v1690_v16 = vrot.slane %v6379_v3, %v6889_v17 }
 0xaee   :  { %v1282_v22 = vpop.f32.mrb[28].mxu1 }
 0xaef   :  { %v1286_v23 = vadd.f32 %v1282_v22, %v1212_v21  ;;  %v6084_v24 = vpop.f32.mrb[29].mxu1  ;;  %v1815_v22 = vunpack.c.0.s8 %v1814_v6 }
 0xaf1   :  { %6405 = vtanh.f32 %v1286_v23 }
 0xafb   :  { %v6406_v25 = vpop.eup %6405 }
 0xafc   :  { %1288 = vst.msk [vmem:[#allocation3 + $0x18] sm:$0xff] %vm215_vm2, %v6406_v25  ;;  %6094 = vmatmul.mubr.msk.f32.vlgmr.msra.gmra.mrb[10].mxu0 %vm215_vm2, %v6406_v25 }
 0xafd   :  { %6321 = vmatpush3.bf16.msra.mxu0 %v6922_v37  ;;  %6115 = vmatprep.mubr.msk.f32.mxu0 %vm6630_vm0, %v6631_v1 }
 0xafe   :  { %6322 = vmatprep.subr.bf16.mxu0 %v6629_v0 }
 0xb01   :  { %6324 = vmatpush3.bf16.msra.mxu0 %v6934_v40  ;;  %v1527_v40 = vld [vmem:[#allocation2 + $0x18] sm:$0xff] }
 0xb02   :  { %6128 = vmatprep.subr.mxu0 %v6631_v1  ;;  %v1549_v47 = vcombine.high %v1525_v43, %v1527_v40 }
 0xb03   :  { %v6375_v55 = vld [vmem:[#allocation3 + $0x8] ss:$16 sps:$4 sm:$0xff]   ;;  %v6380_v57 = vld [vmem:[#allocation3 + $0xc] ss:$16 sps:$4 sm:$0xff]  }
 0xb04   :  { %v1563_v53 = vrot.slane %v1549_v47, %v6889_v17  ;;  %v1699_v7 = vrot.slane %v6375_v55, %v6889_v17  ;;  %v1706_v8 = vrot.slane %v6380_v57, %v6889_v17 }
 0xb06   :  { %v1612_v4 = vcombine.low %v1547_v58, %v1563_v53  ;;  %v1613_v11 = vcombine.high %v1547_v58, %v1563_v53  ;;  %v1738_v23 = vcombine.low %v1683_v12, %v1699_v7  ;;  %v1739_v24 = vcombine.high %v1683_v12, %v1699_v7 }
 0xb07   :  { %v1754_v25 = vcombine.low %v1690_v16, %v1706_v8 }
 0xb08   :  { %v1620_v20 = vrot.slane %v1612_v4, %v6953_v54  ;;  %v1753_v39 = vrot.slane %v1739_v24, %v6953_v54 }
 0xb09   :  { %v1762_v40 = vrot.slane %v1754_v25, %v6953_v54 }
 0xb0a   :  { %v7063_v46 = vcombine.high %v1620_v20, %v1652_v13 }
 0xbcf   :  { %v1360_v27 = vpop.f32.mrb[10].mxu0 }
 0xbd0   :  { %v1364_v28 = vadd.f32 %v1360_v27, %v1290_v26  ;;  %v6095_v29 = vpop.f32.mrb[11].mxu0 }
 0xbd2   :  { %6407 = vtanh.f32 %v1364_v28 }
 0xbdc   :  { %v6408_v30 = vpop.eup %6407 }
 0xbdd   :  { %1366 = vst.msk [vmem:[#allocation3 + $0x20] sm:$0xff] %vm215_vm2, %v6408_v30  ;;  %6105 = vmatmul.mubr.msk.f32.vlgmr.msra.gmra.mrb[30].mxu1 %vm215_vm2, %v6408_v30  ;;  %v7041_v30 = vcombine.low %v1620_v20, %v1652_v13 }
 0xbde   :  { %6119 = vmatpush3.xpose.msk.msra.mxu1 %vm215_vm2, %v7008_v31  ;;  %6120 = vmatprep.mubr.msk.f32.mxu1 %vm6630_vm0, %v6631_v1 }
 0xbdf   :  { %6123 = vmatprep.subr.mxu1 %v6631_v1 }
 0xcb0   :  { %v1438_v32 = vpop.f32.mrb[30].mxu1 }
 0xcb1   :  { %v1442_v33 = vadd.f32 %v1438_v32, %v1368_v9  ;;  %v6106_v34 = vpop.f32.mrb[31].mxu1  ;;  %v1627_v9 = vrot.slane %v1613_v11, %v6953_v54  ;;  %v1659_v32 = vrot.slane %v1645_v18, %v6953_v54 }
 0xcb3   :  { %6409 = vtanh.f32 %v1442_v33  ;;  %v1755_v33 = vcombine.high %v1690_v16, %v1706_v8  ;;  %v7061_v45 = vcombine.low %v1627_v9, %v1659_v32  ;;  %v7066_v48 = vcombine.high %v1627_v9, %v1659_v32 }
 0xcb5   :  { %v1769_v47 = vrot.slane %v1755_v33, %v6953_v54 }
 0xcbd   :  { %v6410_v14 = vpop.eup %6409 }
 0xcbe   :  { %1444 = vst.msk [vmem:[#allocation3 + $0x28] sm:$0xff] %vm215_vm2, %v6410_v14  ;;  %6116 = vmatmul.mubr.msk.f32.vlgmr.msra.gmra.mrb[12].mxu0 %vm215_vm2, %v6410_v14 }
 0xcbf   :  { %6129 = vmatpush3.xpose.msk.msra.mxu0 %vm215_vm2, %v6966_v61  ;;  %6130 = vmatprep.mubr.msk.f32.mxu0 %vm6630_vm0, %v6631_v1 }
 0xcc0   :  { %6138 = vmatprep.subr.mxu0 %v6631_v1 }
 0xcc5   :  { %v1673_v59 = vld [vmem:[#allocation3 + $0x28] sm:$0xff] }
 0xcc6   :  { %v1723_v10 = vcombine.high %v1673_v59, %v6631_v1  ;;  %v1730_v27 = vrot.slane %v1673_v59, %v6889_v17 }
 0xcc8   :  { %v1737_v29 = vrot.slane %v1723_v10, %v6889_v17 }
 0xd91   :  { %v1516_v36 = vpop.f32.mrb[12].mxu0 }
 0xd92   :  { %v1520_v37 = vadd.f32 %v1516_v36, %v1446_v35  ;;  %v6117_v38 = vpop.f32.mrb[13].mxu0 }
 0xd93   :  { %v1746_v38 = vrot.slane %v1738_v23, %v6953_v54 }
 0xd94   :  { %6411 = vtanh.f32 %v1520_v37  ;;  %v7046_v37 = vsub.s32 %v1815_v22, %v6884_v15 }
 0xd9e   :  { %v6412_v52 = vpop.eup %6411 }
 0xd9f   :  { %1522 = vst.msk [vmem:[#allocation3 + $0x30] sm:$0xff] %vm215_vm2, %v6412_v52  ;;  %1523 = vst.msk [vmem:[#allocation15] sm:$0xff] %vm215_vm2, %v6412_v52 }
 0xda6   :  { %v6377_v19 = vld [vmem:[#allocation3 + $0x20] ss:$16 sps:$4 sm:$0xff]   ;;  %v6381_v21 = vld [vmem:[#allocation3 + $0x24] ss:$16 sps:$4 sm:$0xff]  }
 0xda7   :  { %v1715_v26 = vrot.slane %v6377_v19, %v6889_v17  ;;  %v1722_v28 = vrot.slane %v6381_v21, %v6889_v17 }
 0xda9   :  { %v1770_v34 = vcombine.low %v1715_v26, %v1730_v27  ;;  %v1771_v14 = vcombine.high %v1715_v26, %v1730_v27  ;;  %v1786_v35 = vcombine.low %v1722_v28, %v1737_v29  ;;  %v1787_v36 = vcombine.high %v1722_v28, %v1737_v29 }
 0xdab   :  { %v1778_v41 = vrot.slane %v1770_v34, %v6953_v54  ;;  %v7053_v42 = vrot.slane %v1771_v14, %v6953_v54  ;;  %v7056_v43 = vrot.slane %v1786_v35, %v6953_v54  ;;  %v7059_v44 = vrot.slane %v1787_v36, %v6953_v54 }
 0xdad   :  { %v1802_v49 = vcombine.low %v1746_v38, %v1778_v41  ;;  %v1804_v50 = vcombine.low %v1753_v39, %v7053_v42  ;;  %v1803_v51 = vcombine.high %v1746_v38, %v1778_v41  ;;  %v1806_v52 = vcombine.low %v1762_v40, %v7056_v43 }
 0xdae   :  { %v1805_v53 = vcombine.high %v1753_v39, %v7053_v42  ;;  %v1808_v55 = vcombine.low %v1769_v47, %v7059_v44  ;;  %v1807_v56 = vcombine.high %v1762_v40, %v7056_v43  ;;  %v7074_v57 = vcombine.high %v1769_v47, %v7059_v44 }
 0xdaf   :  { %6121 = vmatmul.mubr.msk.f32.vlgmr.msra.gmra.mrb[32].mxu1 %vm215_vm2, %v1802_v49  ;;  %v3582_v58 = vrot.slane %v1802_v49, %v7046_v37  ;;  %6131 = vmatmul.mubr.msk.f32.vlgmr.msra.gmra.mrb[14].mxu0 %vm215_vm2, %v1804_v50  ;;  %v3678_v59 = vrot.slane %v1804_v50, %v7046_v37  ;;  %v3630_v60 = vrot.slane %v1803_v51, %v7046_v37 }
 0xdb0   :  { %6124 = vmatpush3.xpose.msk.msra.mxu1 %vm215_vm2, %v6970_v62  ;;  %6139 = vmatpush3.xpose.msk.msra.mxu0 %vm215_vm2, %v7041_v30  ;;  %v7086_v2 = vrot.slane %v1806_v52, %v7046_v37  ;;  %v7089_v3 = vrot.slane %v1805_v53, %v7046_v37  ;;  %v7092_v4 = vrot.slane %v1808_v55, %v7046_v37 }
 0xdb1   :  { %6125 = vmatprep.mubr.msk.f32.mxu1 %vm6630_vm0, %v6631_v1  ;;  %6133 = vmatprep.subr.mxu1 %v6631_v1  ;;  %v7098_v5 = vrot.slane %v1807_v56, %v7046_v37  ;;  %v7102_v6 = vrot.slane %v7074_v57, %v7046_v37  ;;  %v5773_v7 = vcombine.high %v1778_v41, %v1778_v41 }
 0xdb2   :  { %6140 = vmatprep.mubr.msk.f32.mxu0 %vm6630_vm0, %v6631_v1  ;;  %6148 = vmatprep.subr.mxu0 %v6631_v1  ;;  %v3638_v8 = vcombine.high %v3630_v60, %v3630_v60  ;;  %v3646_v10 = vrot.slane %v3630_v60, %v7046_v37  ;;  %v3686_v11 = vcombine.high %v3678_v59, %v3678_v59 }
 0xdb3   :  { %6126 = vmatmul.mubr.msk.f32.vlgmr.msra.gmra.mrb[34].mxu1 %vm215_vm2, %v1803_v51  ;;  %6141 = vmatmul.mubr.msk.f32.vlgmr.msra.gmra.mrb[16].mxu0 %vm215_vm2, %v1806_v52  ;;  %v3637_v12 = vrot.slane %v5773_v7, %v7046_v37  ;;  %v7112_v13 = vrot.slane %v3678_v59, %v7046_v37  ;;  %v5772_v16 = vcombine.low %v1778_v41, %v1778_v41 }
 0xdb4   :  { %6134 = vmatpush3.xpose.msk.msra.mxu1 %vm215_vm2, %v6972_v63  ;;  %6149 = vmatpush3.xpose.msk.msra.mxu0 %vm215_vm2, %v7061_v45  ;;  %v3660_v18 = vrot.slane %v3638_v8, %v7046_v37  ;;  %v3668_v19 = vcombine.high %v3646_v10, %v3646_v10  ;;  %v7120_v20 = vrot.slane %v3686_v11, %v7046_v37 }
 0xdb5   :  { %6135 = vmatprep.mubr.msk.f32.mxu1 %vm6630_vm0, %v6631_v1  ;;  %6143 = vmatprep.subr.mxu1 %v6631_v1  ;;  %v3639_v21 = vcombine.high %v3637_v12, %v3637_v12  ;;  %v3653_v22 = vrot.slane %v3637_v12, %v7046_v37  ;;  %v3589_v23 = vrot.slane %v5772_v16, %v7046_v37 }
 0xdb6   :  { %6150 = vmatprep.mubr.msk.f32.mxu0 %vm6630_vm0, %v6631_v1  ;;  %6158 = vmatprep.subr.mxu0 %v6631_v1  ;;  %v3670_v24 = vcombine.high %v3660_v18, %v3660_v18  ;;  %v4358_v25 = vcombine.low %v3660_v18, %v3668_v19  ;;  %v4361_v26 = vcombine.low %v7112_v13, %v7120_v20 }
 0xdb7   :  { %6136 = vmatmul.mubr.msk.f32.vlgmr.msra.gmra.mrb[36].mxu1 %vm215_vm2, %v1805_v53  ;;  %6151 = vmatmul.mubr.msk.f32.vlgmr.msra.gmra.mrb[18].mxu0 %vm215_vm2, %v1808_v55  ;;  %v3667_v27 = vrot.slane %v3639_v21, %v7046_v37  ;;  %v3669_v28 = vcombine.high %v3653_v22, %v3653_v22  ;;  %v3590_v29 = vcombine.high %v3582_v58, %v3582_v58 }
 0xdb8   :  { %6144 = vmatpush3.xpose.msk.msra.mxu1 %vm215_vm2, %v7063_v46  ;;  %6159 = vmatpush3.msra.mxu0 %v7008_v31  ;;  %v4359_v9 = vcombine.low %v3670_v24, %v3653_v22  ;;  %v4368_v32 = vrot.slane %v4358_v25, %v7046_v37  ;;  %v4389_v33 = vrot.slane %v4361_v26, %v7046_v37 }
 0xdb9   :  { %6145 = vmatprep.mubr.msk.f32.mxu1 %vm6630_vm0, %v6631_v1  ;;  %6153 = vmatprep.subr.mxu1 %v6631_v1  ;;  %v4360_v34 = vcombine.low %v3667_v27, %v3669_v28  ;;  %v3591_v14 = vcombine.high %v3589_v23, %v3589_v23  ;;  %v3598_v35 = vrot.slane %v3582_v58, %v7046_v37 }
 0xdba   :  { %v4375_v36 = vrot.slane %v4359_v9, %v7046_v37  ;;  %v3605_v38 = vrot.slane %v3589_v23, %v7046_v37  ;;  %v3612_v31 = vrot.slane %v3590_v29, %v7046_v37  ;;  %v5774_v39 = vcombine.low %v7053_v42, %v7053_v42  ;;  %6160 = vmatprep.mubr.msk.f32.mxu0 %vm6630_vm0, %v6631_v1 }
 0xdbb   :  { %6146 = vmatmul.mubr.msk.f32.vlgmr.msra.gmra.mrb[38].mxu1 %vm215_vm2, %v1807_v56  ;;  %v4382_v40 = vrot.slane %v4360_v34, %v7046_v37  ;;  %v3619_v41 = vrot.slane %v3591_v14, %v7046_v37  ;;  %v3734_v47 = vcombine.high %v7089_v3, %v7089_v3  ;;  %v3742_v49 = vrot.slane %v7089_v3, %v7046_v37 }
 0xdbc   :  { %6154 = vmatpush3.xpose.msk.msra.mxu1 %vm215_vm2, %v7066_v48  ;;  %6155 = vmatprep.mubr.msk.f32.mxu1 %vm6630_vm0, %v6631_v1  ;;  %v4390_v50 = vcombine.low %v4368_v32, %v4375_v36  ;;  %v3621_v51 = vcombine.high %v3605_v38, %v3605_v38  ;;  %v4309_v52 = vcombine.low %v3598_v35, %v3612_v31 }
 0xdbd   :  { %6163 = vmatprep.subr.mxu1 %v6631_v1  ;;  %v4391_v53 = vcombine.low %v4382_v40, %v4389_v33  ;;  %v5784_v55 = vcombine.high %v3598_v35, %v3612_v31  ;;  %v4311_v56 = vcombine.low %v3605_v38, %v3619_v41  ;;  %v3685_v58 = vrot.slane %v5774_v39, %v7046_v37 }
 0xdbe   :  { %v4398_v59 = vrot.slane %v4390_v50, %v7046_v37  ;;  %v4312_v60 = vcombine.low %v3621_v51, %v3646_v10  ;;  %v4319_v3 = vrot.slane %v4309_v52, %v7046_v37  ;;  %v7167_v7 = vrot.slane %v3734_v47, %v7046_v37  ;;  %6168 = vmatprep.subr.mxu0 %v6631_v1 }
 0xdbf   :  { %6156 = vmatmul.mubr.msk.f32.vlgmr.msra.gmra.mrb[40].mxu1 %vm215_vm2, %v7074_v57  ;;  %v4405_v8 = vrot.slane %v4391_v53, %v7046_v37  ;;  %v4326_v11 = vrot.slane %v5784_v55, %v7046_v37  ;;  %v4333_v12 = vrot.slane %v4311_v56, %v7046_v37  ;;  %v3687_v16 = vcombine.high %v3685_v58, %v3685_v58 }
 0xdc0   :  { %6164 = vmatpush3.msra.mxu1 %v6970_v62  ;;  %v4340_v10 = vrot.slane %v4312_v60, %v7046_v37  ;;  %v3701_v18 = vrot.slane %v3685_v58, %v7046_v37  ;;  %v3764_v19 = vcombine.high %v3742_v49, %v3742_v49  ;;  %v5785_v21 = vcombine.high %v7112_v13, %v7120_v20 }
 0xdc1   :  { %v7180_v22 = vcombine.low %v4398_v59, %v4405_v8  ;;  %v4341_v57 = vcombine.low %v4319_v3, %v4326_v11  ;;  %v3715_v23 = vrot.slane %v3687_v16, %v7046_v37  ;;  %v5776_v24 = vcombine.low %v7056_v43, %v7056_v43  ;;  %6165 = vmatprep.mubr.msk.f32.mxu1 %vm6630_vm0, %v6631_v1 }
 0xdc2   :  { %v4342_v62 = vcombine.low %v4333_v12, %v4340_v10  ;;  %v3717_v25 = vcombine.high %v3701_v18, %v3701_v18  ;;  %v4410_v26 = vcombine.low %v7167_v7, %v3764_v19  ;;  %v4417_v27 = vrot.slane %v5785_v21, %v7046_v37  ;;  %6173 = vmatprep.subr.mxu1 %v6631_v1 }
 0xdc3   :  { %v4349_v13 = vrot.slane %v4341_v57, %v7046_v37  ;;  %v4408_v20 = vcombine.low %v3701_v18, %v3715_v23  ;;  %v3781_v28 = vrot.slane %v5776_v24, %v7046_v37  ;;  %v5777_v29 = vcombine.high %v7056_v43, %v7056_v43 }
 0xdc4   :  { %v4356_v9 = vrot.slane %v4342_v62, %v7046_v37  ;;  %v4409_v32 = vcombine.low %v3717_v25, %v3742_v49  ;;  %v4438_v33 = vrot.slane %v4410_v26, %v7046_v37  ;;  %v3830_v34 = vcombine.high %v7098_v5, %v7098_v5 }
 0xdc5   :  { %v4424_v14 = vrot.slane %v4408_v20, %v7046_v37  ;;  %v3783_v35 = vcombine.high %v3781_v28, %v3781_v28  ;;  %v3797_v36 = vrot.slane %v3781_v28, %v7046_v37  ;;  %v7201_v38 = vrot.slane %v5777_v29, %v7046_v37 }
 0xdc6   :  { %v7203_v31 = vcombine.low %v4349_v13, %v4356_v9  ;;  %v4431_v43 = vrot.slane %v4409_v32, %v7046_v37  ;;  %v3838_v39 = vrot.slane %v7098_v5, %v7046_v37  ;;  %v3852_v40 = vrot.slane %v3830_v34, %v7046_v37 }
 0xdc7   :  { %v4439_v41 = vcombine.low %v4417_v27, %v4424_v14  ;;  %v3811_v47 = vrot.slane %v3783_v35, %v7046_v37  ;;  %v3813_v49 = vcombine.high %v3797_v36, %v3797_v36  ;;  %v7212_v50 = vrot.slane %v7201_v38, %v7046_v37 }
 0xdc8   :  { %v4440_v51 = vcombine.low %v4431_v43, %v4438_v33  ;;  %v3860_v52 = vcombine.high %v3838_v39, %v3838_v39  ;;  %v3862_v53 = vcombine.high %v3852_v40, %v3852_v40  ;;  %v5775_v55 = vcombine.high %v7053_v42, %v7053_v42 }
 0xdc9   :  { %v4447_v56 = vrot.slane %v4439_v41, %v7046_v37  ;;  %v4505_v58 = vcombine.low %v3797_v36, %v3811_v47  ;;  %v4506_v5 = vcombine.low %v3813_v49, %v3838_v39  ;;  %v3766_v59 = vcombine.high %v7167_v7, %v7167_v7 }
 0xdca   :  { %v4454_v60 = vrot.slane %v4440_v51, %v7046_v37  ;;  %v4507_v3 = vcombine.low %v3852_v40, %v3860_v52  ;;  %v4508_v8 = vcombine.low %v3862_v53, %v7212_v50  ;;  %v3733_v11 = vrot.slane %v5775_v55, %v7046_v37 }
 0xdcb   :  { %v4515_v12 = vrot.slane %v4505_v58, %v7046_v37  ;;  %v4522_v16 = vrot.slane %v4506_v5, %v7046_v37  ;;  %v3782_v42 = vcombine.high %v7086_v2, %v7086_v2  ;;  %v3790_v10 = vrot.slane %v7086_v2, %v7046_v37 }
 0xdcc   :  { %v7228_v18 = vcombine.low %v4447_v56, %v4454_v60  ;;  %v4529_v7 = vrot.slane %v4507_v3, %v7046_v37  ;;  %v4536_v19 = vrot.slane %v4508_v8, %v7046_v37  ;;  %v3735_v21 = vcombine.high %v3733_v11, %v3733_v11 }
 0xdcd   :  { %v4537_v57 = vcombine.low %v4515_v12, %v4522_v16  ;;  %v3749_v23 = vrot.slane %v3733_v11, %v7046_v37  ;;  %v3804_v24 = vrot.slane %v3782_v42, %v7046_v37  ;;  %v5778_v62 = vcombine.low %v7059_v44, %v7059_v44 }
 0xdce   :  { %v4538_v25 = vcombine.low %v4529_v7, %v4536_v19  ;;  %v3763_v26 = vrot.slane %v3735_v21, %v7046_v37  ;;  %v5779_v2 = vcombine.high %v7059_v44, %v7059_v44  ;;  %v3926_v27 = vcombine.high %v7102_v6, %v7102_v6 }
 0xdcf   :  { %v4545_v13 = vrot.slane %v4537_v57, %v7046_v37  ;;  %v3765_v20 = vcombine.high %v3749_v23, %v3749_v23  ;;  %v4456_v28 = vcombine.low %v3766_v59, %v3749_v23  ;;  %v4458_v29 = vcombine.low %v3790_v10, %v3804_v24 }
 0xdd0   :  { %v4552_v9 = vrot.slane %v4538_v25, %v7046_v37  ;;  %v5786_v32 = vcombine.high %v3790_v10, %v3804_v24  ;;  %v3877_v33 = vrot.slane %v5778_v62, %v7046_v37  ;;  %v3925_v34 = vrot.slane %v5779_v2, %v7046_v37 }
 0xdd1   :  { %v4457_v14 = vcombine.low %v3763_v26, %v3765_v20  ;;  %v4466_v35 = vrot.slane %v4456_v28, %v7046_v37  ;;  %v4480_v44 = vrot.slane %v4458_v29, %v7046_v37  ;;  %v3934_v36 = vrot.slane %v7102_v6, %v7046_v37 }
 0xdd2   :  { %v7249_v43 = vcombine.low %v4545_v13, %v4552_v9  ;;  %v4487_v39 = vrot.slane %v5786_v32, %v7046_v37  ;;  %v3893_v40 = vrot.slane %v3877_v33, %v7046_v37  ;;  %v3927_v41 = vcombine.high %v3925_v34, %v3925_v34 }
 0xdd3   :  { %v4473_v47 = vrot.slane %v4457_v14, %v7046_v37  ;;  %v3941_v49 = vrot.slane %v3925_v34, %v7046_v37  ;;  %v3948_v51 = vrot.slane %v3926_v27, %v7046_v37  ;;  %v3956_v52 = vcombine.high %v3934_v36, %v3934_v36 }
 0xdd4   :  { %v4489_v53 = vcombine.low %v4480_v44, %v4487_v39  ;;  %v3909_v55 = vcombine.high %v3893_v40, %v3893_v40  ;;  %v3955_v56 = vrot.slane %v3927_v41, %v7046_v37  ;;  %v3831_v6 = vcombine.high %v7201_v38, %v7201_v38  ;;  %v1810_v41 = vld [vmem:[#allocation7] sm:$0xff] }
 0xdd5   :  { %v4488_v58 = vcombine.low %v4466_v35, %v4473_v47  ;;  %v3957_v5 = vcombine.high %v3941_v49, %v3941_v49  ;;  %v3958_v59 = vcombine.high %v3948_v51, %v3948_v51  ;;  %v4604_v60 = vcombine.low %v3948_v51, %v3956_v52 }
 0xdd6   :  { %v4503_v3 = vrot.slane %v4489_v53, %v7046_v37  ;;  %v4603_v8 = vcombine.low %v3909_v55, %v3934_v36  ;;  %v3859_v11 = vrot.slane %v3831_v6, %v7046_v37  ;;  %v3861_v12 = vcombine.high %v7212_v50, %v7212_v50 }
 0xdd7   :  { %v4496_v16 = vrot.slane %v4488_v58, %v7046_v37  ;;  %v4605_v42 = vcombine.low %v3958_v59, %v3941_v49  ;;  %v4606_v10 = vcombine.low %v3955_v56, %v3957_v5  ;;  %v4620_v7 = vrot.slane %v4604_v60, %v7046_v37 }
 0xdd8   :  { %v4613_v38 = vrot.slane %v4603_v8, %v7046_v37  ;;  %v3878_v19 = vcombine.high %v7092_v4, %v7092_v4  ;;  %v3879_v21 = vcombine.high %v3877_v33, %v3877_v33  ;;  %v4554_v62 = vcombine.low %v3859_v11, %v3861_v12 }
 0xdd9   :  { %v7268_v57 = vcombine.low %v4496_v16, %v4503_v3  ;;  %v4627_v23 = vrot.slane %v4605_v42, %v7046_v37  ;;  %v4634_v24 = vrot.slane %v4606_v10, %v7046_v37  ;;  %v3886_v25 = vrot.slane %v7092_v4, %v7046_v37 }
 0xdda   :  { %v4635_v50 = vcombine.low %v4613_v38, %v4620_v7  ;;  %v3900_v26 = vrot.slane %v3878_v19, %v7046_v37  ;;  %v3907_v2 = vrot.slane %v3879_v21, %v7046_v37  ;;  %v4564_v29 = vrot.slane %v4554_v62, %v7046_v37 }
 0xddb   :  { %v4636_v27 = vcombine.low %v4627_v23, %v4634_v24  ;;  %v1819_v47 = vrot.slane %v1810_v41, %v7046_v37  ;;  %v1812_v51 = vcombine.high %v1810_v41, %v1810_v41  ;;  %v1863_v53 = vsub.s32 0, %v6884_v15 }
 0xddc   :  { %v4555_v13 = vcombine.low %v3886_v25, %v3900_v26  ;;  %v5787_v20 = vcombine.high %v3886_v25, %v3900_v26  ;;  %v4557_v28 = vcombine.low %v3893_v40, %v3907_v2  ;;  %v4643_v9 = vrot.slane %v4635_v50, %v7046_v37 }
 0xddd   :  { %v4650_v32 = vrot.slane %v4636_v27, %v7046_v37  ;;  %v1835_v49 = vrot.slane %v1819_v47, %v7046_v37  ;;  %v1827_v52 = vcombine.high %v1819_v47, %v1819_v47  ;;  %v1826_v56 = vrot.slane %v1812_v51, %v7046_v37 }
 0xdde   :  { %v4571_v33 = vrot.slane %v4555_v13, %v7046_v37  ;;  %v4578_v34 = vrot.slane %v5787_v20, %v7046_v37  ;;  %v4585_v4 = vrot.slane %v4557_v28, %v7046_v37 }
 0xddf   :  { %v7282_v14 = vcombine.low %v4643_v9, %v4650_v32  ;;  %v1857_v55 = vcombine.high %v1835_v49, %v1835_v49  ;;  %v1849_v6 = vrot.slane %v1827_v52, %v7046_v37  ;;  %v1864_v58 = vrot.slane %v1835_v49, %v1863_v53 }
 0xde0   :  { %v4586_v35 = vcombine.low %v4564_v29, %v4571_v33  ;;  %v4587_v44 = vcombine.low %v4578_v34, %v4585_v4  ;;  %v1842_v59 = vrot.slane %v1826_v56, %v7046_v37  ;;  %v1828_v7 = vcombine.high %v1826_v56, %v1826_v56 }
 0xde1   :  { %v1872_v5 = vrot.slane %v1857_v55, %v1863_v53  ;;  %v1868_v8 = vrot.slane %v1849_v6, %v1863_v53  ;;  %v1859_v10 = vcombine.high %v1849_v6, %v1849_v6 }
 0xde2   :  { %v4594_v36 = vrot.slane %v4586_v35, %v7046_v37  ;;  %v4601_v39 = vrot.slane %v4587_v44, %v7046_v37  ;;  %v1880_v38 = vrot.slane %v1842_v59, %v1863_v53  ;;  %v1858_v21 = vcombine.high %v1842_v59, %v1842_v59 }
 0xde3   :  { %v1876_v26 = vrot.slane %v1859_v10, %v1863_v53  ;;  %v1856_v2 = vrot.slane %v1828_v7, %v7046_v37 }
 0xde4   :  { %v7286_v40 = vcombine.low %v4594_v36, %v4601_v39  ;;  %v1888_v13 = vrot.slane %v1858_v21, %v1863_v53 }
 0xde5   :  { %v1884_v34 = vrot.slane %v1856_v2, %v1863_v53  ;;  %v1860_v4 = vcombine.high %v1856_v2, %v1856_v2 }
 0xde7   :  { %v1892_v49 = vrot.slane %v1860_v4, %v1863_v53 }
 0xe82   :  { %v1973_v60 = vpop.f32.mrb[32].mxu1  ;;  %v2125_v3 = vpop.f32.mrb[14].mxu0 }
 0xe83   :  { %v1974_v11 = vadd.f32 %v1973_v60, %v1864_v58  ;;  %v2126_v12 = vadd.f32 %v2125_v3, %v1872_v5  ;;  %v6122_v16 = vpop.f32.mrb[33].mxu1  ;;  %v6132_v42 = vpop.f32.mrb[15].mxu0 }
 0xe85   :  { %v2516_v15 = vsel %vm2509_vm3, %v2126_v12, -inf  ;;  %v2510_v19 = vsel %vm2509_vm3, %v1974_v11, -inf }
 0xe86   :  { %2517 = vmax.xlane.f32.xlu1 %v2516_v15  ;;  %v2277_v23 = vpop.f32.mrb[16].mxu0  ;;  %2511 = vmax.xlane.f32.xlu0 %v2510_v19  ;;  %v2049_v24 = vpop.f32.mrb[34].mxu1 }
 0xe87   :  { %v2050_v62 = vadd.f32 %v2049_v24, %v1868_v8  ;;  %v6127_v50 = vpop.f32.mrb[35].mxu1  ;;  %v6142_v25 = vpop.f32.mrb[17].mxu0  ;;  %v2278_v27 = vadd.f32 %v2277_v23, %v1880_v38 }
 0xe89   :  { %v2513_v20 = vsel %vm2509_vm3, %v2050_v62, -inf  ;;  %v2522_v44 = vsel %vm2509_vm3, %v2278_v27, -inf }
 0xe8a   :  { %v2429_v28 = vpop.f32.mrb[18].mxu0  ;;  %2514 = vmax.xlane.f32.xlu0 %v2513_v20  ;;  %v2201_v29 = vpop.f32.mrb[36].mxu1 }
 0xe8b   :  { %v2202_v9 = vadd.f32 %v2201_v29, %v1876_v26  ;;  %v6137_v32 = vpop.f32.mrb[37].mxu1  ;;  %v6152_v33 = vpop.f32.mrb[19].mxu0  ;;  %v2430_v35 = vadd.f32 %v2429_v28, %v1888_v13 }
 0xe8d   :  { %v2519_v36 = vsel %vm2509_vm3, %v2202_v9, -inf  ;;  %v2528_v51 = vsel %vm2509_vm3, %v2430_v35, -inf }
 0xe8e   :  { %2523 = vmax.xlane.f32.xlu0 %v2522_v44  ;;  %2520 = vmax.xlane.f32.xlu1 %v2519_v36  ;;  %v2353_v39 = vpop.f32.mrb[38].mxu1 }
 0xe8f   :  { %v2354_v41 = vadd.f32 %v2353_v39, %v1884_v34  ;;  %v6147_v47 = vpop.f32.mrb[39].mxu1 }
 0xe91   :  { %v2525_v52 = vsel %vm2509_vm3, %v2354_v41, -inf }
 0xe92   :  { %2529 = vmax.xlane.f32.xlu0 %v2528_v51  ;;  %2526 = vmax.xlane.f32.xlu1 %v2525_v52  ;;  %v2505_v55 = vpop.f32.mrb[40].mxu1 }
 0xe93   :  { %v2506_v56 = vadd.f32 %v2505_v55, %v1892_v49  ;;  %v6157_v6 = vpop.f32.mrb[41].mxu1 }
 0xe95   :  { %v2531_v58 = vsel %vm2509_vm3, %v2506_v56, -inf }
 0xe96   :  { %2532 = vmax.xlane.f32.xlu1 %v2531_v58 }
 0xf13   :  { %v2518_v5 = vpop.xlane.xlu1 %2517  ;;  %v2512_v59 = vpop.xlane.xlu0 %2511 }
 0xf14   :  { %v2536_v60 = vsub.f32 %v2126_v12, %v2518_v5  ;;  %v2534_v3 = vsub.f32 %v1974_v11, %v2512_v59 }
 0xf16   :  { %v2542_v8 = vmul.f32 1.442695, %v2534_v3  ;;  %v2546_v16 = vmul.f32 1.442695, %v2536_v60 }
 0xf17   :  { %v2515_v42 = vpop.xlane.xlu0 %2514 }
 0xf18   :  { %v2535_v53 = vsub.f32 %v2050_v62, %v2515_v42  ;;  %6413 = vpow2.f32 %v2542_v8 }
 0xf19   :  { %6415 = vpow2.f32 %v2546_v16 }
 0xf1a   :  { %v2544_v10 = vmul.f32 1.442695, %v2535_v53 }
 0xf1b   :  { %v2524_v7 = vpop.xlane.xlu0 %2523  ;;  %v2521_v15 = vpop.xlane.xlu1 %2520 }
 0xf1c   :  { %6417 = vpow2.f32 %v2544_v10  ;;  %v2538_v38 = vsub.f32 %v2278_v27, %v2524_v7  ;;  %v2537_v19 = vsub.f32 %v2202_v9, %v2521_v15 }
 0xf1e   :  { %v2550_v21 = vmul.f32 1.442695, %v2538_v38  ;;  %v2548_v23 = vmul.f32 1.442695, %v2537_v19 }
 0xf1f   :  { %v2530_v24 = vpop.xlane.xlu0 %2529  ;;  %v2527_v50 = vpop.xlane.xlu1 %2526 }
 0xf20   :  { %6419 = vpow2.f32 %v2550_v21  ;;  %v2540_v25 = vsub.f32 %v2430_v35, %v2530_v24  ;;  %v2539_v12 = vsub.f32 %v2354_v41, %v2527_v50 }
 0xf21   :  { %6421 = vpow2.f32 %v2548_v23 }
 0xf22   :  { %v2554_v11 = vmul.f32 1.442695, %v2540_v25  ;;  %v2552_v26 = vmul.f32 1.442695, %v2539_v12  ;;  %v6414_v2 = vpop.eup %6413 }
 0xf23   :  { %v2533_v62 = vpop.xlane.xlu1 %2532  ;;  %v2558_v20 = vsel %vm2509_vm3, %v6414_v2, 0.0  ;;  %v6416_v28 = vpop.eup %6415 }
 0xf24   :  { %6423 = vpow2.f32 %v2554_v11  ;;  %v2541_v13 = vsub.f32 %v2506_v56, %v2533_v62  ;;  %2559 = vadd.xlane.f32.xlu0 %v2558_v20  ;;  %v2564_v32 = vsel %vm2509_vm3, %v6416_v28, 0.0 }
 0xf25   :  { %6425 = vpow2.f32 %v2552_v26 }
 0xf26   :  { %v6418_v27 = vpop.eup %6417  ;;  %v2556_v29 = vmul.f32 1.442695, %v2541_v13 }
 0xf27   :  { %v2561_v9 = vsel %vm2509_vm3, %v6418_v27, 0.0 }
 0xf28   :  { %6427 = vpow2.f32 %v2556_v29  ;;  %2562 = vadd.xlane.f32.xlu1 %v2561_v9  ;;  %2565 = vadd.xlane.f32.xlu0 %v2564_v32 }
 0xf2a   :  { %v6420_v33 = vpop.eup %6419 }
 0xf2b   :  { %v6422_v34 = vpop.eup %6421  ;;  %v2570_v4 = vsel %vm2509_vm3, %v6420_v33, 0.0 }
 0xf2c   :  { %v2567_v35 = vsel %vm2509_vm3, %v6422_v34, 0.0  ;;  %2571 = vadd.xlane.f32.xlu0 %v2570_v4 }
 0xf2d   :  { %2568 = vadd.xlane.f32.xlu1 %v2567_v35 }
 0xf2e   :  { %v6424_v44 = vpop.eup %6423 }
 0xf2f   :  { %v7308_v36 = vpop.eup %6425  ;;  %v2576_v39 = vsel %vm2509_vm3, %v6424_v44, 0.0 }
 0xf30   :  { %v2573_v41 = vsel %vm2509_vm3, %v7308_v36, 0.0  ;;  %2577 = vadd.xlane.f32.xlu0 %v2576_v39 }
 0xf31   :  { %2574 = vadd.xlane.f32.xlu1 %v2573_v41 }
 0xf32   :  { %v7313_v47 = vpop.eup %6427 }
 0xf33   :  { %v2579_v49 = vsel %vm2509_vm3, %v7313_v47, 0.0 }
 0xf35   :  { %2580 = vadd.xlane.f32.xlu1 %v2579_v49 }
 0xf46   :  { %4654 = vrot.lane.b32.xlu1 %v7180_v22, %s6635_s8  ;;  %4652 = vrot.lane.b32.xlu0 %v7203_v31, %s6635_s8 }
 0xf4a   :  { %4656 = vrot.lane.b32.xlu1 %v7228_v18, %s6635_s8  ;;  %4660 = vrot.lane.b32.xlu0 %v7249_v43, %s6635_s8 }
 0xf4e   :  { %4658 = vrot.lane.b32.xlu1 %v7268_v57, %s6635_s8  ;;  %4664 = vrot.lane.b32.xlu0 %v7282_v14, %s6635_s8 }
 0xf52   :  { %4662 = vrot.lane.b32.xlu1 %v7286_v40, %s6635_s8 }
 0xfb1   :  { %v2560_v51 = vpop.xlane.xlu0 %2559 }
 0xfb2   :  { %6429 = vrcp.f32 %v2560_v51 }
 0xfb5   :  { %v2563_v52 = vpop.xlane.xlu1 %2562  ;;  %v2566_v55 = vpop.xlane.xlu0 %2565 }
 0xfb6   :  { %6431 = vrcp.f32 %v2563_v52 }
 0xfb7   :  { %6433 = vrcp.f32 %v2566_v55 }
 0xfb9   :  { %v2572_v56 = vpop.xlane.xlu0 %2571 }
 0xfba   :  { %v2569_v22 = vpop.xlane.xlu1 %2568  ;;  %6435 = vrcp.f32 %v2572_v56  ;;  %v4681_v56 = vld [vmem:[%s7761_s9 + $0x8] sm:$0xff] }
 0xfbb   :  { %6437 = vrcp.f32 %v2569_v22 }
 0xfbc   :  { %v6430_v31 = vpop.eup %6429 }
 0xfbd   :  { %v2590_v18 = vmul.f32 %v6430_v31, %v6414_v2  ;;  %v2578_v43 = vpop.xlane.xlu0 %2577  ;;  %v4682_v31 = vld [vmem:[%s7761_s9 + $0x10] sm:$0xff] }
 0xfbe   :  { %v2575_v6 = vpop.xlane.xlu1 %2574  ;;  %6439 = vrcp.f32 %v2578_v43 }
 0xfbf   :  { %6441 = vrcp.f32 %v2575_v6  ;;  %6161 = vmatmul.mubr.msk.f32.vlgmr.msra.gmra.mrb[20].mxu0 %vm2598_vm4, %v2590_v18  ;;  %v4684_v6 = vld [vmem:[%s7761_s9 + $0x20] sm:$0xff] }
 0xfc0   :  { %v6432_v57 = vpop.eup %6431  ;;  %6169 = vmatpush3.msra.mxu0 %v6966_v61  ;;  %6170 = vmatprep.mubr.msk.f32.mxu0 %vm6630_vm0, %v6631_v1 }
 0xfc1   :  { %v6434_v14 = vpop.eup %6433  ;;  %v2591_v40 = vmul.f32 %v6432_v57, %v6418_v27  ;;  %6178 = vmatprep.subr.mxu0 %v6631_v1  ;;  %v4685_v57 = vld [vmem:[%s7761_s9 + $0x28] sm:$0xff] }
 0xfc2   :  { %v2592_v58 = vmul.f32 %v6434_v14, %v6416_v28  ;;  %v2581_v5 = vpop.xlane.xlu1 %2580  ;;  %v6332_v14 = vpack.c.bf16 %v4685_v57, %v4684_v6 }
 0xfc3   :  { %6443 = vrcp.f32 %v2581_v5  ;;  %6166 = vmatmul.mubr.msk.f32.vlgmr.msra.gmra.mrb[42].mxu1 %vm2598_vm4, %v2591_v40 }
 0xfc4   :  { %6171 = vmatmul.mubr.msk.f32.vlgmr.msra.gmra.mrb[22].mxu0 %vm2598_vm4, %v2592_v58  ;;  %6174 = vmatpush3.msra.mxu1 %v6972_v63  ;;  %v6436_v59 = vpop.eup %6435  ;;  %v5524_v42 = vcombine.low %v2590_v18, %v2592_v58  ;;  %v5525_v7 = vcombine.high %v2590_v18, %v2592_v58  ;;  %v4683_v18 = vld [vmem:[%s7761_s9 + $0x18] sm:$0xff] }
 0xfc5   :  { %6179 = vmatpush3.msra.mxu0 %v7041_v30  ;;  %6175 = vmatprep.mubr.msk.f32.mxu1 %vm6630_vm0, %v6631_v1  ;;  %v6438_v61 = vpop.eup %6437  ;;  %v2594_v60 = vmul.f32 %v6436_v59, %v6420_v33  ;;  %v6329_v43 = vpack.c.bf16 %v4683_v18, %v4682_v31  ;;  %v4687_v58 = vld [vmem:[%s7761_s9 + $0x38] sm:$0xff] }
 0xfc6   :  { %6180 = vmatprep.mubr.msk.f32.mxu0 %vm6630_vm0, %v6631_v1  ;;  %6183 = vmatprep.subr.mxu1 %v6631_v1  ;;  %v2593_v3 = vmul.f32 %v6438_v61, %v6422_v34  ;;  %v5532_v21 = vrot.slane %v5524_v42, %v6889_v17  ;;  %v5539_v25 = vrot.slane %v5525_v7, %v6889_v17 }
 0xfc7   :  { %6188 = vmatprep.subr.mxu0 %v6631_v1 }
 0xfc8   :  { %6181 = vmatmul.mubr.msk.f32.vlgmr.msra.gmra.mrb[24].mxu0 %vm2598_vm4, %v2594_v60  ;;  %v6440_v8 = vpop.eup %6439  ;;  %v5540_v63 = vcombine.low %v2591_v40, %v2593_v3  ;;  %6176 = vmatmul.mubr.msk.f32.vlgmr.msra.gmra.mrb[44].mxu1 %vm2598_vm4, %v2593_v3  ;;  %v5541_v53 = vcombine.high %v2591_v40, %v2593_v3  ;;  %v4686_v40 = vld [vmem:[%s7761_s9 + $0x30] sm:$0xff] }
 0xfc9   :  { %6189 = vmatpush3.msra.mxu0 %v7061_v45  ;;  %v6442_v30 = vpop.eup %6441  ;;  %v2596_v16 = vmul.f32 %v6440_v8, %v6424_v44  ;;  %6184 = vmatpush3.msra.mxu1 %v7063_v46  ;;  %v6335_v5 = vpack.c.bf16 %v4687_v58, %v4686_v40 }
 0xfca   :  { %6185 = vmatprep.mubr.msk.f32.mxu1 %vm6630_vm0, %v6631_v1  ;;  %v2595_v10 = vmul.f32 %v6442_v30, %v7308_v36  ;;  %6190 = vmatprep.mubr.msk.f32.mxu0 %vm6630_vm0, %v6631_v1  ;;  %v5548_v46 = vrot.slane %v5540_v63, %v6889_v17  ;;  %v5555_v23 = vrot.slane %v5541_v53, %v6889_v17 }
 0xfcb   :  { %6193 = vmatprep.subr.mxu1 %v6631_v1  ;;  %6325 = vmatprep.subr.bf16.mxu0 %v6629_v0  ;;  %v5556_v15 = vcombine.low %v2594_v60, %v2596_v16  ;;  %v5557_v38 = vcombine.high %v2594_v60, %v2596_v16 }
 0xfcc   :  { %6191 = vmatmul.mubr.msk.f32.vlgmr.msra.gmra.mrb[26].mxu0 %vm2598_vm4, %v2596_v16  ;;  %6186 = vmatmul.mubr.msk.f32.vlgmr.msra.gmra.mrb[46].mxu1 %vm2598_vm4, %v2595_v10  ;;  %v5588_v12 = vcombine.low %v5532_v21, %v5548_v46  ;;  %v5589_v11 = vcombine.high %v5532_v21, %v5548_v46  ;;  %v5604_v13 = vcombine.low %v5539_v25, %v5555_v23 }
 0xfcd   :  { %v6444_v45 = vpop.eup %6443  ;;  %6194 = vmatpush3.msra.mxu1 %v7066_v48  ;;  %6195 = vmatprep.mubr.msk.f32.mxu1 %vm6630_vm0, %v6631_v1  ;;  %v5564_v48 = vrot.slane %v5556_v15, %v6889_v17  ;;  %v5571_v26 = vrot.slane %v5557_v38, %v6889_v17  ;;  %v5605_v20 = vcombine.high %v5539_v25, %v5555_v23 }
 0xfce   :  { %v2597_v19 = vmul.f32 %v6444_v45, %v7313_v47  ;;  %6214 = vmatprep.mubr.msk.f32.mxu0 %vm6630_vm0, %v6631_v1  ;;  %v5596_v32 = vrot.slane %v5588_v12, %v6953_v54  ;;  %v5603_v33 = vrot.slane %v5589_v11, %v6953_v54 }
 0xfcf   :  { %v5619_v36 = vrot.slane %v5605_v20, %v6953_v54 }
 0xfd0   :  { %v5572_v24 = vcombine.low %v2595_v10, %v2597_v19  ;;  %v5573_v50 = vcombine.high %v2595_v10, %v2597_v19  ;;  %6196 = vmatmul.mubr.msk.f32.vlgmr.msra.gmra.mrb[48].mxu1 %vm2598_vm4, %v2597_v19 }
 0xfd2   :  { %v5580_v2 = vrot.slane %v5572_v24, %v6889_v17  ;;  %v5587_v62 = vrot.slane %v5573_v50, %v6889_v17  ;;  %v5612_v17 = vrot.slane %v5604_v13, %v6953_v54 }
 0xfd4   :  { %v5620_v28 = vcombine.low %v5564_v48, %v5580_v2  ;;  %v5621_v27 = vcombine.high %v5564_v48, %v5580_v2  ;;  %v5636_v29 = vcombine.low %v5571_v26, %v5587_v62  ;;  %v5637_v9 = vcombine.high %v5571_v26, %v5587_v62 }
 0xfd6   :  { %v5628_v34 = vrot.slane %v5620_v28, %v6953_v54  ;;  %v5635_v4 = vrot.slane %v5621_v27, %v6953_v54  ;;  %v5644_v35 = vrot.slane %v5636_v29, %v6953_v54  ;;  %v5651_v44 = vrot.slane %v5637_v9, %v6953_v54  ;;  %v4680_v54 = vld [vmem:[%s7761_s9] sm:$0xff]  ;;  %s6636_s9 = smov [#allocation13]  }
 0xfd7   :  { %v6326_v22 = vpack.c.bf16 %v4681_v56, %v4680_v54  ;;  %s5683_s4 = sshll.u32 %s6636_s9, 4  ;;  %s5684_s4 = int_to_ptr.vmem [resolvable:$true] %s5683_s4 }
 0xfd8   :  { %v5652_v39 = vcombine.low %v5596_v32, %v5628_v34  ;;  %v5653_v41 = vcombine.high %v5596_v32, %v5628_v34  ;;  %v5654_v47 = vcombine.low %v5603_v33, %v5635_v4  ;;  %v5655_v49 = vcombine.high %v5603_v33, %v5635_v4  ;;  %s6547_s29 = scalar_lea.vmem %s5684_s4, 896  ;;  %p6552_p5 = scmp.lt.s32.totalorder %s5684_s4, %s5684_s4 }
 0xfd9   :  { %v5656_v51 = vcombine.low %v5612_v17, %v5644_v35  ;;  %v5657_v52 = vcombine.high %v5612_v17, %v5644_v35  ;;  %v5658_v55 = vcombine.low %v5619_v36, %v5651_v44  ;;  %6327 = vmatpush3.bf16.msra.mxu0 %v6326_v22  ;;  %p6548_p4 = scmp.ne.s32.totalorder %s5684_s4, %s6547_s29  ;;  %p6553_p6 = scmp.lt.s32.totalorder %s6547_s29, %s6547_s29 }
 0xfda   :  { %5659 = vst.msk [vmem:[#allocation13] sm:$0xff] %vm2598_vm4, %v5652_v39  ;;  %5660 = vst.msk [vmem:[#allocation13 + $0x8] sm:$0xff] %vm2598_vm4, %v5653_v41  ;;  %6328 = vmatprep.subr.bf16.mxu0 %v6629_v0 }
 0xfdb   :  { %5661 = vst.msk [vmem:[#allocation13 + $0x10] sm:$0xff] %vm2598_vm4, %v5654_v47  ;;  %5662 = vst.msk [vmem:[#allocation13 + $0x18] sm:$0xff] %vm2598_vm4, %v5655_v49  ;;  %p6554_p7 = por %p6553_p6, %p6552_p5 }
 0xfdc   :  { %5663 = vst.msk [vmem:[#allocation13 + $0x20] sm:$0xff] %vm2598_vm4, %v5656_v51  ;;  %5664 = vst.msk [vmem:[#allocation13 + $0x28] sm:$0xff] %vm2598_vm4, %v5657_v52 }
 0xfdd   :  { %5665 = vst.msk [vmem:[#allocation13 + $0x30] sm:$0xff] %vm2598_vm4, %v5658_v55  ;;  %6330 = vmatpush3.bf16.msra.mxu0 %v6329_v43  ;;  %p6555_p8 = pnand %p6554_p7, %p6548_p4 }
 0xfde   :  { %6331 = vmatprep.subr.bf16.mxu0 %v6629_v0 }
 0xfe1   :  { %6333 = vmatpush3.bf16.msra.mxu0 %v6332_v14 }
 0xfe2   :  { %6334 = vmatprep.subr.bf16.mxu0 %v6629_v0 }
 0xfe5   :  { %6336 = vmatpush3.bf16.msra.mxu0 %v6335_v5 }
0x1092   :  { %v2668_v59 = vpop.f32.mrb[20].mxu0 }
0x1093   :  { %v3191_v61 = vcombine.high %v2668_v59, %v2668_v59  ;;  %v3198_v60 = vrot.slane %v2668_v59, %v7046_v37  ;;  %v6162_v3 = vpop.f32.mrb[21].mxu0 }
0x1095   :  { %v3205_v8 = vrot.slane %v3191_v61, %v7046_v37  ;;  %v3206_v63 = vcombine.high %v3198_v60, %v3198_v60  ;;  %v3214_v0 = vrot.slane %v3198_v60, %v7046_v37 }
0x1096   :  { %v2741_v30 = vpop.f32.mrb[42].mxu1 }
0x1097   :  { %v3239_v16 = vcombine.high %v2741_v30, %v2741_v30  ;;  %v3246_v42 = vrot.slane %v2741_v30, %v7046_v37  ;;  %v2814_v53 = vpop.f32.mrb[22].mxu0  ;;  %v6167_v10 = vpop.f32.mrb[43].mxu1  ;;  %v3207_v45 = vcombine.high %v3205_v8, %v3205_v8  ;;  %v3221_v7 = vrot.slane %v3205_v8, %v7046_v37 }
0x1098   :  { %v3228_v46 = vrot.slane %v3206_v63, %v7046_v37  ;;  %v3287_v15 = vcombine.high %v2814_v53, %v2814_v53  ;;  %v6172_v38 = vpop.f32.mrb[23].mxu0  ;;  %v3294_v24 = vrot.slane %v2814_v53, %v7046_v37 }
0x1099   :  { %v3253_v19 = vrot.slane %v3239_v16, %v7046_v37  ;;  %v3254_v21 = vcombine.high %v3246_v42, %v3246_v42  ;;  %v3262_v23 = vrot.slane %v3246_v42, %v7046_v37  ;;  %v3235_v50 = vrot.slane %v3207_v45, %v7046_v37 }
0x109a   :  { %v3959_v25 = vcombine.low %v3214_v0, %v3228_v46  ;;  %v5780_v12 = vcombine.high %v3214_v0, %v3228_v46  ;;  %v3237_v11 = vcombine.high %v3221_v7, %v3221_v7  ;;  %v3301_v41 = vrot.slane %v3287_v15, %v7046_v37 }
0x109b   :  { %v3255_v48 = vcombine.high %v3253_v19, %v3253_v19  ;;  %v3269_v26 = vrot.slane %v3253_v19, %v7046_v37  ;;  %v3276_v2 = vrot.slane %v3254_v21, %v7046_v37  ;;  %v3284_v62 = vcombine.high %v3262_v23, %v3262_v23  ;;  %v2960_v13 = vpop.f32.mrb[24].mxu0  ;;  %v2887_v9 = vpop.f32.mrb[44].mxu1 }
0x109c   :  { %v3961_v20 = vcombine.low %v3221_v7, %v3235_v50  ;;  %v3969_v28 = vrot.slane %v3959_v25, %v7046_v37  ;;  %v3976_v27 = vrot.slane %v5780_v12, %v7046_v37  ;;  %v3962_v29 = vcombine.low %v3237_v11, %v3262_v23  ;;  %v6182_v32 = vpop.f32.mrb[25].mxu0  ;;  %v6177_v44 = vpop.f32.mrb[45].mxu1 }
0x109d   :  { %v3283_v33 = vrot.slane %v3255_v48, %v7046_v37  ;;  %v3285_v34 = vcombine.high %v3269_v26, %v3269_v26  ;;  %v3286_v4 = vcombine.high %v3276_v2, %v3276_v2  ;;  %v4008_v35 = vcombine.low %v3276_v2, %v3284_v62 }
0x109e   :  { %v3983_v17 = vrot.slane %v3961_v20, %v7046_v37  ;;  %v3991_v36 = vcombine.low %v3969_v28, %v3976_v27  ;;  %v3990_v39 = vrot.slane %v3962_v29, %v7046_v37  ;;  %v3302_v52 = vcombine.high %v3294_v24, %v3294_v24 }
0x109f   :  { %v4009_v47 = vcombine.low %v3286_v4, %v3269_v26  ;;  %v4010_v49 = vcombine.low %v3283_v33, %v3285_v34  ;;  %v4018_v51 = vrot.slane %v4008_v35, %v7046_v37  ;;  %v7428_v55 = vpop.f32.mrb[26].mxu0  ;;  %v3303_v22 = vcombine.high %v3301_v41, %v3301_v41  ;;  %v3033_v18 = vpop.f32.mrb[46].mxu1 }
0x10a0   :  { %v7431_v54 = vrot.slane %v3991_v36, %v7046_v37  ;;  %v7433_v56 = vcombine.low %v3983_v17, %v3990_v39  ;;  %v3310_v31 = vrot.slane %v3294_v24, %v7046_v37  ;;  %v6192_v43 = vpop.f32.mrb[27].mxu0  ;;  %v3317_v57 = vrot.slane %v3301_v41, %v7046_v37  ;;  %v6187_v58 = vpop.f32.mrb[47].mxu1 }
0x10a1   :  { %v4025_v6 = vrot.slane %v4009_v47, %v7046_v37  ;;  %v3324_v14 = vrot.slane %v3302_v52, %v7046_v37  ;;  %v4032_v40 = vrot.slane %v4010_v49, %v7046_v37  ;;  %v3331_v59 = vrot.slane %v3303_v22, %v7046_v37 }
0x10a2   :  { %v4006_v5 = vrot.slane %v7433_v56, %v7046_v37  ;;  %v3335_v61 = vcombine.high %v2887_v9, %v2887_v9  ;;  %v3342_v60 = vrot.slane %v2887_v9, %v7046_v37  ;;  %v3333_v30 = vcombine.high %v3317_v57, %v3317_v57 }
0x10a3   :  { %v7444_v3 = vcombine.low %v4018_v51, %v4025_v6  ;;  %v4011_v8 = vcombine.low %v3310_v31, %v3324_v14  ;;  %v5781_v63 = vcombine.high %v3310_v31, %v3324_v14  ;;  %v4058_v0 = vcombine.low %v3317_v57, %v3331_v59  ;;  %v7448_v10 = vpop.f32.mrb[48].mxu1 }
0x10a4   :  { %v3349_v16 = vrot.slane %v3335_v61, %v7046_v37  ;;  %v3350_v42 = vcombine.high %v3342_v60, %v3342_v60  ;;  %v3358_v53 = vrot.slane %v3342_v60, %v7046_v37  ;;  %v3383_v46 = vcombine.high %v2960_v13, %v2960_v13  ;;  %v6197_v38 = vpop.f32.mrb[49].mxu1 }
0x10a5   :  { %v4039_v45 = vrot.slane %v4011_v8, %v7046_v37  ;;  %v7452_v7 = vrot.slane %v5781_v63, %v7046_v37  ;;  %v3390_v15 = vrot.slane %v2960_v13, %v7046_v37  ;;  %v7456_v19 = vrot.slane %v4058_v0, %v7046_v37 }
0x10a6   :  { %v3351_v21 = vcombine.high %v3349_v16, %v3349_v16  ;;  %v3365_v23 = vrot.slane %v3349_v16, %v7046_v37  ;;  %v3372_v24 = vrot.slane %v3350_v42, %v7046_v37  ;;  %v3380_v25 = vcombine.high %v3358_v53, %v3358_v53 }
0x10a7   :  { %v7460_v50 = vcombine.low %v4032_v40, %v4039_v45  ;;  %v4059_v12 = vcombine.low %v3333_v30, %v3358_v53  ;;  %v3397_v11 = vrot.slane %v3383_v46, %v7046_v37  ;;  %v4089_v48 = vcombine.low %v7452_v7, %v7456_v19 }
0x10a8   :  { %v3379_v26 = vrot.slane %v3351_v21, %v7046_v37  ;;  %v3381_v2 = vcombine.high %v3365_v23, %v3365_v23  ;;  %v3382_v62 = vcombine.high %v3372_v24, %v3372_v24  ;;  %v4060_v13 = vcombine.low %v3372_v24, %v3380_v25 }
0x10a9   :  { %v4081_v20 = vrot.slane %v4059_v12, %v7046_v37  ;;  %v3398_v28 = vcombine.high %v3390_v15, %v3390_v15  ;;  %v3399_v27 = vcombine.high %v3397_v11, %v3397_v11  ;;  %v3406_v32 = vrot.slane %v3390_v15, %v7046_v37 }
0x10aa   :  { %v4106_v29 = vcombine.low %v3382_v62, %v3365_v23  ;;  %v4107_v9 = vcombine.low %v3379_v26, %v3381_v2  ;;  %v3413_v33 = vrot.slane %v3397_v11, %v7046_v37  ;;  %v4088_v34 = vrot.slane %v4060_v13, %v7046_v37 }
0x10ab   :  { %v3420_v4 = vrot.slane %v3398_v28, %v7046_v37  ;;  %v3427_v35 = vrot.slane %v3399_v27, %v7046_v37  ;;  %v3431_v44 = vcombine.high %v3033_v18, %v3033_v18  ;;  %v3438_v41 = vrot.slane %v3033_v18, %v7046_v37 }
0x10ac   :  { %v4116_v17 = vrot.slane %v4106_v29, %v7046_v37  ;;  %v4123_v36 = vrot.slane %v4107_v9, %v7046_v37  ;;  %v3429_v39 = vcombine.high %v3413_v33, %v3413_v33  ;;  %v7475_v47 = vcombine.low %v4081_v20, %v4088_v34 }
0x10ad   :  { %v4108_v49 = vcombine.low %v3406_v32, %v3420_v4  ;;  %v5782_v51 = vcombine.high %v3406_v32, %v3420_v4  ;;  %v4155_v52 = vcombine.low %v3413_v33, %v3427_v35  ;;  %v3445_v31 = vrot.slane %v3431_v44, %v7046_v37 }
0x10ae   :  { %v7477_v22 = vcombine.low %v4116_v17, %v4123_v36  ;;  %v3446_v43 = vcombine.high %v3438_v41, %v3438_v41  ;;  %v3454_v6 = vrot.slane %v3438_v41, %v7046_v37  ;;  %v3479_v40 = vcombine.high %v7428_v55, %v7428_v55 }
0x10af   :  { %v7482_v57 = vrot.slane %v4108_v49, %v7046_v37  ;;  %v7485_v14 = vrot.slane %v5782_v51, %v7046_v37  ;;  %v4165_v18 = vrot.slane %v4155_v52, %v7046_v37  ;;  %v3447_v58 = vcombine.high %v3445_v31, %v3445_v31 }
0x10b0   :  { %v3461_v59 = vrot.slane %v3445_v31, %v7046_v37  ;;  %v3468_v61 = vrot.slane %v3446_v43, %v7046_v37  ;;  %v3476_v60 = vcombine.high %v3454_v6, %v3454_v6  ;;  %v4156_v63 = vcombine.low %v3429_v39, %v3454_v6  ;;  %v4653_v39 = vpop.permute.xlu0 %4652 }
0x10b1   :  { %v4139_v8 = vcombine.low %v7482_v57, %v7485_v14  ;;  %v3486_v30 = vrot.slane %v7428_v55, %v7046_v37  ;;  %v3493_v0 = vrot.slane %v3479_v40, %v7046_v37  ;;  %v3475_v16 = vrot.slane %v3447_v58, %v7046_v37 }
0x10b2   :  { %v3477_v42 = vcombine.high %v3461_v59, %v3461_v59  ;;  %v3478_v53 = vcombine.high %v3468_v61, %v3468_v61  ;;  %v4157_v45 = vcombine.low %v3468_v61, %v3476_v60  ;;  %v4172_v46 = vrot.slane %v4156_v63, %v7046_v37 }
0x10b3   :  { %v3494_v15 = vcombine.high %v3486_v30, %v3486_v30  ;;  %v3495_v38 = vcombine.high %v3493_v0, %v3493_v0  ;;  %v3502_v21 = vrot.slane %v3486_v30, %v7046_v37  ;;  %v3509_v55 = vrot.slane %v3493_v0, %v7046_v37 }
0x10b4   :  { %v4158_v23 = vcombine.low %v3478_v53, %v3461_v59  ;;  %v4179_v24 = vrot.slane %v4157_v45, %v7046_v37  ;;  %v4204_v25 = vcombine.low %v3475_v16, %v3477_v42  ;;  %v4187_v12 = vcombine.low %v4165_v18, %v4172_v46 }
0x10b5   :  { %v3516_v11 = vrot.slane %v3494_v15, %v7046_v37  ;;  %v3523_v26 = vrot.slane %v3495_v38, %v7046_v37  ;;  %v3527_v2 = vcombine.high %v7448_v10, %v7448_v10  ;;  %v3525_v20 = vcombine.high %v3509_v55, %v3509_v55 }
0x10b6   :  { %v4186_v62 = vrot.slane %v4158_v23, %v7046_v37  ;;  %v4214_v13 = vrot.slane %v4204_v25, %v7046_v37  ;;  %v3534_v28 = vrot.slane %v7448_v10, %v7046_v37  ;;  %v4007_v35 = vcombine.low %v7431_v54, %v4006_v5  ;;  %v4655_v5 = vpop.permute.xlu1 %4654 }
0x10b7   :  { %v4205_v27 = vcombine.low %v3502_v21, %v3516_v11  ;;  %v5783_v29 = vcombine.high %v3502_v21, %v3516_v11  ;;  %v4207_v9 = vcombine.low %v3509_v55, %v3523_v26  ;;  %v3541_v32 = vrot.slane %v3527_v2, %v7046_v37  ;;  %v4661_v26 = vpop.permute.xlu0 %4660 }
0x10b8   :  { %v4188_v33 = vcombine.low %v4179_v24, %v4186_v62  ;;  %v3542_v34 = vcombine.high %v3534_v28, %v3534_v28  ;;  %v3550_v4 = vrot.slane %v3534_v28, %v7046_v37  ;;  %v4673_v54 = vsel %vm215_vm2, %v4007_v35, %v4653_v39 }
0x10b9   :  { %v4221_v44 = vrot.slane %v4205_v27, %v7046_v37  ;;  %v4228_v17 = vrot.slane %v5783_v29, %v7046_v37  ;;  %v4235_v10 = vrot.slane %v4207_v9, %v7046_v37  ;;  %v3543_v36 = vcombine.high %v3541_v32, %v3541_v32  ;;  %6215 = vmatmul.mubr.msk.f32.vlgmr.msra.gmra.mrb[28].mxu0 %vm4688_vm5, %v4673_v54 }
0x10ba   :  { %v3557_v41 = vrot.slane %v3541_v32, %v7046_v37  ;;  %v3564_v49 = vrot.slane %v3542_v34, %v7046_v37  ;;  %v3572_v51 = vcombine.high %v3550_v4, %v3550_v4  ;;  %v4253_v52 = vcombine.low %v3525_v20, %v3550_v4  ;;  %6217 = vmatprep.mubr.msk.f32.mxu0 %vm6630_vm0, %v6631_v1  ;;  %v4657_v38 = vpop.permute.xlu1 %4656 }
0x10bb   :  { %v4236_v31 = vcombine.low %v4214_v13, %v4221_v44  ;;  %v4237_v43 = vcombine.low %v4228_v17, %v4235_v10  ;;  %v3571_v56 = vrot.slane %v3543_v36, %v7046_v37  ;;  %v4048_v59 = vrot.slane %v7444_v3, %v7046_v37  ;;  %v4665_v20 = vpop.permute.xlu0 %4664 }
0x10bc   :  { %v3573_v6 = vcombine.high %v3557_v41, %v3557_v41  ;;  %v3574_v18 = vcombine.high %v3564_v49, %v3564_v49  ;;  %v4254_v40 = vcombine.low %v3564_v49, %v3572_v51  ;;  %v4263_v58 = vrot.slane %v4253_v52, %v7046_v37 }
0x10bd   :  { %v4055_v61 = vrot.slane %v7460_v50, %v7046_v37  ;;  %v4097_v60 = vrot.slane %v4089_v48, %v7046_v37  ;;  %v4104_v63 = vrot.slane %v7475_v47, %v7046_v37  ;;  %v4146_v42 = vrot.slane %v7477_v22, %v7046_v37 }
0x10be   :  { %v4255_v30 = vcombine.low %v3574_v18, %v3557_v41  ;;  %v4256_v0 = vcombine.low %v3571_v56, %v3573_v6  ;;  %v4270_v16 = vrot.slane %v4254_v40, %v7046_v37  ;;  %v4153_v50 = vrot.slane %v4139_v8, %v7046_v37 }
0x10bf   :  { %v4056_v53 = vcombine.low %v4048_v59, %v4055_v61  ;;  %v4105_v3 = vcombine.low %v4097_v60, %v4104_v63  ;;  %v4195_v7 = vrot.slane %v4187_v12, %v7046_v37  ;;  %v4202_v45 = vrot.slane %v4188_v33, %v7046_v37  ;;  %v4659_v12 = vpop.permute.xlu1 %4658 }
0x10c0   :  { %v4277_v19 = vrot.slane %v4255_v30, %v7046_v37  ;;  %v4284_v48 = vrot.slane %v4256_v0, %v7046_v37  ;;  %v4285_v47 = vcombine.low %v4263_v58, %v4270_v16  ;;  %v4154_v15 = vcombine.low %v4146_v42, %v4153_v50 }
0x10c1   :  { %v4674_v46 = vsel %vm215_vm2, %v4056_v53, %v4655_v5  ;;  %v4244_v22 = vrot.slane %v4236_v31, %v7046_v37  ;;  %v4203_v57 = vcombine.low %v4195_v7, %v4202_v45  ;;  %v4251_v14 = vrot.slane %v4237_v43, %v7046_v37 }
0x10c2   :  { %v4286_v21 = vcombine.low %v4277_v19, %v4284_v48  ;;  %6218 = vmatmul.mubr.msk.f32.gmra.mrb[30].mxu0 %vm4688_vm5, %v4674_v46  ;;  %v4293_v23 = vrot.slane %v4285_v47, %v7046_v37  ;;  %v4675_v25 = vsel %vm215_vm2, %v4105_v3, %v4657_v38  ;;  %v4676_v11 = vsel %vm215_vm2, %v4154_v15, %v4659_v12 }
0x10c3   :  { %6220 = vmatprep.mubr.msk.f32.mxu0 %vm6630_vm0, %v6631_v1  ;;  %v4252_v8 = vcombine.low %v4244_v22, %v4251_v14  ;;  %v4677_v2 = vsel %vm215_vm2, %v4203_v57, %v4661_v26  ;;  %v4663_v62 = vpop.permute.xlu1 %4662 }
0x10c4   :  { %v4300_v24 = vrot.slane %v4286_v21, %v7046_v37 }
0x10c5   :  { %v4678_v13 = vsel %vm215_vm2, %v4252_v8, %v4663_v62 }
0x10c6   :  { %6221 = vmatmul.mubr.msk.f32.gmra.mrb[32].mxu0 %vm4688_vm5, %v4675_v25  ;;  %v4301_v55 = vcombine.low %v4293_v23, %v4300_v24 }
0x10c7   :  { %6223 = vmatprep.mubr.msk.f32.mxu0 %vm6630_vm0, %v6631_v1 }
0x10c8   :  { %v4679_v28 = vsel %vm215_vm2, %v4301_v55, %v4665_v20 }
0x10ca   :  { %6224 = vmatmul.mubr.msk.f32.gmra.mrb[34].mxu0 %vm4688_vm5, %v4676_v11 }
0x10cb   :  { %6226 = vmatprep.mubr.msk.f32.mxu0 %vm6630_vm0, %v6631_v1 }
0x10ce   :  { %6227 = vmatmul.mubr.msk.f32.gmra.mrb[36].mxu0 %vm4688_vm5, %v4677_v2 }
0x10cf   :  { %6229 = vmatprep.mubr.msk.f32.mxu0 %vm6630_vm0, %v6631_v1 }
0x10d2   :  { %6230 = vmatmul.mubr.msk.f32.gmra.mrb[38].mxu0 %vm4688_vm5, %v4678_v13 }
0x10d3   :  { %6232 = vmatprep.mubr.msk.f32.mxu0 %vm6630_vm0, %v6631_v1 }
0x10d6   :  { %6233 = vmatmul.mubr.msk.f32.gmra.mrb[40].mxu0 %vm4688_vm5, %v4679_v28 }
0x10d7   :  { %6558 = shalt.err (!%p6555_p8)
}
0x10d8   :  { %s6559_s15 = scalar_lea.hbm %s7763_s11, 896 }
0x10d9   :  { %p6560_p9 = scmp.ne.s32.totalorder %s7763_s11, %s6559_s15  ;;  %p6563_p10 = scmp.lt.u32.totalorder %s6559_s15, %s7763_s11 }
0x10db   :  { %p6565_p11 = pnand %p6563_p10, %p6560_p9 }
0x10dd   :  { %6568 = shalt.err (!%p6565_p11)
}
0x10de   :  { %s6637_s18 = smov 128   ;;  %s6638_s8 = smov 8  }
0x10df   :  { %5689 = dma.vmem_to_hbm [thread:$0]  %s5684_s4, 896, %s7763_s11, [#allocation14], %s6637_s18, %s6637_s18, %s6638_s8  }
0x10e0   :  { %s6639_s22 = smov [#allocation15]  }
0x10e1   :  { %s5696_s14 = sshll.u32 %s6639_s22, 4  ;;  %s5697_s14 = int_to_ptr.vmem [resolvable:$true] %s5696_s14 }
0x10e2   :  { %s6569_s19 = scalar_lea.vmem %s5697_s14, 128  ;;  %p6574_p13 = scmp.lt.s32.totalorder %s5697_s14, %s5697_s14 }
0x10e3   :  { %p6570_p12 = scmp.ne.s32.totalorder %s5697_s14, %s6569_s19  ;;  %p6575_p0 = scmp.lt.s32.totalorder %s6569_s19, %s6569_s19 }
0x10e5   :  { %p6576_p1 = por %p6575_p0, %p6574_p13 }
0x10e7   :  { %p6577_p2 = pnand %p6576_p1, %p6570_p12 }
0x10e9   :  { %6580 = shalt.err (!%p6577_p2)
}
0x10ea   :  { %s6581_s1 = scalar_lea.hbm %s7764_s12, 128 }
0x10eb   :  { %p6582_p3 = scmp.ne.s32.totalorder %s7764_s12, %s6581_s1  ;;  %p6585_p4 = scmp.lt.u32.totalorder %s6581_s1, %s7764_s12 }
0x10ed   :  { %p6587_p5 = pnand %p6585_p4, %p6582_p3 }
0x10ef   :  { %6590 = shalt.err (!%p6587_p5)
}
0x10f0   :  { %5699 = dma.vmem_to_hbm [thread:$0]  %s5697_s14, 128, %s7764_s12, [#allocation14]  }
0x10f1   :  { %s6640_s12 = smov [#allocation12]  }
0x10f2   :  { %s5671_s28 = sshll.u32 %s6640_s12, 4  ;;  %s5672_s28 = int_to_ptr.vmem [resolvable:$true] %s5671_s28 }
0x10f3   :  { %s6591_s0 = scalar_lea.vmem %s5672_s28, 896  ;;  %p6596_p7 = scmp.lt.s32.totalorder %s5672_s28, %s5672_s28 }
0x10f4   :  { %p6592_p6 = scmp.ne.s32.totalorder %s5672_s28, %s6591_s0  ;;  %p6597_p8 = scmp.lt.s32.totalorder %s6591_s0, %s6591_s0 }
0x10f6   :  { %p6598_p9 = por %p6597_p8, %p6596_p7 }
0x10f8   :  { %p6599_p10 = pnand %p6598_p9, %p6592_p6 }
0x118c   :  { %v4776_v1 = vpop.f32.mrb[28].mxu0 }
0x118d   :  { %6445 = vtanh.f32 %v4776_v1  ;;  %v6216_v27 = vpop.f32.mrb[29].mxu0 }
0x1195   :  { %v4781_v29 = vpop.f32.mrb[30].mxu0 }
0x1196   :  { %6447 = vtanh.f32 %v4781_v29  ;;  %v6219_v9 = vpop.f32.mrb[31].mxu0 }
0x1197   :  { %v6446_v33 = vpop.eup %6445 }
0x1198   :  { %v4824_v4 = vcombine.high %v6446_v33, %v6446_v33  ;;  %v4831_v35 = vrot.slane %v6446_v33, %v7046_v37 }
0x1199   :  { %v4786_v32 = vpop.f32.mrb[32].mxu0 }
0x119a   :  { %6449 = vtanh.f32 %v4786_v32  ;;  %v6222_v34 = vpop.f32.mrb[33].mxu0  ;;  %v4838_v44 = vrot.slane %v4824_v4, %v7046_v37  ;;  %v4839_v41 = vcombine.high %v4831_v35, %v4831_v35  ;;  %v4847_v49 = vrot.slane %v4831_v35, %v7046_v37 }
0x119c   :  { %v4840_v36 = vcombine.high %v4838_v44, %v4838_v44  ;;  %v4854_v56 = vrot.slane %v4838_v44, %v7046_v37  ;;  %v4861_v59 = vrot.slane %v4839_v41, %v7046_v37  ;;  %v4869_v61 = vcombine.high %v4847_v49, %v4847_v49 }
0x119d   :  { %v4791_v17 = vpop.f32.mrb[34].mxu0 }
0x119e   :  { %6451 = vtanh.f32 %v4791_v17  ;;  %v6225_v10 = vpop.f32.mrb[35].mxu0  ;;  %v4868_v51 = vrot.slane %v4840_v36, %v7046_v37  ;;  %v4870_v19 = vcombine.high %v4854_v56, %v4854_v56 }
0x11a0   :  { %v6448_v39 = vpop.eup %6447  ;;  %v4872_v5 = vcombine.high %v4868_v51, %v4868_v51 }
0x11a1   :  { %v4873_v52 = vcombine.high %v6448_v39, %v6448_v39  ;;  %v4880_v31 = vrot.slane %v6448_v39, %v7046_v37  ;;  %v4796_v43 = vpop.f32.mrb[36].mxu0 }
0x11a2   :  { %6453 = vtanh.f32 %v4796_v43  ;;  %v6228_v54 = vpop.f32.mrb[37].mxu0  ;;  %v5167_v60 = vcombine.low %v4847_v49, %v4872_v5 }
0x11a3   :  { %v4887_v6 = vrot.slane %v4873_v52, %v7046_v37  ;;  %v4888_v18 = vcombine.high %v4880_v31, %v4880_v31  ;;  %v4896_v40 = vrot.slane %v4880_v31, %v7046_v37 }
0x11a4   :  { %v6450_v58 = vpop.eup %6449  ;;  %v5177_v22 = vrot.slane %v5167_v60, %v7046_v37 }
0x11a5   :  { %v4889_v63 = vcombine.high %v4887_v6, %v4887_v6  ;;  %v4903_v30 = vrot.slane %v4887_v6, %v7046_v37  ;;  %v4910_v0 = vrot.slane %v4888_v18, %v7046_v37  ;;  %v7612_v16 = vpop.f32.mrb[38].mxu0  ;;  %v5216_v42 = vcombine.low %v4861_v59, %v4896_v40 }
0x11a6   :  { %v5797_v53 = vcombine.high %v4861_v59, %v4896_v40  ;;  %v4922_v3 = vcombine.high %v6450_v58, %v6450_v58  ;;  %v4929_v50 = vrot.slane %v6450_v58, %v7046_v37  ;;  %v6231_v7 = vpop.f32.mrb[39].mxu0  ;;  %6455 = vtanh.f32 %v7612_v16 }
0x11a7   :  { %v4917_v48 = vrot.slane %v4889_v63, %v7046_v37  ;;  %v4920_v47 = vcombine.high %v4910_v0, %v4910_v0  ;;  %v5265_v46 = vcombine.low %v4869_v61, %v4910_v0  ;;  %v5412_v15 = vcombine.low %v4868_v51, %v4903_v30 }
0x11a8   :  { %v6452_v45 = vpop.eup %6451  ;;  %v4936_v57 = vrot.slane %v4922_v3, %v7046_v37  ;;  %v4919_v8 = vcombine.high %v4903_v30, %v4903_v30  ;;  %v4937_v23 = vcombine.high %v4929_v50, %v4929_v50  ;;  %v4945_v24 = vrot.slane %v4929_v50, %v7046_v37 }
0x11a9   :  { %v5363_v38 = vcombine.low %v4854_v56, %v4920_v47  ;;  %v5461_v21 = vcombine.low %v4870_v19, %v4917_v48  ;;  %v7618_v14 = vpop.f32.mrb[40].mxu0  ;;  %v4971_v25 = vcombine.high %v6452_v45, %v6452_v45  ;;  %v7622_v12 = vrot.slane %v5216_v42, %v7046_v37 }
0x11aa   :  { %v6234_v55 = vpop.f32.mrb[41].mxu0  ;;  %v7625_v11 = vrot.slane %v5797_v53, %v7046_v37  ;;  %v4938_v26 = vcombine.high %v4936_v57, %v4936_v57  ;;  %v4952_v2 = vrot.slane %v4936_v57, %v7046_v37  ;;  %v5275_v13 = vrot.slane %v5265_v46, %v7046_v37 }
0x11ab   :  { %v7630_v20 = vrot.slane %v5412_v15, %v7046_v37  ;;  %v4978_v28 = vrot.slane %v6452_v45, %v7046_v37  ;;  %v4985_v1 = vrot.slane %v4971_v25, %v7046_v37  ;;  %v5373_v27 = vrot.slane %v5363_v38, %v7046_v37 }
0x11ac   :  { %v6454_v62 = vpop.eup %6453  ;;  %v4966_v29 = vrot.slane %v4938_v26, %v7046_v37  ;;  %v5795_v9 = vcombine.high %v4917_v48, %v4952_v2  ;;  %v4959_v33 = vrot.slane %v4937_v23, %v7046_v37  ;;  %v4967_v34 = vcombine.high %v4945_v24, %v4945_v24 }
0x11ad   :  { %v5020_v32 = vcombine.high %v6454_v62, %v6454_v62  ;;  %v4986_v4 = vcombine.high %v4978_v28, %v4978_v28  ;;  %v4994_v35 = vrot.slane %v4978_v28, %v7046_v37  ;;  %v5027_v36 = vrot.slane %v6454_v62, %v7046_v37 }
0x11ae   :  { %v4970_v44 = vcombine.high %v4966_v29, %v4966_v29  ;;  %v5168_v17 = vcombine.low %v4919_v8, %v4966_v29  ;;  %v5233_v10 = vrot.slane %v5795_v9, %v7046_v37  ;;  %v4987_v39 = vcombine.high %v4985_v1, %v4985_v1 }
0x11af   :  { %v5008_v41 = vrot.slane %v4986_v4, %v7046_v37  ;;  %v5315_v49 = vcombine.low %v4959_v33, %v4994_v35  ;;  %v5034_v51 = vrot.slane %v5020_v32, %v7046_v37  ;;  %v5799_v56 = vcombine.high %v4959_v33, %v4994_v35 }
0x11b0   :  { %v5184_v52 = vrot.slane %v5168_v17, %v7046_v37  ;;  %v5248_v31 = vcombine.low %v7622_v12, %v5233_v10  ;;  %v5266_v43 = vcombine.low %v4945_v24, %v4970_v44  ;;  %v5001_v54 = vrot.slane %v4985_v1, %v7046_v37  ;;  %v6456_v23 = vpop.eup %6455 }
0x11b1   :  { %v5018_v5 = vcombine.high %v5008_v41, %v5008_v41  ;;  %v5331_v6 = vrot.slane %v5315_v49, %v7046_v37  ;;  %v5364_v18 = vcombine.low %v4967_v34, %v5008_v41  ;;  %v7650_v59 = vrot.slane %v5799_v56, %v7046_v37 }
0x11b2   :  { %v7646_v40 = vcombine.low %v5177_v22, %v5184_v52  ;;  %v5282_v58 = vrot.slane %v5266_v43, %v7046_v37  ;;  %v5035_v61 = vcombine.high %v5027_v36, %v5027_v36  ;;  %v5036_v0 = vcombine.high %v5034_v51, %v5034_v51 }
0x11b3   :  { %v5346_v60 = vcombine.low %v7625_v11, %v5331_v6  ;;  %v5380_v63 = vrot.slane %v5364_v18, %v7046_v37  ;;  %v5462_v30 = vcombine.low %v4952_v2, %v5018_v5  ;;  %v5471_v42 = vrot.slane %v5461_v21, %v7046_v37 }
0x11b4   :  { %v7655_v53 = vcombine.low %v5275_v13, %v5282_v58  ;;  %v5444_v3 = vcombine.low %v7630_v20, %v7650_v59  ;;  %v5015_v50 = vrot.slane %v4987_v39, %v7046_v37  ;;  %v5050_v48 = vrot.slane %v5034_v51, %v7046_v37 }
0x11b5   :  { %v7660_v7 = vcombine.low %v5373_v27, %v5380_v63  ;;  %v5478_v19 = vrot.slane %v5462_v30, %v7046_v37  ;;  %v5017_v47 = vcombine.high %v5001_v54, %v5001_v54  ;;  %v5057_v45 = vrot.slane %v5035_v61, %v7046_v37 }
0x11b6   :  { %v5064_v46 = vrot.slane %v5036_v0, %v7046_v37  ;;  %v5218_v22 = vcombine.low %v5015_v50, %v5050_v48  ;;  %v5798_v57 = vcombine.high %v5015_v50, %v5050_v48  ;;  %6457 = vtanh.f32 %v7618_v14 }
0x11b7   :  { %v7666_v15 = vcombine.low %v5471_v42, %v5478_v19  ;;  %v5067_v38 = vcombine.high %v5057_v45, %v5057_v45  ;;  %v5043_v24 = vrot.slane %v5027_v36, %v7046_v37  ;;  %v5069_v25 = vcombine.high %v6456_v23, %v6456_v23 }
0x11b8   :  { %v7668_v21 = vcombine.low %v5017_v47, %v5064_v46  ;;  %v5076_v55 = vrot.slane %v6456_v23, %v7046_v37  ;;  %v7675_v11 = vrot.slane %v5248_v31, %v7046_v37  ;;  %v5068_v26 = vcombine.high %v5064_v46, %v5064_v46 }
0x11b9   :  { %v5169_v8 = vcombine.low %v5001_v54, %v5067_v38  ;;  %v5083_v2 = vrot.slane %v5069_v25, %v7046_v37  ;;  %v5207_v14 = vrot.slane %v7646_v40, %v7046_v37  ;;  %v5305_v28 = vrot.slane %v7655_v53, %v7046_v37 }
0x11ba   :  { %v5084_v62 = vcombine.high %v5076_v55, %v5076_v55  ;;  %v5092_v13 = vrot.slane %v5076_v55, %v7046_v37  ;;  %v7684_v1 = vrot.slane %v5346_v60, %v7046_v37  ;;  %v5065_v29 = vcombine.high %v5043_v24, %v5043_v24 }
0x11bb   :  { %v5240_v9 = vrot.slane %v5218_v22, %v7046_v37  ;;  %v5085_v32 = vcombine.high %v5083_v2, %v5083_v2  ;;  %v5365_v17 = vcombine.low %v5043_v24, %v5068_v26  ;;  %v5099_v10 = vrot.slane %v5083_v2, %v7046_v37 }
0x11bc   :  { %v5106_v33 = vrot.slane %v5084_v62, %v7046_v37  ;;  %v5414_v34 = vcombine.low %v5057_v45, %v5092_v13  ;;  %v5114_v36 = vcombine.high %v5092_v13, %v5092_v13  ;;  %v5191_v31 = vrot.slane %v5169_v8, %v7046_v37 }
0x11bd   :  { %v5113_v41 = vrot.slane %v5085_v32, %v7046_v37  ;;  %v5289_v43 = vrot.slane %v7668_v21, %v7046_v37  ;;  %v5338_v56 = vrot.slane %v5798_v57, %v7046_v37  ;;  %v5387_v58 = vrot.slane %v5365_v17, %v7046_v37 }
0x11be   :  { %v5463_v39 = vcombine.low %v5065_v29, %v5106_v33  ;;  %v5115_v61 = vcombine.high %v5099_v10, %v5099_v10  ;;  %v5436_v19 = vrot.slane %v5414_v34, %v7046_v37  ;;  %v5452_v2 = vrot.slane %v5444_v3, %v7046_v37 }
0x11bf   :  { %v5501_v59 = vrot.slane %v7666_v15, %v7046_v37 }
0x11c0   :  { %v6458_v12 = vpop.eup %6457  ;;  %v5485_v57 = vrot.slane %v5463_v39, %v7046_v37 }
0x11c1   :  { %v5118_v16 = vcombine.high %v6458_v12, %v6458_v12  ;;  %v5125_v27 = vrot.slane %v6458_v12, %v7046_v37 }
0x11c3   :  { %v5132_v4 = vrot.slane %v5118_v16, %v7046_v37  ;;  %v5133_v35 = vcombine.high %v5125_v27, %v5125_v27  ;;  %v5141_v44 = vrot.slane %v5125_v27, %v7046_v37 }
0x11c5   :  { %v5134_v49 = vcombine.high %v5132_v4, %v5132_v4  ;;  %v5148_v51 = vrot.slane %v5132_v4, %v7046_v37  ;;  %v5155_v52 = vrot.slane %v5133_v35, %v7046_v37  ;;  %v5796_v54 = vcombine.high %v5106_v33, %v5141_v44 }
0x11c6   :  { %v5403_v33 = vrot.slane %v7660_v7, %v7046_v37 }
0x11c7   :  { %v5162_v5 = vrot.slane %v5134_v49, %v7046_v37  ;;  %v5165_v6 = vcombine.high %v5155_v52, %v5155_v52  ;;  %v5170_v18 = vcombine.low %v5114_v36, %v5155_v52  ;;  %v5317_v40 = vcombine.low %v5113_v41, %v5148_v51 }
0x11c8   :  { %v5247_v60 = vrot.slane %v5796_v54, %v7046_v37  ;;  %v5800_v63 = vcombine.high %v5113_v41, %v5148_v51 }
0x11c9   :  { %v5166_v30 = vcombine.high %v5162_v5, %v5162_v5  ;;  %v5198_v0 = vrot.slane %v5170_v18, %v7046_v37  ;;  %v5268_v42 = vcombine.low %v5099_v10, %v5165_v6  ;;  %v5345_v50 = vrot.slane %v5317_v40, %v7046_v37 }
0x11ca   :  { %v5249_v48 = vcombine.low %v5240_v9, %v5247_v60  ;;  %v5366_v47 = vcombine.low %v5115_v61, %v5162_v5  ;;  %v5443_v45 = vrot.slane %v5800_v63, %v7046_v37 }
0x11cb   :  { %v5200_v46 = vcombine.low %v5191_v31, %v5198_v0  ;;  %v5296_v22 = vrot.slane %v5268_v42, %v7046_v37  ;;  %v5347_v38 = vcombine.low %v5338_v56, %v5345_v50  ;;  %v5464_v21 = vcombine.low %v5141_v44, %v5166_v30 }
0x11cc   :  { %v5263_v8 = vrot.slane %v5249_v48, %v7046_v37  ;;  %v5394_v23 = vrot.slane %v5366_v47, %v7046_v37  ;;  %v5445_v24 = vcombine.low %v5436_v19, %v5443_v45 }
0x11cd   :  { %v5214_v25 = vrot.slane %v5200_v46, %v7046_v37  ;;  %v5298_v55 = vcombine.low %v5289_v43, %v5296_v22  ;;  %v5361_v12 = vrot.slane %v5347_v38, %v7046_v37  ;;  %v5492_v26 = vrot.slane %v5464_v21, %v7046_v37 }
0x11ce   :  { %v5264_v62 = vcombine.low %v7675_v11, %v5263_v8  ;;  %v5396_v13 = vcombine.low %v5387_v58, %v5394_v23  ;;  %v5459_v16 = vrot.slane %v5445_v24, %v7046_v37 }
0x11cf   :  { %v5215_v27 = vcombine.low %v5207_v14, %v5214_v25  ;;  %v5312_v29 = vrot.slane %v5298_v55, %v7046_v37  ;;  %v5362_v9 = vcombine.low %v7684_v1, %v5361_v12  ;;  %v5494_v32 = vcombine.low %v5485_v57, %v5492_v26 }
0x11d0   :  { %v5410_v34 = vrot.slane %v5396_v13, %v7046_v37  ;;  %v5460_v4 = vcombine.low %v5452_v2, %v5459_v16  ;;  %5518 = vst.msk [vmem:[#allocation12 + $0x8] sm:$0xff] %vm215_vm2, %v5264_v62 }
0x11d1   :  { %v5313_v20 = vcombine.low %v5305_v28, %v5312_v29  ;;  %v5508_v3 = vrot.slane %v5494_v32, %v7046_v37  ;;  %5517 = vst.msk [vmem:[#allocation12] sm:$0xff] %vm215_vm2, %v5215_v27  ;;  %5520 = vst.msk [vmem:[#allocation12 + $0x18] sm:$0xff] %vm215_vm2, %v5362_v9 }
0x11d2   :  { %v5411_v7 = vcombine.low %v5403_v33, %v5410_v34  ;;  %5522 = vst.msk [vmem:[#allocation12 + $0x28] sm:$0xff] %vm215_vm2, %v5460_v4 }
0x11d3   :  { %v5509_v11 = vcombine.low %v5501_v59, %v5508_v3  ;;  %5519 = vst.msk [vmem:[#allocation12 + $0x10] sm:$0xff] %vm215_vm2, %v5313_v20 }
0x11d4   :  { %5521 = vst.msk [vmem:[#allocation12 + $0x20] sm:$0xff] %vm215_vm2, %v5411_v7 }
0x11d5   :  { %5523 = vst.msk [vmem:[#allocation12 + $0x30] sm:$0xff] %vm215_vm2, %v5509_v11 }
0x11d6   :  { %6602 = shalt.err (!%p6599_p10)
}
0x11d7   :  { %s6603_s4 = scalar_lea.hbm %s7762_s10, 896 }
0x11d8   :  { %p6604_p11 = scmp.ne.s32.totalorder %s7762_s10, %s6603_s4  ;;  %p6607_p12 = scmp.lt.u32.totalorder %s6603_s4, %s7762_s10 }
0x11da   :  { %p6609_p13 = pnand %p6607_p12, %p6604_p11 }
0x11dc   :  { %6612 = shalt.err (!%p6609_p13)
}
0x11dd   :  { %5677 = dma.vmem_to_hbm [thread:$0]  %s5672_s28, 896, %s7762_s10, [#allocation6], %s6637_s18, %s6637_s18, %s6638_s8  }
0x11de   :  { %6619 = dma.done.wait [#allocation6], 896  }
0x11df   :  { %6620 = vsyncadd [#allocation6], 4294966400 }
0x11e0   :  { %6621 = dma.done.wait [#allocation14], 1024  }
0x11e1   :  { %6622 = vsyncadd [#allocation14], 4294966272 }
0x11e2   :  { %5709 = vsyncpa [#allocation5], 1 }
0x11e3   :  { %5710 = vsyncpa [#allocation8], 1 }
0x11e4   :  { %5711 = vsyncpa [#allocation11], 1 }
0x11e5   :  { %5712 = vsyncpa [#allocation6], 1 }
0x11e6   :  { %5713 = vsyncpa [#allocation14], 1 }

</bundles_post_ra>
